<compile_context>
chip_gen: v6e
topology: v6e:2x2x1
jax: 0.10.0
libtpu: 0.0.40
codegen_flags: <defaults>
</compile_context>

<pallas_src>
import numpy as np

import jax
import jax.numpy as jnp
from jax.experimental import pallas as pl
from jax.experimental.pallas import tpu as pltpu


# Order of the prepared-parameter arrays passed to the kernel (after the three
# per-call inputs: conv1 patches, conv_r1 subsample, time one-hot).
_PREP_ORDER = [
    "w1", "b1", "wr1", "br1",
    "g2", "w2", "b2",
    "gr2", "wr2", "br2",
    "g3", "w3", "b3",
    "g4", "w4", "b4",
    "sp", "wl1r", "wl1t", "bl1",
    "wl2", "bl2",
    "wl3", "bl3",
]


# -----------------------------------------------------------------------------
# The single fused kernel
# -----------------------------------------------------------------------------
def _fused_dqn_kernel(p1, xs1, oh, w1, b1, wr1, br1, g2, w2, b2,
                      gr2, wr2, br2, g3, w3, b3, g4, w4, b4,
                      sp, wl1r, wl1t, bl1, wl2, bl2, wl3, bl3, out):
    f32 = jnp.float32
    bf = jnp.bfloat16

    def mm(a, b_):                                   # bf16 x bf16 -> f32 (MXU)
        return jnp.dot(a, b_, preferred_element_type=f32)

    # ---- stage 1 -----------------------------------------------------------
    # relu(conv1): patches were built from the tiny raw input in the wrapper.
    h1 = jnp.maximum(mm(p1[...], w1[...]) + b1[...], 0.0).astype(bf)   # (128,16)
    # conv_r1 (1x1, stride 2) + BatchNorm (folded) on the original input.
    r1 = mm(xs1[...], wr1[...]) + br1[...]                             # (128,32) f32

    # conv2 (3x3, stride 1, pad 1) as 9 gathered MXU taps, f32 accumulator.
    acc = jnp.zeros((g2.shape[1], w2.shape[2]), f32)
    for tap in range(9):
        rows = mm(g2[tap], h1)                       # exact 0/1 row gather (handles zero-pad)
        acc = acc + mm(rows.astype(bf), w2[tap])
    h1o = jnp.maximum(acc + b2[...], 0.0) + r1       # relu(conv2) + residual  (128,32) f32
    h1ob = h1o.astype(bf)

    # ---- stage 2 -----------------------------------------------------------
    # conv_r2 (1x1, stride 2) + BN (folded): stride-2 subsample via gather matmul.
    r2 = mm(mm(gr2[...], h1ob).astype(bf), wr2[...]) + br2[...]        # (32,64) f32

    # conv3 (3x3, stride 2, pad 1)
    acc = jnp.zeros((g3.shape[1], w3.shape[2]), f32)
    for tap in range(9):
        rows = mm(g3[tap], h1ob)
        acc = acc + mm(rows.astype(bf), w3[tap])
    h3 = jnp.maximum(acc + b3[...], 0.0).astype(bf)                    # (32,64)

    # conv4 (3x3, stride 1, pad 1)
    acc = jnp.zeros((g4.shape[1], w4.shape[2]), f32)
    for tap in range(9):
        rows = mm(g4[tap], h3)
        acc = acc + mm(rows.astype(bf), w4[tap])
    h2o = (jnp.maximum(acc + b4[...], 0.0) + r2).astype(bf)            # relu(conv4)+res (32,64)

    # ---- flatten (PyTorch NCHW order folded into row-permuted wl1) + linears
    acc = mm(oh[...], wl1t[...]) + bl1[...]                            # time-one-hot part, (N,200)
    for pos in range(sp.shape[0]):                                     # 16 spatial positions
        rows = mm(sp[pos], h2o)                                        # (N, 64) gather
        acc = acc + mm(rows.astype(bf), wl1r[pos])
    o = jnp.maximum(acc, 0.0).astype(bf)                               # relu(linear)
    o = jnp.maximum(mm(o, wl2[...]) + bl2[...], 0.0).astype(bf)        # relu(linear2)
    out[...] = mm(o, wl3[...]) + bl3[...]                              # linear3 (N, n_actions)


# -----------------------------------------------------------------------------
# Parameters (PyTorch layouts) and one-time preparation
# -----------------------------------------------------------------------------
def init_params(key, c_in=4, h=16, w=16, time_size=8, n_actions=6):
    """Random parameters in PyTorch layouts (Conv2d: (O,I,kh,kw); Linear: (out,in))."""
    def nrm(k, shape, scale=0.1):
        return scale * jax.random.normal(k, shape, jnp.float32)

    ks = jax.random.split(key, 26)
    lin_in = 64 * (h // 4) * (w // 4) + time_size     # temporal_mode == 'time'
    return {
        "conv1_w": nrm(ks[0], (16, c_in, 3, 3)), "conv1_b": nrm(ks[1], (16,)),
        "conv2_w": nrm(ks[2], (32, 16, 3, 3)),   "conv2_b": nrm(ks[3], (32,)),
        "conv3_w": nrm(ks[4], (64, 32, 3, 3)),   "conv3_b": nrm(ks[5], (64,)),
        "conv4_w": nrm(ks[6], (64, 64, 3, 3)),   "conv4_b": nrm(ks[7], (64,)),
        "convr1_w": nrm(ks[8], (32, c_in, 1, 1)), "convr1_b": nrm(ks[9], (32,)),
        "bn1_g": 1.0 + nrm(ks[10], (32,)), "bn1_b": nrm(ks[11], (32,)),
        "bn1_m": nrm(ks[12], (32,)), "bn1_v": 1.0 + jnp.abs(nrm(ks[13], (32,))),
        "convr2_w": nrm(ks[14], (64, 32, 1, 1)), "convr2_b": nrm(ks[15], (64,)),
        "bn2_g": 1.0 + nrm(ks[16], (64,)), "bn2_b": nrm(ks[17], (64,)),
        "bn2_m": nrm(ks[18], (64,)), "bn2_v": 1.0 + jnp.abs(nrm(ks[19], (64,))),
        "wl1": nrm(ks[20], (200, lin_in)), "bl1": nrm(ks[21], (200,)),
        "wl2": nrm(ks[22], (50, 200)),     "bl2": nrm(ks[23], (50,)),
        "wl3": nrm(ks[24], (n_actions, 50)), "bl3": nrm(ks[25], (n_actions,)),
    }


def prepare_params(p, *, batch=2, h=16, w=16, eps=1e-5):
    """One-time prep: BN folding, bf16 weight casting, wl1 row permutation and
    constant 0/1 gather matrices (baked for this batch / spatial size)."""
    bf, f32 = jnp.bfloat16, jnp.float32
    hs1, ws1 = h // 2, w // 2          # 8x8 stage-1 grid
    hs2, ws2 = hs1 // 2, ws1 // 2      # 4x4 stage-2 grid
    m1, m2 = batch * hs1 * ws1, batch * hs2 * ws2

    def tap_weights(wc):               # torch (O,I,3,3) -> (9, I, O)
        return jnp.transpose(wc, (2, 3, 1, 0)).reshape(9, wc.shape[1], wc.shape[0]).astype(bf)

    def bn_fold(wc, b, g, beta, mean, var):   # 1x1 conv + BN (eval) -> matmul
        scale = g / jnp.sqrt(var + eps)
        w_eff = (wc[:, :, 0, 0].T * scale[None, :]).astype(bf)
        b_eff = ((b - mean) * scale + beta).reshape(1, -1).astype(f32)
        return w_eff, b_eff

    wr1, br1 = bn_fold(p["convr1_w"], p["convr1_b"], p["bn1_g"], p["bn1_b"], p["bn1_m"], p["bn1_v"])
    wr2, br2 = bn_fold(p["convr2_w"], p["convr2_b"], p["bn2_g"], p["bn2_b"], p["bn2_m"], p["bn2_v"])

    # linear1: split time part, permute feature rows from (c,h,w) -> (h*w, c)
    c4 = p["conv4_w"].shape[0]
    nfeat = c4 * hs2 * ws2
    wl1 = p["wl1"]
    wl1_feat = wl1[:, :nfeat].reshape(-1, c4, hs2, ws2)                 # (200, c, h, w)
    wl1r = jnp.transpose(wl1_feat, (2, 3, 1, 0)).reshape(hs2 * ws2, c4, -1).astype(bf)
    wl1t = wl1[:, nfeat:].T.astype(bf)                                  # (time, 200)

    # 0/1 gather matrices (spatial routing: shifts, zero padding, stride-2).
    G2 = np.zeros((9, m1, m1), np.float32)
    G3 = np.zeros((9, m2, m1), np.float32)
    G4 = np.zeros((9, m2, m2), np.float32)
    Gr2 = np.zeros((m2, m1), np.float32)
    Sp = np.zeros((hs2 * ws2, batch, m2), np.float32)

    def i1(n, i, j): return (n * hs1 + i) * ws1 + j
    def i2(n, i, j): return (n * hs2 + i) * ws2 + j

    for n in range(batch):
        for kh in range(3):
            for kw in range(3):
                tdx = kh * 3 + kw
                for i in range(hs1):                      # conv2: stride 1, pad 1
                    for j in range(ws1):
                        si, sj = i + kh - 1, j + kw - 1
                        if 0 <= si < hs1 and 0 <= sj < ws1:
                            G2[tdx, i1(n, i, j), i1(n, si, sj)] = 1.0
                for i in range(hs2):                      # conv3 (stride 2) / conv4 (stride 1)
                    for j in range(ws2):
                        si, sj = 2 * i + kh - 1, 2 * j + kw - 1
                        if 0 <= si < hs1 and 0 <= sj < ws1:
                            G3[tdx, i2(n, i, j), i1(n, si, sj)] = 1.0
                        si4, sj4 = i + kh - 1, j + kw - 1
                        if 0 <= si4 < hs2 and 0 <= sj4 < ws2:
                            G4[tdx, i2(n, i, j), i2(n, si4, sj4)] = 1.0
        for i in range(hs2):
            for j in range(ws2):
                Gr2[i2(n, i, j), i1(n, 2 * i, 2 * j)] = 1.0     # conv_r2: 1x1 stride 2
                Sp[i * ws2 + j, n, i2(n, i, j)] = 1.0           # per-position flatten gather

    return {
        "w1": jnp.transpose(p["conv1_w"], (2, 3, 1, 0)).reshape(9 * p["conv1_w"].shape[1], -1).astype(bf),
        "b1": p["conv1_b"].reshape(1, -1).astype(f32),
        "wr1": wr1, "br1": br1,
        "g2": jnp.asarray(G2, bf), "w2": tap_weights(p["conv2_w"]),
        "b2": p["conv2_b"].reshape(1, -1).astype(f32),
        "gr2": jnp.asarray(Gr2, bf), "wr2": wr2, "br2": br2,
        "g3": jnp.asarray(G3, bf), "w3": tap_weights(p["conv3_w"]),
        "b3": p["conv3_b"].reshape(1, -1).astype(f32),
        "g4": jnp.asarray(G4, bf), "w4": tap_weights(p["conv4_w"]),
        "b4": p["conv4_b"].reshape(1, -1).astype(f32),
        "sp": jnp.asarray(Sp, bf), "wl1r": wl1r, "wl1t": wl1t,
        "bl1": p["bl1"].reshape(1, -1).astype(f32),
        "wl2": p["wl2"].T.astype(bf), "bl2": p["bl2"].reshape(1, -1).astype(f32),
        "wl3": p["wl3"].T.astype(bf), "bl3": p["bl3"].reshape(1, -1).astype(f32),
    }


# -----------------------------------------------------------------------------
# Forward pass (thin JAX wrapper around the single fused kernel)
# -----------------------------------------------------------------------------
@jax.jit
def dqn_forward(prep, x_nchw, t):
    n, c, h, w = x_nchw.shape
    hs1, ws1 = h // 2, w // 2
    assert prep["g2"].shape[1] == n * hs1 * ws1, "selectors were prepared for a different batch/shape"

    # Only the ~8 KB raw observation is touched here (negligible HBM traffic).
    x = jnp.transpose(x_nchw, (0, 2, 3, 1)).astype(jnp.float32)         # NHWC
    xp = jnp.pad(x, ((0, 0), (1, 1), (1, 1), (0, 0)))
    cols = [xp[:, kh:kh + 2 * hs1:2, kw:kw + 2 * ws1:2, :]
            for kh in range(3) for kw in range(3)]
    patches1 = jnp.concatenate(cols, axis=-1).reshape(n * hs1 * ws1, 9 * c).astype(jnp.bfloat16)
    xs1 = x[:, ::2, ::2, :].reshape(n * hs1 * ws1, c).astype(jnp.bfloat16)

    time_size = prep["wl1t"].shape[0]
    oh = jax.nn.one_hot(t, time_size, dtype=jnp.float32).astype(jnp.bfloat16)

    args = [patches1, xs1, oh] + [prep[k] for k in _PREP_ORDER]
    n_actions = prep["wl3"].shape[1]
    return pl.pallas_call(
        _fused_dqn_kernel,
        out_shape=jax.ShapeDtypeStruct((n, n_actions), jnp.float32),
        in_specs=[pl.BlockSpec(memory_space=pltpu.MemorySpace.VMEM)] * len(args),
        out_specs=pl.BlockSpec(memory_space=pltpu.MemorySpace.VMEM),
    )(*args)


# -----------------------------------------------------------------------------
# Pure-JAX f32 reference (mirrors the PyTorch module, BN in eval mode)
# -----------------------------------------------------------------------------
def reference_forward(p, x_nchw, t, time_size, eps=1e-5):
    def conv(x, wt, b, stride, pad):
        y = jax.lax.conv_general_dilated(
            x, wt, (stride, stride), ((pad, pad), (pad, pad)),
            dimension_numbers=("NCHW", "OIHW", "NCHW"))
        return y + b[None, :, None, None]

    def bn(x, g, b, m, v):
        return (x - m[None, :, None, None]) / jnp.sqrt(v[None, :, None, None] + eps) \
            * g[None, :, None, None] + b[None, :, None, None]

    x = x_nchw.astype(jnp.float32)
    res = x
    h = jax.nn.relu(conv(x, p["conv1_w"], p["conv1_b"], 2, 1))
    h = jax.nn.relu(conv(h, p["conv2_w"], p["conv2_b"], 1, 1))
    res = bn(conv(res, p["convr1_w"], p["convr1_b"], 2, 0),
             p["bn1_g"], p["bn1_b"], p["bn1_m"], p["bn1_v"])
    h = h + res
    res = h
    h = jax.nn.relu(conv(h, p["conv3_w"], p["conv3_b"], 2, 1))
    h = jax.nn.relu(conv(h, p["conv4_w"], p["conv4_b"], 1, 1))
    res = bn(conv(res, p["convr2_w"], p["convr2_b"], 2, 0),
             p["bn2_g"], p["bn2_b"], p["bn2_m"], p["bn2_v"])
    h = h + res
    feat = h.reshape(h.shape[0], -1)                                   # NCHW flatten, like x.view
    oh = jax.nn.one_hot(t, time_size, dtype=jnp.float32)
    f = jnp.concatenate([feat, oh], axis=1)
    o = jax.nn.relu(f @ p["wl1"].T + p["bl1"])
    o = jax.nn.relu(o @ p["wl2"].T + p["bl2"])
    return o @ p["wl3"].T + p["bl3"]


if __name__ == "__main__":
    key = jax.random.PRNGKey(0)
    N, C, H, W = 2, 4, 16, 16          # observation_shape = (16, 16, 4), NCHW input
    TIME_SIZE, N_ACTIONS = 8, 6

    kx, kp = jax.random.split(key)
    x = jax.random.normal(kx, (N, C, H, W), jnp.float32)
    t = jnp.array([1, 5], dtype=jnp.int32)

    params = init_params(kp, C, H, W, TIME_SIZE, N_ACTIONS)
    prep = prepare_params(params, batch=N, h=H, w=W)

    out = jax.block_until_ready(dqn_forward(prep, x, t))
    assert out.shape == (N, N_ACTIONS), out.shape
    assert bool(jnp.all(jnp.isfinite(out)))

    # Loose check vs. a pure-JAX f32 reference (kernel uses bf16 MXU operands).
    ref = reference_forward(params, x, t, TIME_SIZE)
    err = float(jnp.max(jnp.abs(out - ref)))
    assert err < 0.1, f"max abs err vs reference: {err}"

    print("KERNEL_OK")
</pallas_src>

<mosaic_0001>
module attributes {stable_mosaic.version = 11 : i64} {
  func.func @_fused_dqn_kernel(%arg0: memref<128x36xbf16, #tpu.memory_space<vmem>>, %arg1: memref<128x4xbf16, #tpu.memory_space<vmem>>, %arg2: memref<2x8xbf16, #tpu.memory_space<vmem>>, %arg3: memref<36x16xbf16, #tpu.memory_space<vmem>>, %arg4: memref<1x16xf32, #tpu.memory_space<vmem>>, %arg5: memref<4x32xbf16, #tpu.memory_space<vmem>>, %arg6: memref<1x32xf32, #tpu.memory_space<vmem>>, %arg7: memref<9x128x128xbf16, #tpu.memory_space<vmem>>, %arg8: memref<9x16x32xbf16, #tpu.memory_space<vmem>>, %arg9: memref<1x32xf32, #tpu.memory_space<vmem>>, %arg10: memref<32x128xbf16, #tpu.memory_space<vmem>>, %arg11: memref<32x64xbf16, #tpu.memory_space<vmem>>, %arg12: memref<1x64xf32, #tpu.memory_space<vmem>>, %arg13: memref<9x32x128xbf16, #tpu.memory_space<vmem>>, %arg14: memref<9x32x64xbf16, #tpu.memory_space<vmem>>, %arg15: memref<1x64xf32, #tpu.memory_space<vmem>>, %arg16: memref<9x32x32xbf16, #tpu.memory_space<vmem>>, %arg17: memref<9x64x64xbf16, #tpu.memory_space<vmem>>, %arg18: memref<1x64xf32, #tpu.memory_space<vmem>>, %arg19: memref<16x2x32xbf16, #tpu.memory_space<vmem>>, %arg20: memref<16x64x200xbf16, #tpu.memory_space<vmem>>, %arg21: memref<8x200xbf16, #tpu.memory_space<vmem>>, %arg22: memref<1x200xf32, #tpu.memory_space<vmem>>, %arg23: memref<200x50xbf16, #tpu.memory_space<vmem>>, %arg24: memref<1x50xf32, #tpu.memory_space<vmem>>, %arg25: memref<50x6xbf16, #tpu.memory_space<vmem>>, %arg26: memref<1x6xf32, #tpu.memory_space<vmem>>, %arg27: memref<2x6xf32, #tpu.memory_space<vmem>>) attributes {dimension_semantics = [], scalar_prefetch = 0 : i64, scratch_operands = 0 : i64, tpu.core_type = #tpu.core_type<tc>} {
    %c0 = arith.constant 0 : index
    %c0_0 = arith.constant 0 : index
    %0 = vector.load %arg0[%c0, %c0_0] : memref<128x36xbf16, #tpu.memory_space<vmem>>, vector<128x36xbf16>
    %c0_1 = arith.constant 0 : index
    %c0_2 = arith.constant 0 : index
    %1 = vector.load %arg3[%c0_1, %c0_2] : memref<36x16xbf16, #tpu.memory_space<vmem>>, vector<36x16xbf16>
    %cst = arith.constant dense<0.000000e+00> : vector<128x16xf32>
    %2 = tpu.matmul %0, %1, %cst {dimension_numbers = #tpu.dot_dimension_numbers<[1], [0], [0], [1], [0, 0, 1, 1], [], []>} : vector<128x36xbf16>, vector<36x16xbf16>, vector<128x16xf32> -> vector<128x16xf32>
    %c0_3 = arith.constant 0 : index
    %c0_4 = arith.constant 0 : index
    %3 = vector.load %arg4[%c0_3, %c0_4] : memref<1x16xf32, #tpu.memory_space<vmem>>, vector<1x16xf32>
    %4 = vector.broadcast %3 : vector<1x16xf32> to vector<128x16xf32>
    %5 = arith.addf %2, %4 : vector<128x16xf32>
    %cst_5 = arith.constant 0.000000e+00 : f32
    %6 = vector.broadcast %cst_5 : f32 to vector<128x16xf32>
    %7 = arith.maximumf %5, %6 : vector<128x16xf32>
    %8 = arith.truncf %7 : vector<128x16xf32> to vector<128x16xbf16>
    %c0_6 = arith.constant 0 : index
    %c0_7 = arith.constant 0 : index
    %9 = vector.load %arg1[%c0_6, %c0_7] : memref<128x4xbf16, #tpu.memory_space<vmem>>, vector<128x4xbf16>
    %c0_8 = arith.constant 0 : index
    %c0_9 = arith.constant 0 : index
    %10 = vector.load %arg5[%c0_8, %c0_9] : memref<4x32xbf16, #tpu.memory_space<vmem>>, vector<4x32xbf16>
    %cst_10 = arith.constant dense<0.000000e+00> : vector<128x32xf32>
    %11 = tpu.matmul %9, %10, %cst_10 {dimension_numbers = #tpu.dot_dimension_numbers<[1], [0], [0], [1], [0, 0, 1, 1], [], []>} : vector<128x4xbf16>, vector<4x32xbf16>, vector<128x32xf32> -> vector<128x32xf32>
    %c0_11 = arith.constant 0 : index
    %c0_12 = arith.constant 0 : index
    %12 = vector.load %arg6[%c0_11, %c0_12] : memref<1x32xf32, #tpu.memory_space<vmem>>, vector<1x32xf32>
    %13 = vector.broadcast %12 : vector<1x32xf32> to vector<128x32xf32>
    %14 = arith.addf %11, %13 : vector<128x32xf32>
    %cst_13 = arith.constant 0.000000e+00 : f32
    %15 = vector.broadcast %cst_13 : f32 to vector<128x32xf32>
    %c0_14 = arith.constant 0 : index
    %c0_15 = arith.constant 0 : index
    %c0_16 = arith.constant 0 : index
    %16 = vector.load %arg7[%c0_14, %c0_15, %c0_16] : memref<9x128x128xbf16, #tpu.memory_space<vmem>>, vector<1x128x128xbf16>
    %17 = vector.shape_cast %16 : vector<1x128x128xbf16> to vector<128x128xbf16>
    %cst_17 = arith.constant dense<0.000000e+00> : vector<128x16xf32>
    %18 = tpu.matmul %17, %8, %cst_17 {dimension_numbers = #tpu.dot_dimension_numbers<[1], [0], [0], [1], [0, 0, 1, 1], [], []>} : vector<128x128xbf16>, vector<128x16xbf16>, vector<128x16xf32> -> vector<128x16xf32>
    %19 = arith.truncf %18 : vector<128x16xf32> to vector<128x16xbf16>
    %c0_18 = arith.constant 0 : index
    %c0_19 = arith.constant 0 : index
    %c0_20 = arith.constant 0 : index
    %20 = vector.load %arg8[%c0_18, %c0_19, %c0_20] : memref<9x16x32xbf16, #tpu.memory_space<vmem>>, vector<1x16x32xbf16>
    %21 = vector.shape_cast %20 : vector<1x16x32xbf16> to vector<16x32xbf16>
    %cst_21 = arith.constant dense<0.000000e+00> : vector<128x32xf32>
    %22 = tpu.matmul %19, %21, %cst_21 {dimension_numbers = #tpu.dot_dimension_numbers<[1], [0], [0], [1], [0, 0, 1, 1], [], []>} : vector<128x16xbf16>, vector<16x32xbf16>, vector<128x32xf32> -> vector<128x32xf32>
    %23 = arith.addf %15, %22 : vector<128x32xf32>
    %c1 = arith.constant 1 : index
    %c0_22 = arith.constant 0 : index
    %c0_23 = arith.constant 0 : index
    %24 = vector.load %arg7[%c1, %c0_22, %c0_23] : memref<9x128x128xbf16, #tpu.memory_space<vmem>>, vector<1x128x128xbf16>
    %25 = vector.shape_cast %24 : vector<1x128x128xbf16> to vector<128x128xbf16>
    %cst_24 = arith.constant dense<0.000000e+00> : vector<128x16xf32>
    %26 = tpu.matmul %25, %8, %cst_24 {dimension_numbers = #tpu.dot_dimension_numbers<[1], [0], [0], [1], [0, 0, 1, 1], [], []>} : vector<128x128xbf16>, vector<128x16xbf16>, vector<128x16xf32> -> vector<128x16xf32>
    %27 = arith.truncf %26 : vector<128x16xf32> to vector<128x16xbf16>
    %c1_25 = arith.constant 1 : index
    %c0_26 = arith.constant 0 : index
    %c0_27 = arith.constant 0 : index
    %28 = vector.load %arg8[%c1_25, %c0_26, %c0_27] : memref<9x16x32xbf16, #tpu.memory_space<vmem>>, vector<1x16x32xbf16>
    %29 = vector.shape_cast %28 : vector<1x16x32xbf16> to vector<16x32xbf16>
    %cst_28 = arith.constant dense<0.000000e+00> : vector<128x32xf32>
    %30 = tpu.matmul %27, %29, %cst_28 {dimension_numbers = #tpu.dot_dimension_numbers<[1], [0], [0], [1], [0, 0, 1, 1], [], []>} : vector<128x16xbf16>, vector<16x32xbf16>, vector<128x32xf32> -> vector<128x32xf32>
    %31 = arith.addf %23, %30 : vector<128x32xf32>
    %c2 = arith.constant 2 : index
    %c0_29 = arith.constant 0 : index
    %c0_30 = arith.constant 0 : index
    %32 = vector.load %arg7[%c2, %c0_29, %c0_30] : memref<9x128x128xbf16, #tpu.memory_space<vmem>>, vector<1x128x128xbf16>
    %33 = vector.shape_cast %32 : vector<1x128x128xbf16> to vector<128x128xbf16>
    %cst_31 = arith.constant dense<0.000000e+00> : vector<128x16xf32>
    %34 = tpu.matmul %33, %8, %cst_31 {dimension_numbers = #tpu.dot_dimension_numbers<[1], [0], [0], [1], [0, 0, 1, 1], [], []>} : vector<128x128xbf16>, vector<128x16xbf16>, vector<128x16xf32> -> vector<128x16xf32>
    %35 = arith.truncf %34 : vector<128x16xf32> to vector<128x16xbf16>
    %c2_32 = arith.constant 2 : index
    %c0_33 = arith.constant 0 : index
    %c0_34 = arith.constant 0 : index
    %36 = vector.load %arg8[%c2_32, %c0_33, %c0_34] : memref<9x16x32xbf16, #tpu.memory_space<vmem>>, vector<1x16x32xbf16>
    %37 = vector.shape_cast %36 : vector<1x16x32xbf16> to vector<16x32xbf16>
    %cst_35 = arith.constant dense<0.000000e+00> : vector<128x32xf32>
    %38 = tpu.matmul %35, %37, %cst_35 {dimension_numbers = #tpu.dot_dimension_numbers<[1], [0], [0], [1], [0, 0, 1, 1], [], []>} : vector<128x16xbf16>, vector<16x32xbf16>, vector<128x32xf32> -> vector<128x32xf32>
    %39 = arith.addf %31, %38 : vector<128x32xf32>
    %c3 = arith.constant 3 : index
    %c0_36 = arith.constant 0 : index
    %c0_37 = arith.constant 0 : index
    %40 = vector.load %arg7[%c3, %c0_36, %c0_37] : memref<9x128x128xbf16, #tpu.memory_space<vmem>>, vector<1x128x128xbf16>
    %41 = vector.shape_cast %40 : vector<1x128x128xbf16> to vector<128x128xbf16>
    %cst_38 = arith.constant dense<0.000000e+00> : vector<128x16xf32>
    %42 = tpu.matmul %41, %8, %cst_38 {dimension_numbers = #tpu.dot_dimension_numbers<[1], [0], [0], [1], [0, 0, 1, 1], [], []>} : vector<128x128xbf16>, vector<128x16xbf16>, vector<128x16xf32> -> vector<128x16xf32>
    %43 = arith.truncf %42 : vector<128x16xf32> to vector<128x16xbf16>
    %c3_39 = arith.constant 3 : index
    %c0_40 = arith.constant 0 : index
    %c0_41 = arith.constant 0 : index
    %44 = vector.load %arg8[%c3_39, %c0_40, %c0_41] : memref<9x16x32xbf16, #tpu.memory_space<vmem>>, vector<1x16x32xbf16>
    %45 = vector.shape_cast %44 : vector<1x16x32xbf16> to vector<16x32xbf16>
    %cst_42 = arith.constant dense<0.000000e+00> : vector<128x32xf32>
    %46 = tpu.matmul %43, %45, %cst_42 {dimension_numbers = #tpu.dot_dimension_numbers<[1], [0], [0], [1], [0, 0, 1, 1], [], []>} : vector<128x16xbf16>, vector<16x32xbf16>, vector<128x32xf32> -> vector<128x32xf32>
    %47 = arith.addf %39, %46 : vector<128x32xf32>
    %c4 = arith.constant 4 : index
    %c0_43 = arith.constant 0 : index
    %c0_44 = arith.constant 0 : index
    %48 = vector.load %arg7[%c4, %c0_43, %c0_44] : memref<9x128x128xbf16, #tpu.memory_space<vmem>>, vector<1x128x128xbf16>
    %49 = vector.shape_cast %48 : vector<1x128x128xbf16> to vector<128x128xbf16>
    %cst_45 = arith.constant dense<0.000000e+00> : vector<128x16xf32>
    %50 = tpu.matmul %49, %8, %cst_45 {dimension_numbers = #tpu.dot_dimension_numbers<[1], [0], [0], [1], [0, 0, 1, 1], [], []>} : vector<128x128xbf16>, vector<128x16xbf16>, vector<128x16xf32> -> vector<128x16xf32>
    %51 = arith.truncf %50 : vector<128x16xf32> to vector<128x16xbf16>
    %c4_46 = arith.constant 4 : index
    %c0_47 = arith.constant 0 : index
    %c0_48 = arith.constant 0 : index
    %52 = vector.load %arg8[%c4_46, %c0_47, %c0_48] : memref<9x16x32xbf16, #tpu.memory_space<vmem>>, vector<1x16x32xbf16>
    %53 = vector.shape_cast %52 : vector<1x16x32xbf16> to vector<16x32xbf16>
    %cst_49 = arith.constant dense<0.000000e+00> : vector<128x32xf32>
    %54 = tpu.matmul %51, %53, %cst_49 {dimension_numbers = #tpu.dot_dimension_numbers<[1], [0], [0], [1], [0, 0, 1, 1], [], []>} : vector<128x16xbf16>, vector<16x32xbf16>, vector<128x32xf32> -> vector<128x32xf32>
    %55 = arith.addf %47, %54 : vector<128x32xf32>
    %c5 = arith.constant 5 : index
    %c0_50 = arith.constant 0 : index
    %c0_51 = arith.constant 0 : index
    %56 = vector.load %arg7[%c5, %c0_50, %c0_51] : memref<9x128x128xbf16, #tpu.memory_space<vmem>>, vector<1x128x128xbf16>
    %57 = vector.shape_cast %56 : vector<1x128x128xbf16> to vector<128x128xbf16>
    %cst_52 = arith.constant dense<0.000000e+00> : vector<128x16xf32>
    %58 = tpu.matmul %57, %8, %cst_52 {dimension_numbers = #tpu.dot_dimension_numbers<[1], [0], [0], [1], [0, 0, 1, 1], [], []>} : vector<128x128xbf16>, vector<128x16xbf16>, vector<128x16xf32> -> vector<128x16xf32>
    %59 = arith.truncf %58 : vector<128x16xf32> to vector<128x16xbf16>
    %c5_53 = arith.constant 5 : index
    %c0_54 = arith.constant 0 : index
    %c0_55 = arith.constant 0 : index
    %60 = vector.load %arg8[%c5_53, %c0_54, %c0_55] : memref<9x16x32xbf16, #tpu.memory_space<vmem>>, vector<1x16x32xbf16>
    %61 = vector.shape_cast %60 : vector<1x16x32xbf16> to vector<16x32xbf16>
    %cst_56 = arith.constant dense<0.000000e+00> : vector<128x32xf32>
    %62 = tpu.matmul %59, %61, %cst_56 {dimension_numbers = #tpu.dot_dimension_numbers<[1], [0], [0], [1], [0, 0, 1, 1], [], []>} : vector<128x16xbf16>, vector<16x32xbf16>, vector<128x32xf32> -> vector<128x32xf32>
    %63 = arith.addf %55, %62 : vector<128x32xf32>
    %c6 = arith.constant 6 : index
    %c0_57 = arith.constant 0 : index
    %c0_58 = arith.constant 0 : index
    %64 = vector.load %arg7[%c6, %c0_57, %c0_58] : memref<9x128x128xbf16, #tpu.memory_space<vmem>>, vector<1x128x128xbf16>
    %65 = vector.shape_cast %64 : vector<1x128x128xbf16> to vector<128x128xbf16>
    %cst_59 = arith.constant dense<0.000000e+00> : vector<128x16xf32>
    %66 = tpu.matmul %65, %8, %cst_59 {dimension_numbers = #tpu.dot_dimension_numbers<[1], [0], [0], [1], [0, 0, 1, 1], [], []>} : vector<128x128xbf16>, vector<128x16xbf16>, vector<128x16xf32> -> vector<128x16xf32>
    %67 = arith.truncf %66 : vector<128x16xf32> to vector<128x16xbf16>
    %c6_60 = arith.constant 6 : index
    %c0_61 = arith.constant 0 : index
    %c0_62 = arith.constant 0 : index
    %68 = vector.load %arg8[%c6_60, %c0_61, %c0_62] : memref<9x16x32xbf16, #tpu.memory_space<vmem>>, vector<1x16x32xbf16>
    %69 = vector.shape_cast %68 : vector<1x16x32xbf16> to vector<16x32xbf16>
    %cst_63 = arith.constant dense<0.000000e+00> : vector<128x32xf32>
    %70 = tpu.matmul %67, %69, %cst_63 {dimension_numbers = #tpu.dot_dimension_numbers<[1], [0], [0], [1], [0, 0, 1, 1], [], []>} : vector<128x16xbf16>, vector<16x32xbf16>, vector<128x32xf32> -> vector<128x32xf32>
    %71 = arith.addf %63, %70 : vector<128x32xf32>
    %c7 = arith.constant 7 : index
    %c0_64 = arith.constant 0 : index
    %c0_65 = arith.constant 0 : index
    %72 = vector.load %arg7[%c7, %c0_64, %c0_65] : memref<9x128x128xbf16, #tpu.memory_space<vmem>>, vector<1x128x128xbf16>
    %73 = vector.shape_cast %72 : vector<1x128x128xbf16> to vector<128x128xbf16>
    %cst_66 = arith.constant dense<0.000000e+00> : vector<128x16xf32>
    %74 = tpu.matmul %73, %8, %cst_66 {dimension_numbers = #tpu.dot_dimension_numbers<[1], [0], [0], [1], [0, 0, 1, 1], [], []>} : vector<128x128xbf16>, vector<128x16xbf16>, vector<128x16xf32> -> vector<128x16xf32>
    %75 = arith.truncf %74 : vector<128x16xf32> to vector<128x16xbf16>
    %c7_67 = arith.constant 7 : index
    %c0_68 = arith.constant 0 : index
    %c0_69 = arith.constant 0 : index
    %76 = vector.load %arg8[%c7_67, %c0_68, %c0_69] : memref<9x16x32xbf16, #tpu.memory_space<vmem>>, vector<1x16x32xbf16>
    %77 = vector.shape_cast %76 : vector<1x16x32xbf16> to vector<16x32xbf16>
    %cst_70 = arith.constant dense<0.000000e+00> : vector<128x32xf32>
    %78 = tpu.matmul %75, %77, %cst_70 {dimension_numbers = #tpu.dot_dimension_numbers<[1], [0], [0], [1], [0, 0, 1, 1], [], []>} : vector<128x16xbf16>, vector<16x32xbf16>, vector<128x32xf32> -> vector<128x32xf32>
    %79 = arith.addf %71, %78 : vector<128x32xf32>
    %c8 = arith.constant 8 : index
    %c0_71 = arith.constant 0 : index
    %c0_72 = arith.constant 0 : index
    %80 = vector.load %arg7[%c8, %c0_71, %c0_72] : memref<9x128x128xbf16, #tpu.memory_space<vmem>>, vector<1x128x128xbf16>
    %81 = vector.shape_cast %80 : vector<1x128x128xbf16> to vector<128x128xbf16>
    %cst_73 = arith.constant dense<0.000000e+00> : vector<128x16xf32>
    %82 = tpu.matmul %81, %8, %cst_73 {dimension_numbers = #tpu.dot_dimension_numbers<[1], [0], [0], [1], [0, 0, 1, 1], [], []>} : vector<128x128xbf16>, vector<128x16xbf16>, vector<128x16xf32> -> vector<128x16xf32>
    %83 = arith.truncf %82 : vector<128x16xf32> to vector<128x16xbf16>
    %c8_74 = arith.constant 8 : index
    %c0_75 = arith.constant 0 : index
    %c0_76 = arith.constant 0 : index
    %84 = vector.load %arg8[%c8_74, %c0_75, %c0_76] : memref<9x16x32xbf16, #tpu.memory_space<vmem>>, vector<1x16x32xbf16>
    %85 = vector.shape_cast %84 : vector<1x16x32xbf16> to vector<16x32xbf16>
    %cst_77 = arith.constant dense<0.000000e+00> : vector<128x32xf32>
    %86 = tpu.matmul %83, %85, %cst_77 {dimension_numbers = #tpu.dot_dimension_numbers<[1], [0], [0], [1], [0, 0, 1, 1], [], []>} : vector<128x16xbf16>, vector<16x32xbf16>, vector<128x32xf32> -> vector<128x32xf32>
    %87 = arith.addf %79, %86 : vector<128x32xf32>
    %c0_78 = arith.constant 0 : index
    %c0_79 = arith.constant 0 : index
    %88 = vector.load %arg9[%c0_78, %c0_79] : memref<1x32xf32, #tpu.memory_space<vmem>>, vector<1x32xf32>
    %89 = vector.broadcast %88 : vector<1x32xf32> to vector<128x32xf32>
    %90 = arith.addf %87, %89 : vector<128x32xf32>
    %cst_80 = arith.constant 0.000000e+00 : f32
    %91 = vector.broadcast %cst_80 : f32 to vector<128x32xf32>
    %92 = arith.maximumf %90, %91 : vector<128x32xf32>
    %93 = arith.addf %92, %14 : vector<128x32xf32>
    %94 = arith.truncf %93 : vector<128x32xf32> to vector<128x32xbf16>
    %c0_81 = arith.constant 0 : index
    %c0_82 = arith.constant 0 : index
    %95 = vector.load %arg10[%c0_81, %c0_82] : memref<32x128xbf16, #tpu.memory_space<vmem>>, vector<32x128xbf16>
    %cst_83 = arith.constant dense<0.000000e+00> : vector<32x32xf32>
    %96 = tpu.matmul %95, %94, %cst_83 {dimension_numbers = #tpu.dot_dimension_numbers<[1], [0], [0], [1], [0, 0, 1, 1], [], []>} : vector<32x128xbf16>, vector<128x32xbf16>, vector<32x32xf32> -> vector<32x32xf32>
    %97 = arith.truncf %96 : vector<32x32xf32> to vector<32x32xbf16>
    %c0_84 = arith.constant 0 : index
    %c0_85 = arith.constant 0 : index
    %98 = vector.load %arg11[%c0_84, %c0_85] : memref<32x64xbf16, #tpu.memory_space<vmem>>, vector<32x64xbf16>
    %cst_86 = arith.constant dense<0.000000e+00> : vector<32x64xf32>
    %99 = tpu.matmul %97, %98, %cst_86 {dimension_numbers = #tpu.dot_dimension_numbers<[1], [0], [0], [1], [0, 0, 1, 1], [], []>} : vector<32x32xbf16>, vector<32x64xbf16>, vector<32x64xf32> -> vector<32x64xf32>
    %c0_87 = arith.constant 0 : index
    %c0_88 = arith.constant 0 : index
    %100 = vector.load %arg12[%c0_87, %c0_88] : memref<1x64xf32, #tpu.memory_space<vmem>>, vector<1x64xf32>
    %101 = vector.broadcast %100 : vector<1x64xf32> to vector<32x64xf32>
    %102 = arith.addf %99, %101 : vector<32x64xf32>
    %cst_89 = arith.constant 0.000000e+00 : f32
    %103 = vector.broadcast %cst_89 : f32 to vector<32x64xf32>
    %c0_90 = arith.constant 0 : index
    %c0_91 = arith.constant 0 : index
    %c0_92 = arith.constant 0 : index
    %104 = vector.load %arg13[%c0_90, %c0_91, %c0_92] : memref<9x32x128xbf16, #tpu.memory_space<vmem>>, vector<1x32x128xbf16>
    %105 = vector.shape_cast %104 : vector<1x32x128xbf16> to vector<32x128xbf16>
    %cst_93 = arith.constant dense<0.000000e+00> : vector<32x32xf32>
    %106 = tpu.matmul %105, %94, %cst_93 {dimension_numbers = #tpu.dot_dimension_numbers<[1], [0], [0], [1], [0, 0, 1, 1], [], []>} : vector<32x128xbf16>, vector<128x32xbf16>, vector<32x32xf32> -> vector<32x32xf32>
    %107 = arith.truncf %106 : vector<32x32xf32> to vector<32x32xbf16>
    %c0_94 = arith.constant 0 : index
    %c0_95 = arith.constant 0 : index
    %c0_96 = arith.constant 0 : index
    %108 = vector.load %arg14[%c0_94, %c0_95, %c0_96] : memref<9x32x64xbf16, #tpu.memory_space<vmem>>, vector<1x32x64xbf16>
    %109 = vector.shape_cast %108 : vector<1x32x64xbf16> to vector<32x64xbf16>
    %cst_97 = arith.constant dense<0.000000e+00> : vector<32x64xf32>
    %110 = tpu.matmul %107, %109, %cst_97 {dimension_numbers = #tpu.dot_dimension_numbers<[1], [0], [0], [1], [0, 0, 1, 1], [], []>} : vector<32x32xbf16>, vector<32x64xbf16>, vector<32x64xf32> -> vector<32x64xf32>
    %111 = arith.addf %103, %110 : vector<32x64xf32>
    %c1_98 = arith.constant 1 : index
    %c0_99 = arith.constant 0 : index
    %c0_100 = arith.constant 0 : index
    %112 = vector.load %arg13[%c1_98, %c0_99, %c0_100] : memref<9x32x128xbf16, #tpu.memory_space<vmem>>, vector<1x32x128xbf16>
    %113 = vector.shape_cast %112 : vector<1x32x128xbf16> to vector<32x128xbf16>
    %cst_101 = arith.constant dense<0.000000e+00> : vector<32x32xf32>
    %114 = tpu.matmul %113, %94, %cst_101 {dimension_numbers = #tpu.dot_dimension_numbers<[1], [0], [0], [1], [0, 0, 1, 1], [], []>} : vector<32x128xbf16>, vector<128x32xbf16>, vector<32x32xf32> -> vector<32x32xf32>
    %115 = arith.truncf %114 : vector<32x32xf32> to vector<32x32xbf16>
    %c1_102 = arith.constant 1 : index
    %c0_103 = arith.constant 0 : index
    %c0_104 = arith.constant 0 : index
    %116 = vector.load %arg14[%c1_102, %c0_103, %c0_104] : memref<9x32x64xbf16, #tpu.memory_space<vmem>>, vector<1x32x64xbf16>
    %117 = vector.shape_cast %116 : vector<1x32x64xbf16> to vector<32x64xbf16>
    %cst_105 = arith.constant dense<0.000000e+00> : vector<32x64xf32>
    %118 = tpu.matmul %115, %117, %cst_105 {dimension_numbers = #tpu.dot_dimension_numbers<[1], [0], [0], [1], [0, 0, 1, 1], [], []>} : vector<32x32xbf16>, vector<32x64xbf16>, vector<32x64xf32> -> vector<32x64xf32>
    %119 = arith.addf %111, %118 : vector<32x64xf32>
    %c2_106 = arith.constant 2 : index
    %c0_107 = arith.constant 0 : index
    %c0_108 = arith.constant 0 : index
    %120 = vector.load %arg13[%c2_106, %c0_107, %c0_108] : memref<9x32x128xbf16, #tpu.memory_space<vmem>>, vector<1x32x128xbf16>
    %121 = vector.shape_cast %120 : vector<1x32x128xbf16> to vector<32x128xbf16>
    %cst_109 = arith.constant dense<0.000000e+00> : vector<32x32xf32>
    %122 = tpu.matmul %121, %94, %cst_109 {dimension_numbers = #tpu.dot_dimension_numbers<[1], [0], [0], [1], [0, 0, 1, 1], [], []>} : vector<32x128xbf16>, vector<128x32xbf16>, vector<32x32xf32> -> vector<32x32xf32>
    %123 = arith.truncf %122 : vector<32x32xf32> to vector<32x32xbf16>
    %c2_110 = arith.constant 2 : index
    %c0_111 = arith.constant 0 : index
    %c0_112 = arith.constant 0 : index
    %124 = vector.load %arg14[%c2_110, %c0_111, %c0_112] : memref<9x32x64xbf16, #tpu.memory_space<vmem>>, vector<1x32x64xbf16>
    %125 = vector.shape_cast %124 : vector<1x32x64xbf16> to vector<32x64xbf16>
    %cst_113 = arith.constant dense<0.000000e+00> : vector<32x64xf32>
    %126 = tpu.matmul %123, %125, %cst_113 {dimension_numbers = #tpu.dot_dimension_numbers<[1], [0], [0], [1], [0, 0, 1, 1], [], []>} : vector<32x32xbf16>, vector<32x64xbf16>, vector<32x64xf32> -> vector<32x64xf32>
    %127 = arith.addf %119, %126 : vector<32x64xf32>
    %c3_114 = arith.constant 3 : index
    %c0_115 = arith.constant 0 : index
    %c0_116 = arith.constant 0 : index
    %128 = vector.load %arg13[%c3_114, %c0_115, %c0_116] : memref<9x32x128xbf16, #tpu.memory_space<vmem>>, vector<1x32x128xbf16>
    %129 = vector.shape_cast %128 : vector<1x32x128xbf16> to vector<32x128xbf16>
    %cst_117 = arith.constant dense<0.000000e+00> : vector<32x32xf32>
    %130 = tpu.matmul %129, %94, %cst_117 {dimension_numbers = #tpu.dot_dimension_numbers<[1], [0], [0], [1], [0, 0, 1, 1], [], []>} : vector<32x128xbf16>, vector<128x32xbf16>, vector<32x32xf32> -> vector<32x32xf32>
    %131 = arith.truncf %130 : vector<32x32xf32> to vector<32x32xbf16>
    %c3_118 = arith.constant 3 : index
    %c0_119 = arith.constant 0 : index
    %c0_120 = arith.constant 0 : index
    %132 = vector.load %arg14[%c3_118, %c0_119, %c0_120] : memref<9x32x64xbf16, #tpu.memory_space<vmem>>, vector<1x32x64xbf16>
    %133 = vector.shape_cast %132 : vector<1x32x64xbf16> to vector<32x64xbf16>
    %cst_121 = arith.constant dense<0.000000e+00> : vector<32x64xf32>
    %134 = tpu.matmul %131, %133, %cst_121 {dimension_numbers = #tpu.dot_dimension_numbers<[1], [0], [0], [1], [0, 0, 1, 1], [], []>} : vector<32x32xbf16>, vector<32x64xbf16>, vector<32x64xf32> -> vector<32x64xf32>
    %135 = arith.addf %127, %134 : vector<32x64xf32>
    %c4_122 = arith.constant 4 : index
    %c0_123 = arith.constant 0 : index
    %c0_124 = arith.constant 0 : index
    %136 = vector.load %arg13[%c4_122, %c0_123, %c0_124] : memref<9x32x128xbf16, #tpu.memory_space<vmem>>, vector<1x32x128xbf16>
    %137 = vector.shape_cast %136 : vector<1x32x128xbf16> to vector<32x128xbf16>
    %cst_125 = arith.constant dense<0.000000e+00> : vector<32x32xf32>
    %138 = tpu.matmul %137, %94, %cst_125 {dimension_numbers = #tpu.dot_dimension_numbers<[1], [0], [0], [1], [0, 0, 1, 1], [], []>} : vector<32x128xbf16>, vector<128x32xbf16>, vector<32x32xf32> -> vector<32x32xf32>
    %139 = arith.truncf %138 : vector<32x32xf32> to vector<32x32xbf16>
    %c4_126 = arith.constant 4 : index
    %c0_127 = arith.constant 0 : index
    %c0_128 = arith.constant 0 : index
    %140 = vector.load %arg14[%c4_126, %c0_127, %c0_128] : memref<9x32x64xbf16, #tpu.memory_space<vmem>>, vector<1x32x64xbf16>
    %141 = vector.shape_cast %140 : vector<1x32x64xbf16> to vector<32x64xbf16>
    %cst_129 = arith.constant dense<0.000000e+00> : vector<32x64xf32>
    %142 = tpu.matmul %139, %141, %cst_129 {dimension_numbers = #tpu.dot_dimension_numbers<[1], [0], [0], [1], [0, 0, 1, 1], [], []>} : vector<32x32xbf16>, vector<32x64xbf16>, vector<32x64xf32> -> vector<32x64xf32>
    %143 = arith.addf %135, %142 : vector<32x64xf32>
    %c5_130 = arith.constant 5 : index
    %c0_131 = arith.constant 0 : index
    %c0_132 = arith.constant 0 : index
    %144 = vector.load %arg13[%c5_130, %c0_131, %c0_132] : memref<9x32x128xbf16, #tpu.memory_space<vmem>>, vector<1x32x128xbf16>
    %145 = vector.shape_cast %144 : vector<1x32x128xbf16> to vector<32x128xbf16>
    %cst_133 = arith.constant dense<0.000000e+00> : vector<32x32xf32>
    %146 = tpu.matmul %145, %94, %cst_133 {dimension_numbers = #tpu.dot_dimension_numbers<[1], [0], [0], [1], [0, 0, 1, 1], [], []>} : vector<32x128xbf16>, vector<128x32xbf16>, vector<32x32xf32> -> vector<32x32xf32>
    %147 = arith.truncf %146 : vector<32x32xf32> to vector<32x32xbf16>
    %c5_134 = arith.constant 5 : index
    %c0_135 = arith.constant 0 : index
    %c0_136 = arith.constant 0 : index
    %148 = vector.load %arg14[%c5_134, %c0_135, %c0_136] : memref<9x32x64xbf16, #tpu.memory_space<vmem>>, vector<1x32x64xbf16>
    %149 = vector.shape_cast %148 : vector<1x32x64xbf16> to vector<32x64xbf16>
    %cst_137 = arith.constant dense<0.000000e+00> : vector<32x64xf32>
    %150 = tpu.matmul %147, %149, %cst_137 {dimension_numbers = #tpu.dot_dimension_numbers<[1], [0], [0], [1], [0, 0, 1, 1], [], []>} : vector<32x32xbf16>, vector<32x64xbf16>, vector<32x64xf32> -> vector<32x64xf32>
    %151 = arith.addf %143, %150 : vector<32x64xf32>
    %c6_138 = arith.constant 6 : index
    %c0_139 = arith.constant 0 : index
    %c0_140 = arith.constant 0 : index
    %152 = vector.load %arg13[%c6_138, %c0_139, %c0_140] : memref<9x32x128xbf16, #tpu.memory_space<vmem>>, vector<1x32x128xbf16>
    %153 = vector.shape_cast %152 : vector<1x32x128xbf16> to vector<32x128xbf16>
    %cst_141 = arith.constant dense<0.000000e+00> : vector<32x32xf32>
    %154 = tpu.matmul %153, %94, %cst_141 {dimension_numbers = #tpu.dot_dimension_numbers<[1], [0], [0], [1], [0, 0, 1, 1], [], []>} : vector<32x128xbf16>, vector<128x32xbf16>, vector<32x32xf32> -> vector<32x32xf32>
    %155 = arith.truncf %154 : vector<32x32xf32> to vector<32x32xbf16>
    %c6_142 = arith.constant 6 : index
    %c0_143 = arith.constant 0 : index
    %c0_144 = arith.constant 0 : index
    %156 = vector.load %arg14[%c6_142, %c0_143, %c0_144] : memref<9x32x64xbf16, #tpu.memory_space<vmem>>, vector<1x32x64xbf16>
    %157 = vector.shape_cast %156 : vector<1x32x64xbf16> to vector<32x64xbf16>
    %cst_145 = arith.constant dense<0.000000e+00> : vector<32x64xf32>
    %158 = tpu.matmul %155, %157, %cst_145 {dimension_numbers = #tpu.dot_dimension_numbers<[1], [0], [0], [1], [0, 0, 1, 1], [], []>} : vector<32x32xbf16>, vector<32x64xbf16>, vector<32x64xf32> -> vector<32x64xf32>
    %159 = arith.addf %151, %158 : vector<32x64xf32>
    %c7_146 = arith.constant 7 : index
    %c0_147 = arith.constant 0 : index
    %c0_148 = arith.constant 0 : index
    %160 = vector.load %arg13[%c7_146, %c0_147, %c0_148] : memref<9x32x128xbf16, #tpu.memory_space<vmem>>, vector<1x32x128xbf16>
    %161 = vector.shape_cast %160 : vector<1x32x128xbf16> to vector<32x128xbf16>
    %cst_149 = arith.constant dense<0.000000e+00> : vector<32x32xf32>
    %162 = tpu.matmul %161, %94, %cst_149 {dimension_numbers = #tpu.dot_dimension_numbers<[1], [0], [0], [1], [0, 0, 1, 1], [], []>} : vector<32x128xbf16>, vector<128x32xbf16>, vector<32x32xf32> -> vector<32x32xf32>
    %163 = arith.truncf %162 : vector<32x32xf32> to vector<32x32xbf16>
    %c7_150 = arith.constant 7 : index
    %c0_151 = arith.constant 0 : index
    %c0_152 = arith.constant 0 : index
    %164 = vector.load %arg14[%c7_150, %c0_151, %c0_152] : memref<9x32x64xbf16, #tpu.memory_space<vmem>>, vector<1x32x64xbf16>
    %165 = vector.shape_cast %164 : vector<1x32x64xbf16> to vector<32x64xbf16>
    %cst_153 = arith.constant dense<0.000000e+00> : vector<32x64xf32>
    %166 = tpu.matmul %163, %165, %cst_153 {dimension_numbers = #tpu.dot_dimension_numbers<[1], [0], [0], [1], [0, 0, 1, 1], [], []>} : vector<32x32xbf16>, vector<32x64xbf16>, vector<32x64xf32> -> vector<32x64xf32>
    %167 = arith.addf %159, %166 : vector<32x64xf32>
    %c8_154 = arith.constant 8 : index
    %c0_155 = arith.constant 0 : index
    %c0_156 = arith.constant 0 : index
    %168 = vector.load %arg13[%c8_154, %c0_155, %c0_156] : memref<9x32x128xbf16, #tpu.memory_space<vmem>>, vector<1x32x128xbf16>
    %169 = vector.shape_cast %168 : vector<1x32x128xbf16> to vector<32x128xbf16>
    %cst_157 = arith.constant dense<0.000000e+00> : vector<32x32xf32>
    %170 = tpu.matmul %169, %94, %cst_157 {dimension_numbers = #tpu.dot_dimension_numbers<[1], [0], [0], [1], [0, 0, 1, 1], [], []>} : vector<32x128xbf16>, vector<128x32xbf16>, vector<32x32xf32> -> vector<32x32xf32>
    %171 = arith.truncf %170 : vector<32x32xf32> to vector<32x32xbf16>
    %c8_158 = arith.constant 8 : index
    %c0_159 = arith.constant 0 : index
    %c0_160 = arith.constant 0 : index
    %172 = vector.load %arg14[%c8_158, %c0_159, %c0_160] : memref<9x32x64xbf16, #tpu.memory_space<vmem>>, vector<1x32x64xbf16>
    %173 = vector.shape_cast %172 : vector<1x32x64xbf16> to vector<32x64xbf16>
    %cst_161 = arith.constant dense<0.000000e+00> : vector<32x64xf32>
    %174 = tpu.matmul %171, %173, %cst_161 {dimension_numbers = #tpu.dot_dimension_numbers<[1], [0], [0], [1], [0, 0, 1, 1], [], []>} : vector<32x32xbf16>, vector<32x64xbf16>, vector<32x64xf32> -> vector<32x64xf32>
    %175 = arith.addf %167, %174 : vector<32x64xf32>
    %c0_162 = arith.constant 0 : index
    %c0_163 = arith.constant 0 : index
    %176 = vector.load %arg15[%c0_162, %c0_163] : memref<1x64xf32, #tpu.memory_space<vmem>>, vector<1x64xf32>
    %177 = vector.broadcast %176 : vector<1x64xf32> to vector<32x64xf32>
    %178 = arith.addf %175, %177 : vector<32x64xf32>
    %cst_164 = arith.constant 0.000000e+00 : f32
    %179 = vector.broadcast %cst_164 : f32 to vector<32x64xf32>
    %180 = arith.maximumf %178, %179 : vector<32x64xf32>
    %181 = arith.truncf %180 : vector<32x64xf32> to vector<32x64xbf16>
    %cst_165 = arith.constant 0.000000e+00 : f32
    %182 = vector.broadcast %cst_165 : f32 to vector<32x64xf32>
    %c0_166 = arith.constant 0 : index
    %c0_167 = arith.constant 0 : index
    %c0_168 = arith.constant 0 : index
    %183 = vector.load %arg16[%c0_166, %c0_167, %c0_168] : memref<9x32x32xbf16, #tpu.memory_space<vmem>>, vector<1x32x32xbf16>
    %184 = vector.shape_cast %183 : vector<1x32x32xbf16> to vector<32x32xbf16>
    %cst_169 = arith.constant dense<0.000000e+00> : vector<32x64xf32>
    %185 = tpu.matmul %184, %181, %cst_169 {dimension_numbers = #tpu.dot_dimension_numbers<[1], [0], [0], [1], [0, 0, 1, 1], [], []>} : vector<32x32xbf16>, vector<32x64xbf16>, vector<32x64xf32> -> vector<32x64xf32>
    %186 = arith.truncf %185 : vector<32x64xf32> to vector<32x64xbf16>
    %c0_170 = arith.constant 0 : index
    %c0_171 = arith.constant 0 : index
    %c0_172 = arith.constant 0 : index
    %187 = vector.load %arg17[%c0_170, %c0_171, %c0_172] : memref<9x64x64xbf16, #tpu.memory_space<vmem>>, vector<1x64x64xbf16>
    %188 = vector.shape_cast %187 : vector<1x64x64xbf16> to vector<64x64xbf16>
    %cst_173 = arith.constant dense<0.000000e+00> : vector<32x64xf32>
    %189 = tpu.matmul %186, %188, %cst_173 {dimension_numbers = #tpu.dot_dimension_numbers<[1], [0], [0], [1], [0, 0, 1, 1], [], []>} : vector<32x64xbf16>, vector<64x64xbf16>, vector<32x64xf32> -> vector<32x64xf32>
    %190 = arith.addf %182, %189 : vector<32x64xf32>
    %c1_174 = arith.constant 1 : index
    %c0_175 = arith.constant 0 : index
    %c0_176 = arith.constant 0 : index
    %191 = vector.load %arg16[%c1_174, %c0_175, %c0_176] : memref<9x32x32xbf16, #tpu.memory_space<vmem>>, vector<1x32x32xbf16>
    %192 = vector.shape_cast %191 : vector<1x32x32xbf16> to vector<32x32xbf16>
    %cst_177 = arith.constant dense<0.000000e+00> : vector<32x64xf32>
    %193 = tpu.matmul %192, %181, %cst_177 {dimension_numbers = #tpu.dot_dimension_numbers<[1], [0], [0], [1], [0, 0, 1, 1], [], []>} : vector<32x32xbf16>, vector<32x64xbf16>, vector<32x64xf32> -> vector<32x64xf32>
    %194 = arith.truncf %193 : vector<32x64xf32> to vector<32x64xbf16>
    %c1_178 = arith.constant 1 : index
    %c0_179 = arith.constant 0 : index
    %c0_180 = arith.constant 0 : index
    %195 = vector.load %arg17[%c1_178, %c0_179, %c0_180] : memref<9x64x64xbf16, #tpu.memory_space<vmem>>, vector<1x64x64xbf16>
    %196 = vector.shape_cast %195 : vector<1x64x64xbf16> to vector<64x64xbf16>
    %cst_181 = arith.constant dense<0.000000e+00> : vector<32x64xf32>
    %197 = tpu.matmul %194, %196, %cst_181 {dimension_numbers = #tpu.dot_dimension_numbers<[1], [0], [0], [1], [0, 0, 1, 1], [], []>} : vector<32x64xbf16>, vector<64x64xbf16>, vector<32x64xf32> -> vector<32x64xf32>
    %198 = arith.addf %190, %197 : vector<32x64xf32>
    %c2_182 = arith.constant 2 : index
    %c0_183 = arith.constant 0 : index
    %c0_184 = arith.constant 0 : index
    %199 = vector.load %arg16[%c2_182, %c0_183, %c0_184] : memref<9x32x32xbf16, #tpu.memory_space<vmem>>, vector<1x32x32xbf16>
    %200 = vector.shape_cast %199 : vector<1x32x32xbf16> to vector<32x32xbf16>
    %cst_185 = arith.constant dense<0.000000e+00> : vector<32x64xf32>
    %201 = tpu.matmul %200, %181, %cst_185 {dimension_numbers = #tpu.dot_dimension_numbers<[1], [0], [0], [1], [0, 0, 1, 1], [], []>} : vector<32x32xbf16>, vector<32x64xbf16>, vector<32x64xf32> -> vector<32x64xf32>
    %202 = arith.truncf %201 : vector<32x64xf32> to vector<32x64xbf16>
    %c2_186 = arith.constant 2 : index
    %c0_187 = arith.constant 0 : index
    %c0_188 = arith.constant 0 : index
    %203 = vector.load %arg17[%c2_186, %c0_187, %c0_188] : memref<9x64x64xbf16, #tpu.memory_space<vmem>>, vector<1x64x64xbf16>
    %204 = vector.shape_cast %203 : vector<1x64x64xbf16> to vector<64x64xbf16>
    %cst_189 = arith.constant dense<0.000000e+00> : vector<32x64xf32>
    %205 = tpu.matmul %202, %204, %cst_189 {dimension_numbers = #tpu.dot_dimension_numbers<[1], [0], [0], [1], [0, 0, 1, 1], [], []>} : vector<32x64xbf16>, vector<64x64xbf16>, vector<32x64xf32> -> vector<32x64xf32>
    %206 = arith.addf %198, %205 : vector<32x64xf32>
    %c3_190 = arith.constant 3 : index
    %c0_191 = arith.constant 0 : index
    %c0_192 = arith.constant 0 : index
    %207 = vector.load %arg16[%c3_190, %c0_191, %c0_192] : memref<9x32x32xbf16, #tpu.memory_space<vmem>>, vector<1x32x32xbf16>
    %208 = vector.shape_cast %207 : vector<1x32x32xbf16> to vector<32x32xbf16>
    %cst_193 = arith.constant dense<0.000000e+00> : vector<32x64xf32>
    %209 = tpu.matmul %208, %181, %cst_193 {dimension_numbers = #tpu.dot_dimension_numbers<[1], [0], [0], [1], [0, 0, 1, 1], [], []>} : vector<32x32xbf16>, vector<32x64xbf16>, vector<32x64xf32> -> vector<32x64xf32>
    %210 = arith.truncf %209 : vector<32x64xf32> to vector<32x64xbf16>
    %c3_194 = arith.constant 3 : index
    %c0_195 = arith.constant 0 : index
    %c0_196 = arith.constant 0 : index
    %211 = vector.load %arg17[%c3_194, %c0_195, %c0_196] : memref<9x64x64xbf16, #tpu.memory_space<vmem>>, vector<1x64x64xbf16>
    %212 = vector.shape_cast %211 : vector<1x64x64xbf16> to vector<64x64xbf16>
    %cst_197 = arith.constant dense<0.000000e+00> : vector<32x64xf32>
    %213 = tpu.matmul %210, %212, %cst_197 {dimension_numbers = #tpu.dot_dimension_numbers<[1], [0], [0], [1], [0, 0, 1, 1], [], []>} : vector<32x64xbf16>, vector<64x64xbf16>, vector<32x64xf32> -> vector<32x64xf32>
    %214 = arith.addf %206, %213 : vector<32x64xf32>
    %c4_198 = arith.constant 4 : index
    %c0_199 = arith.constant 0 : index
    %c0_200 = arith.constant 0 : index
    %215 = vector.load %arg16[%c4_198, %c0_199, %c0_200] : memref<9x32x32xbf16, #tpu.memory_space<vmem>>, vector<1x32x32xbf16>
    %216 = vector.shape_cast %215 : vector<1x32x32xbf16> to vector<32x32xbf16>
    %cst_201 = arith.constant dense<0.000000e+00> : vector<32x64xf32>
    %217 = tpu.matmul %216, %181, %cst_201 {dimension_numbers = #tpu.dot_dimension_numbers<[1], [0], [0], [1], [0, 0, 1, 1], [], []>} : vector<32x32xbf16>, vector<32x64xbf16>, vector<32x64xf32> -> vector<32x64xf32>
    %218 = arith.truncf %217 : vector<32x64xf32> to vector<32x64xbf16>
    %c4_202 = arith.constant 4 : index
    %c0_203 = arith.constant 0 : index
    %c0_204 = arith.constant 0 : index
    %219 = vector.load %arg17[%c4_202, %c0_203, %c0_204] : memref<9x64x64xbf16, #tpu.memory_space<vmem>>, vector<1x64x64xbf16>
    %220 = vector.shape_cast %219 : vector<1x64x64xbf16> to vector<64x64xbf16>
    %cst_205 = arith.constant dense<0.000000e+00> : vector<32x64xf32>
    %221 = tpu.matmul %218, %220, %cst_205 {dimension_numbers = #tpu.dot_dimension_numbers<[1], [0], [0], [1], [0, 0, 1, 1], [], []>} : vector<32x64xbf16>, vector<64x64xbf16>, vector<32x64xf32> -> vector<32x64xf32>
    %222 = arith.addf %214, %221 : vector<32x64xf32>
    %c5_206 = arith.constant 5 : index
    %c0_207 = arith.constant 0 : index
    %c0_208 = arith.constant 0 : index
    %223 = vector.load %arg16[%c5_206, %c0_207, %c0_208] : memref<9x32x32xbf16, #tpu.memory_space<vmem>>, vector<1x32x32xbf16>
    %224 = vector.shape_cast %223 : vector<1x32x32xbf16> to vector<32x32xbf16>
    %cst_209 = arith.constant dense<0.000000e+00> : vector<32x64xf32>
    %225 = tpu.matmul %224, %181, %cst_209 {dimension_numbers = #tpu.dot_dimension_numbers<[1], [0], [0], [1], [0, 0, 1, 1], [], []>} : vector<32x32xbf16>, vector<32x64xbf16>, vector<32x64xf32> -> vector<32x64xf32>
    %226 = arith.truncf %225 : vector<32x64xf32> to vector<32x64xbf16>
    %c5_210 = arith.constant 5 : index
    %c0_211 = arith.constant 0 : index
    %c0_212 = arith.constant 0 : index
    %227 = vector.load %arg17[%c5_210, %c0_211, %c0_212] : memref<9x64x64xbf16, #tpu.memory_space<vmem>>, vector<1x64x64xbf16>
    %228 = vector.shape_cast %227 : vector<1x64x64xbf16> to vector<64x64xbf16>
    %cst_213 = arith.constant dense<0.000000e+00> : vector<32x64xf32>
    %229 = tpu.matmul %226, %228, %cst_213 {dimension_numbers = #tpu.dot_dimension_numbers<[1], [0], [0], [1], [0, 0, 1, 1], [], []>} : vector<32x64xbf16>, vector<64x64xbf16>, vector<32x64xf32> -> vector<32x64xf32>
    %230 = arith.addf %222, %229 : vector<32x64xf32>
    %c6_214 = arith.constant 6 : index
    %c0_215 = arith.constant 0 : index
    %c0_216 = arith.constant 0 : index
    %231 = vector.load %arg16[%c6_214, %c0_215, %c0_216] : memref<9x32x32xbf16, #tpu.memory_space<vmem>>, vector<1x32x32xbf16>
    %232 = vector.shape_cast %231 : vector<1x32x32xbf16> to vector<32x32xbf16>
    %cst_217 = arith.constant dense<0.000000e+00> : vector<32x64xf32>
    %233 = tpu.matmul %232, %181, %cst_217 {dimension_numbers = #tpu.dot_dimension_numbers<[1], [0], [0], [1], [0, 0, 1, 1], [], []>} : vector<32x32xbf16>, vector<32x64xbf16>, vector<32x64xf32> -> vector<32x64xf32>
    %234 = arith.truncf %233 : vector<32x64xf32> to vector<32x64xbf16>
    %c6_218 = arith.constant 6 : index
    %c0_219 = arith.constant 0 : index
    %c0_220 = arith.constant 0 : index
    %235 = vector.load %arg17[%c6_218, %c0_219, %c0_220] : memref<9x64x64xbf16, #tpu.memory_space<vmem>>, vector<1x64x64xbf16>
    %236 = vector.shape_cast %235 : vector<1x64x64xbf16> to vector<64x64xbf16>
    %cst_221 = arith.constant dense<0.000000e+00> : vector<32x64xf32>
    %237 = tpu.matmul %234, %236, %cst_221 {dimension_numbers = #tpu.dot_dimension_numbers<[1], [0], [0], [1], [0, 0, 1, 1], [], []>} : vector<32x64xbf16>, vector<64x64xbf16>, vector<32x64xf32> -> vector<32x64xf32>
    %238 = arith.addf %230, %237 : vector<32x64xf32>
    %c7_222 = arith.constant 7 : index
    %c0_223 = arith.constant 0 : index
    %c0_224 = arith.constant 0 : index
    %239 = vector.load %arg16[%c7_222, %c0_223, %c0_224] : memref<9x32x32xbf16, #tpu.memory_space<vmem>>, vector<1x32x32xbf16>
    %240 = vector.shape_cast %239 : vector<1x32x32xbf16> to vector<32x32xbf16>
    %cst_225 = arith.constant dense<0.000000e+00> : vector<32x64xf32>
    %241 = tpu.matmul %240, %181, %cst_225 {dimension_numbers = #tpu.dot_dimension_numbers<[1], [0], [0], [1], [0, 0, 1, 1], [], []>} : vector<32x32xbf16>, vector<32x64xbf16>, vector<32x64xf32> -> vector<32x64xf32>
    %242 = arith.truncf %241 : vector<32x64xf32> to vector<32x64xbf16>
    %c7_226 = arith.constant 7 : index
    %c0_227 = arith.constant 0 : index
    %c0_228 = arith.constant 0 : index
    %243 = vector.load %arg17[%c7_226, %c0_227, %c0_228] : memref<9x64x64xbf16, #tpu.memory_space<vmem>>, vector<1x64x64xbf16>
    %244 = vector.shape_cast %243 : vector<1x64x64xbf16> to vector<64x64xbf16>
    %cst_229 = arith.constant dense<0.000000e+00> : vector<32x64xf32>
    %245 = tpu.matmul %242, %244, %cst_229 {dimension_numbers = #tpu.dot_dimension_numbers<[1], [0], [0], [1], [0, 0, 1, 1], [], []>} : vector<32x64xbf16>, vector<64x64xbf16>, vector<32x64xf32> -> vector<32x64xf32>
    %246 = arith.addf %238, %245 : vector<32x64xf32>
    %c8_230 = arith.constant 8 : index
    %c0_231 = arith.constant 0 : index
    %c0_232 = arith.constant 0 : index
    %247 = vector.load %arg16[%c8_230, %c0_231, %c0_232] : memref<9x32x32xbf16, #tpu.memory_space<vmem>>, vector<1x32x32xbf16>
    %248 = vector.shape_cast %247 : vector<1x32x32xbf16> to vector<32x32xbf16>
    %cst_233 = arith.constant dense<0.000000e+00> : vector<32x64xf32>
    %249 = tpu.matmul %248, %181, %cst_233 {dimension_numbers = #tpu.dot_dimension_numbers<[1], [0], [0], [1], [0, 0, 1, 1], [], []>} : vector<32x32xbf16>, vector<32x64xbf16>, vector<32x64xf32> -> vector<32x64xf32>
    %250 = arith.truncf %249 : vector<32x64xf32> to vector<32x64xbf16>
    %c8_234 = arith.constant 8 : index
    %c0_235 = arith.constant 0 : index
    %c0_236 = arith.constant 0 : index
    %251 = vector.load %arg17[%c8_234, %c0_235, %c0_236] : memref<9x64x64xbf16, #tpu.memory_space<vmem>>, vector<1x64x64xbf16>
    %252 = vector.shape_cast %251 : vector<1x64x64xbf16> to vector<64x64xbf16>
    %cst_237 = arith.constant dense<0.000000e+00> : vector<32x64xf32>
    %253 = tpu.matmul %250, %252, %cst_237 {dimension_numbers = #tpu.dot_dimension_numbers<[1], [0], [0], [1], [0, 0, 1, 1], [], []>} : vector<32x64xbf16>, vector<64x64xbf16>, vector<32x64xf32> -> vector<32x64xf32>
    %254 = arith.addf %246, %253 : vector<32x64xf32>
    %c0_238 = arith.constant 0 : index
    %c0_239 = arith.constant 0 : index
    %255 = vector.load %arg18[%c0_238, %c0_239] : memref<1x64xf32, #tpu.memory_space<vmem>>, vector<1x64xf32>
    %256 = vector.broadcast %255 : vector<1x64xf32> to vector<32x64xf32>
    %257 = arith.addf %254, %256 : vector<32x64xf32>
    %cst_240 = arith.constant 0.000000e+00 : f32
    %258 = vector.broadcast %cst_240 : f32 to vector<32x64xf32>
    %259 = arith.maximumf %257, %258 : vector<32x64xf32>
    %260 = arith.addf %259, %102 : vector<32x64xf32>
    %261 = arith.truncf %260 : vector<32x64xf32> to vector<32x64xbf16>
    %c0_241 = arith.constant 0 : index
    %c0_242 = arith.constant 0 : index
    %262 = vector.load %arg2[%c0_241, %c0_242] : memref<2x8xbf16, #tpu.memory_space<vmem>>, vector<2x8xbf16>
    %c0_243 = arith.constant 0 : index
    %c0_244 = arith.constant 0 : index
    %263 = vector.load %arg21[%c0_243, %c0_244] : memref<8x200xbf16, #tpu.memory_space<vmem>>, vector<8x200xbf16>
    %cst_245 = arith.constant dense<0.000000e+00> : vector<2x200xf32>
    %264 = tpu.matmul %262, %263, %cst_245 {dimension_numbers = #tpu.dot_dimension_numbers<[1], [0], [0], [1], [0, 0, 1, 1], [], []>} : vector<2x8xbf16>, vector<8x200xbf16>, vector<2x200xf32> -> vector<2x200xf32>
    %c0_246 = arith.constant 0 : index
    %c0_247 = arith.constant 0 : index
    %265 = vector.load %arg22[%c0_246, %c0_247] : memref<1x200xf32, #tpu.memory_space<vmem>>, vector<1x200xf32>
    %266 = vector.broadcast %265 : vector<1x200xf32> to vector<2x200xf32>
    %267 = arith.addf %264, %266 : vector<2x200xf32>
    %c0_248 = arith.constant 0 : index
    %c0_249 = arith.constant 0 : index
    %c0_250 = arith.constant 0 : index
    %268 = vector.load %arg19[%c0_248, %c0_249, %c0_250] : memref<16x2x32xbf16, #tpu.memory_space<vmem>>, vector<1x2x32xbf16>
    %269 = vector.shape_cast %268 : vector<1x2x32xbf16> to vector<2x32xbf16>
    %cst_251 = arith.constant dense<0.000000e+00> : vector<2x64xf32>
    %270 = tpu.matmul %269, %261, %cst_251 {dimension_numbers = #tpu.dot_dimension_numbers<[1], [0], [0], [1], [0, 0, 1, 1], [], []>} : vector<2x32xbf16>, vector<32x64xbf16>, vector<2x64xf32> -> vector<2x64xf32>
    %271 = arith.truncf %270 : vector<2x64xf32> to vector<2x64xbf16>
    %c0_252 = arith.constant 0 : index
    %c0_253 = arith.constant 0 : index
    %c0_254 = arith.constant 0 : index
    %272 = vector.load %arg20[%c0_252, %c0_253, %c0_254] : memref<16x64x200xbf16, #tpu.memory_space<vmem>>, vector<1x64x200xbf16>
    %273 = vector.shape_cast %272 : vector<1x64x200xbf16> to vector<64x200xbf16>
    %cst_255 = arith.constant dense<0.000000e+00> : vector<2x200xf32>
    %274 = tpu.matmul %271, %273, %cst_255 {dimension_numbers = #tpu.dot_dimension_numbers<[1], [0], [0], [1], [0, 0, 1, 1], [], []>} : vector<2x64xbf16>, vector<64x200xbf16>, vector<2x200xf32> -> vector<2x200xf32>
    %275 = arith.addf %267, %274 : vector<2x200xf32>
    %c1_256 = arith.constant 1 : index
    %c0_257 = arith.constant 0 : index
    %c0_258 = arith.constant 0 : index
    %276 = vector.load %arg19[%c1_256, %c0_257, %c0_258] : memref<16x2x32xbf16, #tpu.memory_space<vmem>>, vector<1x2x32xbf16>
    %277 = vector.shape_cast %276 : vector<1x2x32xbf16> to vector<2x32xbf16>
    %cst_259 = arith.constant dense<0.000000e+00> : vector<2x64xf32>
    %278 = tpu.matmul %277, %261, %cst_259 {dimension_numbers = #tpu.dot_dimension_numbers<[1], [0], [0], [1], [0, 0, 1, 1], [], []>} : vector<2x32xbf16>, vector<32x64xbf16>, vector<2x64xf32> -> vector<2x64xf32>
    %279 = arith.truncf %278 : vector<2x64xf32> to vector<2x64xbf16>
    %c1_260 = arith.constant 1 : index
    %c0_261 = arith.constant 0 : index
    %c0_262 = arith.constant 0 : index
    %280 = vector.load %arg20[%c1_260, %c0_261, %c0_262] : memref<16x64x200xbf16, #tpu.memory_space<vmem>>, vector<1x64x200xbf16>
    %281 = vector.shape_cast %280 : vector<1x64x200xbf16> to vector<64x200xbf16>
    %cst_263 = arith.constant dense<0.000000e+00> : vector<2x200xf32>
    %282 = tpu.matmul %279, %281, %cst_263 {dimension_numbers = #tpu.dot_dimension_numbers<[1], [0], [0], [1], [0, 0, 1, 1], [], []>} : vector<2x64xbf16>, vector<64x200xbf16>, vector<2x200xf32> -> vector<2x200xf32>
    %283 = arith.addf %275, %282 : vector<2x200xf32>
    %c2_264 = arith.constant 2 : index
    %c0_265 = arith.constant 0 : index
    %c0_266 = arith.constant 0 : index
    %284 = vector.load %arg19[%c2_264, %c0_265, %c0_266] : memref<16x2x32xbf16, #tpu.memory_space<vmem>>, vector<1x2x32xbf16>
    %285 = vector.shape_cast %284 : vector<1x2x32xbf16> to vector<2x32xbf16>
    %cst_267 = arith.constant dense<0.000000e+00> : vector<2x64xf32>
    %286 = tpu.matmul %285, %261, %cst_267 {dimension_numbers = #tpu.dot_dimension_numbers<[1], [0], [0], [1], [0, 0, 1, 1], [], []>} : vector<2x32xbf16>, vector<32x64xbf16>, vector<2x64xf32> -> vector<2x64xf32>
    %287 = arith.truncf %286 : vector<2x64xf32> to vector<2x64xbf16>
    %c2_268 = arith.constant 2 : index
    %c0_269 = arith.constant 0 : index
    %c0_270 = arith.constant 0 : index
    %288 = vector.load %arg20[%c2_268, %c0_269, %c0_270] : memref<16x64x200xbf16, #tpu.memory_space<vmem>>, vector<1x64x200xbf16>
    %289 = vector.shape_cast %288 : vector<1x64x200xbf16> to vector<64x200xbf16>
    %cst_271 = arith.constant dense<0.000000e+00> : vector<2x200xf32>
    %290 = tpu.matmul %287, %289, %cst_271 {dimension_numbers = #tpu.dot_dimension_numbers<[1], [0], [0], [1], [0, 0, 1, 1], [], []>} : vector<2x64xbf16>, vector<64x200xbf16>, vector<2x200xf32> -> vector<2x200xf32>
    %291 = arith.addf %283, %290 : vector<2x200xf32>
    %c3_272 = arith.constant 3 : index
    %c0_273 = arith.constant 0 : index
    %c0_274 = arith.constant 0 : index
    %292 = vector.load %arg19[%c3_272, %c0_273, %c0_274] : memref<16x2x32xbf16, #tpu.memory_space<vmem>>, vector<1x2x32xbf16>
    %293 = vector.shape_cast %292 : vector<1x2x32xbf16> to vector<2x32xbf16>
    %cst_275 = arith.constant dense<0.000000e+00> : vector<2x64xf32>
    %294 = tpu.matmul %293, %261, %cst_275 {dimension_numbers = #tpu.dot_dimension_numbers<[1], [0], [0], [1], [0, 0, 1, 1], [], []>} : vector<2x32xbf16>, vector<32x64xbf16>, vector<2x64xf32> -> vector<2x64xf32>
    %295 = arith.truncf %294 : vector<2x64xf32> to vector<2x64xbf16>
    %c3_276 = arith.constant 3 : index
    %c0_277 = arith.constant 0 : index
    %c0_278 = arith.constant 0 : index
    %296 = vector.load %arg20[%c3_276, %c0_277, %c0_278] : memref<16x64x200xbf16, #tpu.memory_space<vmem>>, vector<1x64x200xbf16>
    %297 = vector.shape_cast %296 : vector<1x64x200xbf16> to vector<64x200xbf16>
    %cst_279 = arith.constant dense<0.000000e+00> : vector<2x200xf32>
    %298 = tpu.matmul %295, %297, %cst_279 {dimension_numbers = #tpu.dot_dimension_numbers<[1], [0], [0], [1], [0, 0, 1, 1], [], []>} : vector<2x64xbf16>, vector<64x200xbf16>, vector<2x200xf32> -> vector<2x200xf32>
    %299 = arith.addf %291, %298 : vector<2x200xf32>
    %c4_280 = arith.constant 4 : index
    %c0_281 = arith.constant 0 : index
    %c0_282 = arith.constant 0 : index
    %300 = vector.load %arg19[%c4_280, %c0_281, %c0_282] : memref<16x2x32xbf16, #tpu.memory_space<vmem>>, vector<1x2x32xbf16>
    %301 = vector.shape_cast %300 : vector<1x2x32xbf16> to vector<2x32xbf16>
    %cst_283 = arith.constant dense<0.000000e+00> : vector<2x64xf32>
    %302 = tpu.matmul %301, %261, %cst_283 {dimension_numbers = #tpu.dot_dimension_numbers<[1], [0], [0], [1], [0, 0, 1, 1], [], []>} : vector<2x32xbf16>, vector<32x64xbf16>, vector<2x64xf32> -> vector<2x64xf32>
    %303 = arith.truncf %302 : vector<2x64xf32> to vector<2x64xbf16>
    %c4_284 = arith.constant 4 : index
    %c0_285 = arith.constant 0 : index
    %c0_286 = arith.constant 0 : index
    %304 = vector.load %arg20[%c4_284, %c0_285, %c0_286] : memref<16x64x200xbf16, #tpu.memory_space<vmem>>, vector<1x64x200xbf16>
    %305 = vector.shape_cast %304 : vector<1x64x200xbf16> to vector<64x200xbf16>
    %cst_287 = arith.constant dense<0.000000e+00> : vector<2x200xf32>
    %306 = tpu.matmul %303, %305, %cst_287 {dimension_numbers = #tpu.dot_dimension_numbers<[1], [0], [0], [1], [0, 0, 1, 1], [], []>} : vector<2x64xbf16>, vector<64x200xbf16>, vector<2x200xf32> -> vector<2x200xf32>
    %307 = arith.addf %299, %306 : vector<2x200xf32>
    %c5_288 = arith.constant 5 : index
    %c0_289 = arith.constant 0 : index
    %c0_290 = arith.constant 0 : index
    %308 = vector.load %arg19[%c5_288, %c0_289, %c0_290] : memref<16x2x32xbf16, #tpu.memory_space<vmem>>, vector<1x2x32xbf16>
    %309 = vector.shape_cast %308 : vector<1x2x32xbf16> to vector<2x32xbf16>
    %cst_291 = arith.constant dense<0.000000e+00> : vector<2x64xf32>
    %310 = tpu.matmul %309, %261, %cst_291 {dimension_numbers = #tpu.dot_dimension_numbers<[1], [0], [0], [1], [0, 0, 1, 1], [], []>} : vector<2x32xbf16>, vector<32x64xbf16>, vector<2x64xf32> -> vector<2x64xf32>
    %311 = arith.truncf %310 : vector<2x64xf32> to vector<2x64xbf16>
    %c5_292 = arith.constant 5 : index
    %c0_293 = arith.constant 0 : index
    %c0_294 = arith.constant 0 : index
    %312 = vector.load %arg20[%c5_292, %c0_293, %c0_294] : memref<16x64x200xbf16, #tpu.memory_space<vmem>>, vector<1x64x200xbf16>
    %313 = vector.shape_cast %312 : vector<1x64x200xbf16> to vector<64x200xbf16>
    %cst_295 = arith.constant dense<0.000000e+00> : vector<2x200xf32>
    %314 = tpu.matmul %311, %313, %cst_295 {dimension_numbers = #tpu.dot_dimension_numbers<[1], [0], [0], [1], [0, 0, 1, 1], [], []>} : vector<2x64xbf16>, vector<64x200xbf16>, vector<2x200xf32> -> vector<2x200xf32>
    %315 = arith.addf %307, %314 : vector<2x200xf32>
    %c6_296 = arith.constant 6 : index
    %c0_297 = arith.constant 0 : index
    %c0_298 = arith.constant 0 : index
    %316 = vector.load %arg19[%c6_296, %c0_297, %c0_298] : memref<16x2x32xbf16, #tpu.memory_space<vmem>>, vector<1x2x32xbf16>
    %317 = vector.shape_cast %316 : vector<1x2x32xbf16> to vector<2x32xbf16>
    %cst_299 = arith.constant dense<0.000000e+00> : vector<2x64xf32>
    %318 = tpu.matmul %317, %261, %cst_299 {dimension_numbers = #tpu.dot_dimension_numbers<[1], [0], [0], [1], [0, 0, 1, 1], [], []>} : vector<2x32xbf16>, vector<32x64xbf16>, vector<2x64xf32> -> vector<2x64xf32>
    %319 = arith.truncf %318 : vector<2x64xf32> to vector<2x64xbf16>
    %c6_300 = arith.constant 6 : index
    %c0_301 = arith.constant 0 : index
    %c0_302 = arith.constant 0 : index
    %320 = vector.load %arg20[%c6_300, %c0_301, %c0_302] : memref<16x64x200xbf16, #tpu.memory_space<vmem>>, vector<1x64x200xbf16>
    %321 = vector.shape_cast %320 : vector<1x64x200xbf16> to vector<64x200xbf16>
    %cst_303 = arith.constant dense<0.000000e+00> : vector<2x200xf32>
    %322 = tpu.matmul %319, %321, %cst_303 {dimension_numbers = #tpu.dot_dimension_numbers<[1], [0], [0], [1], [0, 0, 1, 1], [], []>} : vector<2x64xbf16>, vector<64x200xbf16>, vector<2x200xf32> -> vector<2x200xf32>
    %323 = arith.addf %315, %322 : vector<2x200xf32>
    %c7_304 = arith.constant 7 : index
    %c0_305 = arith.constant 0 : index
    %c0_306 = arith.constant 0 : index
    %324 = vector.load %arg19[%c7_304, %c0_305, %c0_306] : memref<16x2x32xbf16, #tpu.memory_space<vmem>>, vector<1x2x32xbf16>
    %325 = vector.shape_cast %324 : vector<1x2x32xbf16> to vector<2x32xbf16>
    %cst_307 = arith.constant dense<0.000000e+00> : vector<2x64xf32>
    %326 = tpu.matmul %325, %261, %cst_307 {dimension_numbers = #tpu.dot_dimension_numbers<[1], [0], [0], [1], [0, 0, 1, 1], [], []>} : vector<2x32xbf16>, vector<32x64xbf16>, vector<2x64xf32> -> vector<2x64xf32>
    %327 = arith.truncf %326 : vector<2x64xf32> to vector<2x64xbf16>
    %c7_308 = arith.constant 7 : index
    %c0_309 = arith.constant 0 : index
    %c0_310 = arith.constant 0 : index
    %328 = vector.load %arg20[%c7_308, %c0_309, %c0_310] : memref<16x64x200xbf16, #tpu.memory_space<vmem>>, vector<1x64x200xbf16>
    %329 = vector.shape_cast %328 : vector<1x64x200xbf16> to vector<64x200xbf16>
    %cst_311 = arith.constant dense<0.000000e+00> : vector<2x200xf32>
    %330 = tpu.matmul %327, %329, %cst_311 {dimension_numbers = #tpu.dot_dimension_numbers<[1], [0], [0], [1], [0, 0, 1, 1], [], []>} : vector<2x64xbf16>, vector<64x200xbf16>, vector<2x200xf32> -> vector<2x200xf32>
    %331 = arith.addf %323, %330 : vector<2x200xf32>
    %c8_312 = arith.constant 8 : index
    %c0_313 = arith.constant 0 : index
    %c0_314 = arith.constant 0 : index
    %332 = vector.load %arg19[%c8_312, %c0_313, %c0_314] : memref<16x2x32xbf16, #tpu.memory_space<vmem>>, vector<1x2x32xbf16>
    %333 = vector.shape_cast %332 : vector<1x2x32xbf16> to vector<2x32xbf16>
    %cst_315 = arith.constant dense<0.000000e+00> : vector<2x64xf32>
    %334 = tpu.matmul %333, %261, %cst_315 {dimension_numbers = #tpu.dot_dimension_numbers<[1], [0], [0], [1], [0, 0, 1, 1], [], []>} : vector<2x32xbf16>, vector<32x64xbf16>, vector<2x64xf32> -> vector<2x64xf32>
    %335 = arith.truncf %334 : vector<2x64xf32> to vector<2x64xbf16>
    %c8_316 = arith.constant 8 : index
    %c0_317 = arith.constant 0 : index
    %c0_318 = arith.constant 0 : index
    %336 = vector.load %arg20[%c8_316, %c0_317, %c0_318] : memref<16x64x200xbf16, #tpu.memory_space<vmem>>, vector<1x64x200xbf16>
    %337 = vector.shape_cast %336 : vector<1x64x200xbf16> to vector<64x200xbf16>
    %cst_319 = arith.constant dense<0.000000e+00> : vector<2x200xf32>
    %338 = tpu.matmul %335, %337, %cst_319 {dimension_numbers = #tpu.dot_dimension_numbers<[1], [0], [0], [1], [0, 0, 1, 1], [], []>} : vector<2x64xbf16>, vector<64x200xbf16>, vector<2x200xf32> -> vector<2x200xf32>
    %339 = arith.addf %331, %338 : vector<2x200xf32>
    %c9 = arith.constant 9 : index
    %c0_320 = arith.constant 0 : index
    %c0_321 = arith.constant 0 : index
    %340 = vector.load %arg19[%c9, %c0_320, %c0_321] : memref<16x2x32xbf16, #tpu.memory_space<vmem>>, vector<1x2x32xbf16>
    %341 = vector.shape_cast %340 : vector<1x2x32xbf16> to vector<2x32xbf16>
    %cst_322 = arith.constant dense<0.000000e+00> : vector<2x64xf32>
    %342 = tpu.matmul %341, %261, %cst_322 {dimension_numbers = #tpu.dot_dimension_numbers<[1], [0], [0], [1], [0, 0, 1, 1], [], []>} : vector<2x32xbf16>, vector<32x64xbf16>, vector<2x64xf32> -> vector<2x64xf32>
    %343 = arith.truncf %342 : vector<2x64xf32> to vector<2x64xbf16>
    %c9_323 = arith.constant 9 : index
    %c0_324 = arith.constant 0 : index
    %c0_325 = arith.constant 0 : index
    %344 = vector.load %arg20[%c9_323, %c0_324, %c0_325] : memref<16x64x200xbf16, #tpu.memory_space<vmem>>, vector<1x64x200xbf16>
    %345 = vector.shape_cast %344 : vector<1x64x200xbf16> to vector<64x200xbf16>
    %cst_326 = arith.constant dense<0.000000e+00> : vector<2x200xf32>
    %346 = tpu.matmul %343, %345, %cst_326 {dimension_numbers = #tpu.dot_dimension_numbers<[1], [0], [0], [1], [0, 0, 1, 1], [], []>} : vector<2x64xbf16>, vector<64x200xbf16>, vector<2x200xf32> -> vector<2x200xf32>
    %347 = arith.addf %339, %346 : vector<2x200xf32>
    %c10 = arith.constant 10 : index
    %c0_327 = arith.constant 0 : index
    %c0_328 = arith.constant 0 : index
    %348 = vector.load %arg19[%c10, %c0_327, %c0_328] : memref<16x2x32xbf16, #tpu.memory_space<vmem>>, vector<1x2x32xbf16>
    %349 = vector.shape_cast %348 : vector<1x2x32xbf16> to vector<2x32xbf16>
    %cst_329 = arith.constant dense<0.000000e+00> : vector<2x64xf32>
    %350 = tpu.matmul %349, %261, %cst_329 {dimension_numbers = #tpu.dot_dimension_numbers<[1], [0], [0], [1], [0, 0, 1, 1], [], []>} : vector<2x32xbf16>, vector<32x64xbf16>, vector<2x64xf32> -> vector<2x64xf32>
    %351 = arith.truncf %350 : vector<2x64xf32> to vector<2x64xbf16>
    %c10_330 = arith.constant 10 : index
    %c0_331 = arith.constant 0 : index
    %c0_332 = arith.constant 0 : index
    %352 = vector.load %arg20[%c10_330, %c0_331, %c0_332] : memref<16x64x200xbf16, #tpu.memory_space<vmem>>, vector<1x64x200xbf16>
    %353 = vector.shape_cast %352 : vector<1x64x200xbf16> to vector<64x200xbf16>
    %cst_333 = arith.constant dense<0.000000e+00> : vector<2x200xf32>
    %354 = tpu.matmul %351, %353, %cst_333 {dimension_numbers = #tpu.dot_dimension_numbers<[1], [0], [0], [1], [0, 0, 1, 1], [], []>} : vector<2x64xbf16>, vector<64x200xbf16>, vector<2x200xf32> -> vector<2x200xf32>
    %355 = arith.addf %347, %354 : vector<2x200xf32>
    %c11 = arith.constant 11 : index
    %c0_334 = arith.constant 0 : index
    %c0_335 = arith.constant 0 : index
    %356 = vector.load %arg19[%c11, %c0_334, %c0_335] : memref<16x2x32xbf16, #tpu.memory_space<vmem>>, vector<1x2x32xbf16>
    %357 = vector.shape_cast %356 : vector<1x2x32xbf16> to vector<2x32xbf16>
    %cst_336 = arith.constant dense<0.000000e+00> : vector<2x64xf32>
    %358 = tpu.matmul %357, %261, %cst_336 {dimension_numbers = #tpu.dot_dimension_numbers<[1], [0], [0], [1], [0, 0, 1, 1], [], []>} : vector<2x32xbf16>, vector<32x64xbf16>, vector<2x64xf32> -> vector<2x64xf32>
    %359 = arith.truncf %358 : vector<2x64xf32> to vector<2x64xbf16>
    %c11_337 = arith.constant 11 : index
    %c0_338 = arith.constant 0 : index
    %c0_339 = arith.constant 0 : index
    %360 = vector.load %arg20[%c11_337, %c0_338, %c0_339] : memref<16x64x200xbf16, #tpu.memory_space<vmem>>, vector<1x64x200xbf16>
    %361 = vector.shape_cast %360 : vector<1x64x200xbf16> to vector<64x200xbf16>
    %cst_340 = arith.constant dense<0.000000e+00> : vector<2x200xf32>
    %362 = tpu.matmul %359, %361, %cst_340 {dimension_numbers = #tpu.dot_dimension_numbers<[1], [0], [0], [1], [0, 0, 1, 1], [], []>} : vector<2x64xbf16>, vector<64x200xbf16>, vector<2x200xf32> -> vector<2x200xf32>
    %363 = arith.addf %355, %362 : vector<2x200xf32>
    %c12 = arith.constant 12 : index
    %c0_341 = arith.constant 0 : index
    %c0_342 = arith.constant 0 : index
    %364 = vector.load %arg19[%c12, %c0_341, %c0_342] : memref<16x2x32xbf16, #tpu.memory_space<vmem>>, vector<1x2x32xbf16>
    %365 = vector.shape_cast %364 : vector<1x2x32xbf16> to vector<2x32xbf16>
    %cst_343 = arith.constant dense<0.000000e+00> : vector<2x64xf32>
    %366 = tpu.matmul %365, %261, %cst_343 {dimension_numbers = #tpu.dot_dimension_numbers<[1], [0], [0], [1], [0, 0, 1, 1], [], []>} : vector<2x32xbf16>, vector<32x64xbf16>, vector<2x64xf32> -> vector<2x64xf32>
    %367 = arith.truncf %366 : vector<2x64xf32> to vector<2x64xbf16>
    %c12_344 = arith.constant 12 : index
    %c0_345 = arith.constant 0 : index
    %c0_346 = arith.constant 0 : index
    %368 = vector.load %arg20[%c12_344, %c0_345, %c0_346] : memref<16x64x200xbf16, #tpu.memory_space<vmem>>, vector<1x64x200xbf16>
    %369 = vector.shape_cast %368 : vector<1x64x200xbf16> to vector<64x200xbf16>
    %cst_347 = arith.constant dense<0.000000e+00> : vector<2x200xf32>
    %370 = tpu.matmul %367, %369, %cst_347 {dimension_numbers = #tpu.dot_dimension_numbers<[1], [0], [0], [1], [0, 0, 1, 1], [], []>} : vector<2x64xbf16>, vector<64x200xbf16>, vector<2x200xf32> -> vector<2x200xf32>
    %371 = arith.addf %363, %370 : vector<2x200xf32>
    %c13 = arith.constant 13 : index
    %c0_348 = arith.constant 0 : index
    %c0_349 = arith.constant 0 : index
    %372 = vector.load %arg19[%c13, %c0_348, %c0_349] : memref<16x2x32xbf16, #tpu.memory_space<vmem>>, vector<1x2x32xbf16>
    %373 = vector.shape_cast %372 : vector<1x2x32xbf16> to vector<2x32xbf16>
    %cst_350 = arith.constant dense<0.000000e+00> : vector<2x64xf32>
    %374 = tpu.matmul %373, %261, %cst_350 {dimension_numbers = #tpu.dot_dimension_numbers<[1], [0], [0], [1], [0, 0, 1, 1], [], []>} : vector<2x32xbf16>, vector<32x64xbf16>, vector<2x64xf32> -> vector<2x64xf32>
    %375 = arith.truncf %374 : vector<2x64xf32> to vector<2x64xbf16>
    %c13_351 = arith.constant 13 : index
    %c0_352 = arith.constant 0 : index
    %c0_353 = arith.constant 0 : index
    %376 = vector.load %arg20[%c13_351, %c0_352, %c0_353] : memref<16x64x200xbf16, #tpu.memory_space<vmem>>, vector<1x64x200xbf16>
    %377 = vector.shape_cast %376 : vector<1x64x200xbf16> to vector<64x200xbf16>
    %cst_354 = arith.constant dense<0.000000e+00> : vector<2x200xf32>
    %378 = tpu.matmul %375, %377, %cst_354 {dimension_numbers = #tpu.dot_dimension_numbers<[1], [0], [0], [1], [0, 0, 1, 1], [], []>} : vector<2x64xbf16>, vector<64x200xbf16>, vector<2x200xf32> -> vector<2x200xf32>
    %379 = arith.addf %371, %378 : vector<2x200xf32>
    %c14 = arith.constant 14 : index
    %c0_355 = arith.constant 0 : index
    %c0_356 = arith.constant 0 : index
    %380 = vector.load %arg19[%c14, %c0_355, %c0_356] : memref<16x2x32xbf16, #tpu.memory_space<vmem>>, vector<1x2x32xbf16>
    %381 = vector.shape_cast %380 : vector<1x2x32xbf16> to vector<2x32xbf16>
    %cst_357 = arith.constant dense<0.000000e+00> : vector<2x64xf32>
    %382 = tpu.matmul %381, %261, %cst_357 {dimension_numbers = #tpu.dot_dimension_numbers<[1], [0], [0], [1], [0, 0, 1, 1], [], []>} : vector<2x32xbf16>, vector<32x64xbf16>, vector<2x64xf32> -> vector<2x64xf32>
    %383 = arith.truncf %382 : vector<2x64xf32> to vector<2x64xbf16>
    %c14_358 = arith.constant 14 : index
    %c0_359 = arith.constant 0 : index
    %c0_360 = arith.constant 0 : index
    %384 = vector.load %arg20[%c14_358, %c0_359, %c0_360] : memref<16x64x200xbf16, #tpu.memory_space<vmem>>, vector<1x64x200xbf16>
    %385 = vector.shape_cast %384 : vector<1x64x200xbf16> to vector<64x200xbf16>
    %cst_361 = arith.constant dense<0.000000e+00> : vector<2x200xf32>
    %386 = tpu.matmul %383, %385, %cst_361 {dimension_numbers = #tpu.dot_dimension_numbers<[1], [0], [0], [1], [0, 0, 1, 1], [], []>} : vector<2x64xbf16>, vector<64x200xbf16>, vector<2x200xf32> -> vector<2x200xf32>
    %387 = arith.addf %379, %386 : vector<2x200xf32>
    %c15 = arith.constant 15 : index
    %c0_362 = arith.constant 0 : index
    %c0_363 = arith.constant 0 : index
    %388 = vector.load %arg19[%c15, %c0_362, %c0_363] : memref<16x2x32xbf16, #tpu.memory_space<vmem>>, vector<1x2x32xbf16>
    %389 = vector.shape_cast %388 : vector<1x2x32xbf16> to vector<2x32xbf16>
    %cst_364 = arith.constant dense<0.000000e+00> : vector<2x64xf32>
    %390 = tpu.matmul %389, %261, %cst_364 {dimension_numbers = #tpu.dot_dimension_numbers<[1], [0], [0], [1], [0, 0, 1, 1], [], []>} : vector<2x32xbf16>, vector<32x64xbf16>, vector<2x64xf32> -> vector<2x64xf32>
    %391 = arith.truncf %390 : vector<2x64xf32> to vector<2x64xbf16>
    %c15_365 = arith.constant 15 : index
    %c0_366 = arith.constant 0 : index
    %c0_367 = arith.constant 0 : index
    %392 = vector.load %arg20[%c15_365, %c0_366, %c0_367] : memref<16x64x200xbf16, #tpu.memory_space<vmem>>, vector<1x64x200xbf16>
    %393 = vector.shape_cast %392 : vector<1x64x200xbf16> to vector<64x200xbf16>
    %cst_368 = arith.constant dense<0.000000e+00> : vector<2x200xf32>
    %394 = tpu.matmul %391, %393, %cst_368 {dimension_numbers = #tpu.dot_dimension_numbers<[1], [0], [0], [1], [0, 0, 1, 1], [], []>} : vector<2x64xbf16>, vector<64x200xbf16>, vector<2x200xf32> -> vector<2x200xf32>
    %395 = arith.addf %387, %394 : vector<2x200xf32>
    %cst_369 = arith.constant 0.000000e+00 : f32
    %396 = vector.broadcast %cst_369 : f32 to vector<2x200xf32>
    %397 = arith.maximumf %395, %396 : vector<2x200xf32>
    %398 = arith.truncf %397 : vector<2x200xf32> to vector<2x200xbf16>
    %c0_370 = arith.constant 0 : index
    %c0_371 = arith.constant 0 : index
    %399 = vector.load %arg23[%c0_370, %c0_371] : memref<200x50xbf16, #tpu.memory_space<vmem>>, vector<200x50xbf16>
    %cst_372 = arith.constant dense<0.000000e+00> : vector<2x50xf32>
    %400 = tpu.matmul %398, %399, %cst_372 {dimension_numbers = #tpu.dot_dimension_numbers<[1], [0], [0], [1], [0, 0, 1, 1], [], []>} : vector<2x200xbf16>, vector<200x50xbf16>, vector<2x50xf32> -> vector<2x50xf32>
    %c0_373 = arith.constant 0 : index
    %c0_374 = arith.constant 0 : index
    %401 = vector.load %arg24[%c0_373, %c0_374] : memref<1x50xf32, #tpu.memory_space<vmem>>, vector<1x50xf32>
    %402 = vector.broadcast %401 : vector<1x50xf32> to vector<2x50xf32>
    %403 = arith.addf %400, %402 : vector<2x50xf32>
    %cst_375 = arith.constant 0.000000e+00 : f32
    %404 = vector.broadcast %cst_375 : f32 to vector<2x50xf32>
    %405 = arith.maximumf %403, %404 : vector<2x50xf32>
    %406 = arith.truncf %405 : vector<2x50xf32> to vector<2x50xbf16>
    %c0_376 = arith.constant 0 : index
    %c0_377 = arith.constant 0 : index
    %407 = vector.load %arg25[%c0_376, %c0_377] : memref<50x6xbf16, #tpu.memory_space<vmem>>, vector<50x6xbf16>
    %cst_378 = arith.constant dense<0.000000e+00> : vector<2x6xf32>
    %408 = tpu.matmul %406, %407, %cst_378 {dimension_numbers = #tpu.dot_dimension_numbers<[1], [0], [0], [1], [0, 0, 1, 1], [], []>} : vector<2x50xbf16>, vector<50x6xbf16>, vector<2x6xf32> -> vector<2x6xf32>
    %c0_379 = arith.constant 0 : index
    %c0_380 = arith.constant 0 : index
    %409 = vector.load %arg26[%c0_379, %c0_380] : memref<1x6xf32, #tpu.memory_space<vmem>>, vector<1x6xf32>
    %410 = vector.broadcast %409 : vector<1x6xf32> to vector<2x6xf32>
    %411 = arith.addf %408, %410 : vector<2x6xf32>
    %c0_381 = arith.constant 0 : index
    %c0_382 = arith.constant 0 : index
    %412 = vector.load %arg27[%c0_381, %c0_382] : memref<2x6xf32, #tpu.memory_space<vmem>>, vector<2x6xf32>
    tpu.vector_store %arg27[%c0_381, %c0_382], %411 {strides = array<i32>} : memref<2x6xf32, #tpu.memory_space<vmem>>, vector<2x6xf32>,
    return
  }
}

</mosaic_0001>

<bundles_post_ra>
// kernel: dqn_forward.1
= control target key start
LH: loop header
LB: loop body
LE: loop exit
PB: predicated region body
PF: predicated region fallthrough
CT: control target
= control target key end

     0   :  { %s14240_s0 = inlined_call_operand.vmem [shape: bf16[128,36], index: 0, kind: input, shape index: {}]   ;;  %s14241_s1 = inlined_call_operand.vmem [shape: bf16[128,4], index: 1, kind: input, shape index: {}]   ;;  %s14242_s2 = inlined_call_operand.vmem [shape: bf16[2,8], index: 2, kind: input, shape index: {}]   ;;  %s14243_s3 = inlined_call_operand.vmem [shape: bf16[36,16], index: 3, kind: input, shape index: {}]   ;;  %s14244_s4 = inlined_call_operand.vmem [shape: f32[1,16], index: 4, kind: input, shape index: {}]   ;;  %s14245_s5 = inlined_call_operand.vmem [shape: bf16[4,32], index: 5, kind: input, shape index: {}]   ;;  %s14246_s6 = inlined_call_operand.vmem [shape: f32[1,32], index: 6, kind: input, shape index: {}]   ;;  %s14247_s7 = inlined_call_operand.vmem [shape: bf16[9,128,128], index: 7, kind: input, shape index: {}]   ;;  %s14248_s8 = inlined_call_operand.vmem [shape: bf16[9,16,32], index: 8, kind: input, shape index: {}]   ;;  %s14249_s9 = inlined_call_operand.vmem [shape: f32[1,32], index: 9, kind: input, shape index: {}]   ;;  %s14250_s10 = inlined_call_operand.vmem [shape: bf16[32,128], index: 10, kind: input, shape index: {}]   ;;  %s14251_s11 = inlined_call_operand.vmem [shape: bf16[32,64], index: 11, kind: input, shape index: {}]   ;;  %s14252_s12 = inlined_call_operand.vmem [shape: f32[1,64], index: 12, kind: input, shape index: {}]   ;;  %s14253_s13 = inlined_call_operand.vmem [shape: bf16[9,32,128], index: 13, kind: input, shape index: {}]   ;;  %s14254_s14 = inlined_call_operand.vmem [shape: bf16[9,32,64], index: 14, kind: input, shape index: {}]   ;;  %s14255_s15 = inlined_call_operand.vmem [shape: f32[1,64], index: 15, kind: input, shape index: {}]   ;;  %s14256_s16 = inlined_call_operand.vmem [shape: bf16[9,32,32], index: 16, kind: input, shape index: {}]   ;;  %s14257_s17 = inlined_call_operand.vmem [shape: bf16[9,64,64], index: 17, kind: input, shape index: {}]   ;;  %s14258_s18 = inlined_call_operand.vmem [shape: f32[1,64], index: 18, kind: input, shape index: {}]   ;;  %s14259_s19 = inlined_call_operand.vmem [shape: bf16[16,2,32], index: 19, kind: input, shape index: {}]   ;;  %s14260_s20 = inlined_call_operand.vmem [shape: bf16[16,64,200], index: 20, kind: input, shape index: {}]   ;;  %s14261_s21 = inlined_call_operand.vmem [shape: bf16[8,200], index: 21, kind: input, shape index: {}]   ;;  %s14262_s22 = inlined_call_operand.vmem [shape: f32[1,200], index: 22, kind: input, shape index: {}]   ;;  %s14263_s23 = inlined_call_operand.vmem [shape: bf16[200,50], index: 23, kind: input, shape index: {}]   ;;  %s14264_s24 = inlined_call_operand.vmem [shape: f32[1,50], index: 24, kind: input, shape index: {}]   ;;  %s14265_s25 = inlined_call_operand.vmem [shape: bf16[50,6], index: 25, kind: input, shape index: {}]   ;;  %s14266_s26 = inlined_call_operand.vmem [shape: f32[1,6], index: 26, kind: input, shape index: {}]   ;;  %s14267_s27 = inlined_call_operand.hbm [shape: f32[2,6], index: 27, kind: output, shape index: {}]  }
   0x1   :  { %14275 = sst [smem:[#allocation21_spill]] %s14240_s0 }
   0x2   :  { %14276 = sst [smem:[#allocation22_spill]] %s14241_s1 }
   0x3   :  { %14277 = sst [smem:[#allocation23_spill]] %s14242_s2 }
   0x4   :  { %14278 = sst [smem:[#allocation24_spill]] %s14243_s3 }
   0x5   :  { %14279 = sst [smem:[#allocation25_spill]] %s14244_s4 }
   0x6   :  { %14280 = sst [smem:[#allocation26_spill]] %s14245_s5 }
   0x7   :  { %14281 = sst [smem:[#allocation27_spill]] %s14246_s6 }
   0x8   :  { %14282 = sst [smem:[#allocation28_spill]] %s14247_s7 }
   0x9   :  { %14283 = sst [smem:[#allocation29_spill]] %s14248_s8 }
   0xa   :  { %14284 = sst [smem:[#allocation30_spill]] %s14249_s9 }
   0xb   :  { %14285 = sst [smem:[#allocation31_spill]] %s14250_s10 }
   0xc   :  { %14286 = sst [smem:[#allocation32_spill]] %s14251_s11 }
   0xd   :  { %s14287_s8 = sld [smem:[#allocation24_spill]]  ;;  %vm196_vm0 = vcmask 1041408   ;;  %vm171_vm1 = vcmask 293888   ;;  %vm385_vm2 = vcmask 31744  }
   0xe   :  { %s14288_s0 = sld [smem:[#allocation21_spill]] }
   0xf   :  { %s14289_s11 = sld [smem:[#allocation26_spill]] }
  0x10   :  { %s14290_s7 = sld [smem:[#allocation22_spill]] }
  0x13   :  { %v11513_v0 = vld [vmem:[%s14287_s8 + $0x10] ss:$0 sps:$4 sm:$0x33]   ;;  %v11514_v1 = vld [vmem:[%s14287_s8 + $0x8] sm:$0xff]   ;;  %v11515_v4 = vld [vmem:[%s14287_s8] sm:$0xff]  }
  0x14   :  { %11507 = vmatprep.subr.msk.bf16.mxu0 %vm196_vm0, %v11513_v0  ;;  %v198_v2 = vsel %vm196_vm0, %v11513_v0, 0  ;;  %v11516_v3 = vld [vmem:[%s14288_s0] sm:$0xff]   ;;  %v11517_v5 = vld [vmem:[%s14288_s0 + $0x8] sm:$0xff]   ;;  %v11518_v6 = vld [vmem:[%s14288_s0 + $0x10] sm:$0xff]  }
  0x15   :  { %10402 = vmatpush3.bf16.msra.mxu0 %v198_v2  ;;  %10407 = vmatprep.mubr.msk.bf16.mxu0 %vm171_vm1, %v11516_v3  ;;  %v11519_v7 = vld [vmem:[%s14288_s0 + $0x18] sm:$0xff]   ;;  %v11520_v8 = vld [vmem:[%s14288_s0 + $0x20] sm:$0xff]   ;;  %v11521_v9 = vld [vmem:[%s14288_s0 + $0x28] sm:$0xff]  }
  0x16   :  { %10403 = vmatprep.subr.bf16.mxu0 %v11514_v1  ;;  %v11522_v10 = vld [vmem:[%s14288_s0 + $0x30] sm:$0xff]   ;;  %v11523_v11 = vld [vmem:[%s14288_s0 + $0x38] sm:$0xff]   ;;  %v337_v12 = vld [vmem:[%s14289_s11] sm:$0x3]  ;;  %s14291_s0 = sld [smem:[#allocation28_spill]] }
  0x17   :  { %11508 = vmatprep.subr.msk.bf16.mxu1 %vm196_vm0, %v337_v12  ;;  %v411_v13 = vsel %vm196_vm0, %v337_v12, 0  ;;  %v11524_v14 = vld [vmem:[%s14290_s7] sm:$0xff]   ;;  %v11525_v15 = vld [vmem:[%s14290_s7 + $0x8] sm:$0xff]   ;;  %v11526_v16 = vld [vmem:[%s14290_s7 + $0x10] sm:$0xff]  }
  0x18   :  { %10424 = vmatpush3.bf16.msra.mxu1 %v411_v13  ;;  %10425 = vmatprep.mubr.msk.bf16.mxu1 %vm385_vm2, %v11524_v14  ;;  %v11527_v17 = vld [vmem:[%s14290_s7 + $0x18] sm:$0xff]   ;;  %v11528_v18 = vld [vmem:[%s14290_s7 + $0x20] sm:$0xff]   ;;  %v11529_v19 = vld [vmem:[%s14290_s7 + $0x28] sm:$0xff]  }
  0x19   :  { %10404 = vmatpush3.bf16.msra.mxu0 %v11514_v1  ;;  %v11530_v20 = vld [vmem:[%s14290_s7 + $0x30] sm:$0xff]   ;;  %v11531_v21 = vld [vmem:[%s14290_s7 + $0x38] sm:$0xff]  }
  0x1a   :  { %10405 = vmatprep.subr.bf16.mxu0 %v11515_v4 }
  0x1b   :  { %10426 = vmatmul.mubr.msk.bf16.vlgmr.msra.gmra.mxu1 %vm385_vm2, %v11525_v15 }
  0x1c   :  { %10429 = vmatprep.mubr.msk.bf16.mxu1 %vm385_vm2, %v11526_v16  ;;  %v11532_v22 = vld [vmem:[%s14291_s0] sm:$0xff]  }
  0x1d   :  { %10406 = vmatpush3.bf16.msra.mxu0 %v11515_v4  ;;  %v11533_v23 = vld [vmem:[%s14291_s0 + $0x40] sm:$0xff]  }
  0x20   :  { %10408 = vmatmul.mubr.msk.bf16.vlgmr.msra.gmra.mxu0 %vm171_vm1, %v11517_v5 }
  0x21   :  { %10411 = vmatprep.mubr.msk.bf16.mxu0 %vm171_vm1, %v11518_v6 }
  0x23   :  { %10430 = vmatmul.mubr.msk.bf16.gmra.mxu1 %vm385_vm2, %v11527_v17 }
  0x24   :  { %10433 = vmatprep.mubr.msk.bf16.mxu1 %vm385_vm2, %v11528_v18 }
  0x28   :  { %10412 = vmatmul.mubr.msk.bf16.gmra.mxu0 %vm171_vm1, %v11519_v7 }
  0x29   :  { %10415 = vmatprep.mubr.msk.bf16.mxu0 %vm171_vm1, %v11520_v8 }
  0x2b   :  { %10434 = vmatmul.mubr.msk.bf16.gmra.mxu1 %vm385_vm2, %v11529_v19 }
  0x2c   :  { %10437 = vmatprep.mubr.msk.bf16.mxu1 %vm385_vm2, %v11530_v20 }
  0x30   :  { %10416 = vmatmul.mubr.msk.bf16.gmra.mxu0 %vm171_vm1, %v11521_v9 }
  0x31   :  { %10419 = vmatprep.mubr.msk.bf16.mxu0 %vm171_vm1, %v11522_v10 }
  0x33   :  { %10438 = vmatmul.mubr.msk.bf16.gmra.mxu1 %vm385_vm2, %v11531_v21 }
  0x34   :  { %10457 = vmatprep.mubr.bf16.mxu1 %v11532_v22 }
  0x38   :  { %10420 = vmatmul.mubr.msk.bf16.gmra.mxu0 %vm171_vm1, %v11523_v11 }
  0x39   :  { %10489 = vmatprep.mubr.bf16.mxu0 %v11533_v23 }
  0x3a   :  { %32 = vsyncpa [#allocation3], 0  ;;  %s14292_s28 = sld [smem:[#allocation25_spill]]  ;;  %v11534_v17 = vld [vmem:[%s14291_s0 + $0x8] sm:$0xff]   ;;  %v11536_v19 = vld [vmem:[%s14291_s0 + $0x10] sm:$0xff]   ;;  %vm860_vm3 = vcmask 130048  }
  0x3b   :  { %v11535_v18 = vld [vmem:[%s14291_s0 + $0x48] sm:$0xff]   ;;  %v11537_v20 = vld [vmem:[%s14291_s0 + $0x50] sm:$0xff]   ;;  %v11538_v21 = vld [vmem:[%s14291_s0 + $0x18] sm:$0xff]   ;;  %s14293_s10 = sld [smem:[#allocation29_spill]]  ;;  %vm3474_vm4 = vcmask 261120   ;;  %vm5017_vm5 = vcmask 523264  }
  0x3c   :  { %v11539_v22 = vld [vmem:[%s14291_s0 + $0x58] sm:$0xff]   ;;  %v11540_v23 = vld [vmem:[%s14291_s0 + $0x20] sm:$0xff]   ;;  %s14302_s29 = sld [smem:[#allocation31_spill]]  ;;  %vm6344_vm6 = vcmask 1043456   ;;  %vm6340_vm7 = vcmask 64512   ;;  %vm11942_vm8 = vmmov 0  }
  0x3d   :  { %s14312_s8 = sld [smem:[#allocation27_spill]]  ;;  %vm8845_vm9 = vcmask 1040384   ;;  %vm8757_vm10 = vcmask 588800   ;;  %vm8841_vm11 = vcmask 408576   ;;  %vm8889_vm12 = vcmask 41984  }
  0x3e   :  { %s14329_s7 = sld [smem:[#allocation32_spill]] }
  0x40   :  { %v8905_v37 = vld [vmem:[%s14292_s28] ss:$0 sm:$0xff] }
  0xe0   :  { %v10409_v24 = vpop.f32.mrf.mxu0 }
  0xe1   :  { %v243_v6 = vadd.f32 %v10409_v24, %v8905_v37  ;;  %v11541_v24 = vld [vmem:[%s14291_s0 + $0x60] sm:$0xff]  }
  0xe2   :  { %v12162_v25 = vpop.f32.mrf.mxu0 }
  0xe3   :  { %v299_v11 = vmax.f32 %v243_v6, 0.0  ;;  %v235_v12 = vadd.f32 %v8905_v37, %v12162_v25  ;;  %v11542_v25 = vld [vmem:[%s14291_s0 + $0x28] sm:$0xff]  }
  0xe4   :  { %v10410_v26 = vpop.f32.mrf.mxu0 }
  0xe5   :  { %v246_v3 = vadd.f32 %v10410_v26, %v8905_v37  ;;  %v297_v15 = vmax.f32 %v235_v12, 0.0  ;;  %v11543_v26 = vld [vmem:[%s14291_s0 + $0x68] sm:$0xff]  }
  0xe6   :  { %v12164_v27 = vpop.f32.mrf.mxu0 }
  0xe7   :  { %v300_v8 = vmax.f32 %v246_v3, 0.0  ;;  %v238_v9 = vadd.f32 %v8905_v37, %v12164_v27  ;;  %v11544_v27 = vld [vmem:[%s14291_s0 + $0x30] sm:$0xff]  }
  0xe8   :  { %v10413_v28 = vpop.f32.mrf.mxu0 }
  0xe9   :  { %v259_v60 = vadd.f32 %v10413_v28, %v8905_v37  ;;  %v12205_v13 = vpack.c.bf16 %v300_v8, %v299_v11  ;;  %v298_v14 = vmax.f32 %v238_v9, 0.0  ;;  %v11545_v28 = vld [vmem:[%s14291_s0 + $0x38] sm:$0xff]  }
  0xea   :  { %v250_v29 = vpop.f32.mrf.mxu0 }
  0xeb   :  { %v303_v1 = vmax.f32 %v259_v60, 0.0  ;;  %v251_v2 = vadd.f32 %v8905_v37, %v250_v29  ;;  %v12211_v16 = vpack.c.bf16 %v298_v14, %v297_v15  ;;  %v11546_v29 = vld [vmem:[%s14291_s0 + $0x70] sm:$0xff]  }
  0xec   :  { %v10414_v30 = vpop.f32.mrf.mxu0 }
  0xed   :  { %v262_v57 = vadd.f32 %v10414_v30, %v8905_v37  ;;  %v301_v7 = vmax.f32 %v251_v2, 0.0  ;;  %v11548_v30 = vld [vmem:[%s14293_s10 + $0x8] sm:$0xff]  }
  0xee   :  { %v253_v31 = vpop.f32.mrf.mxu0 }
  0xef   :  { %v304_v62 = vmax.f32 %v262_v57, 0.0  ;;  %v254_v63 = vadd.f32 %v8905_v37, %v253_v31  ;;  %v11547_v31 = vld [vmem:[%s14291_s0 + $0x78] sm:$0xff]  }
  0xf0   :  { %v10417_v32 = vpop.f32.mrf.mxu0 }
  0xf1   :  { %v275_v48 = vadd.f32 %v10417_v32, %v8905_v37  ;;  %v12191_v4 = vpack.c.bf16 %v304_v62, %v303_v1  ;;  %v302_v5 = vmax.f32 %v254_v63, 0.0  ;;  %v11549_v32 = vld [vmem:[%s14293_s10] sm:$0xff]  }
  0xf2   :  { %v266_v33 = vpop.f32.mrf.mxu0 }
  0xf3   :  { %v307_v55 = vmax.f32 %v275_v48, 0.0  ;;  %v267_v56 = vadd.f32 %v8905_v37, %v266_v33  ;;  %v12198_v10 = vpack.c.bf16 %v302_v5, %v301_v7  ;;  %v12284_v33 = vpop.f32.mrf.mxu1 }
  0xf4   :  { %v10418_v34 = vpop.f32.mrf.mxu0 }
  0xf5   :  { %v278_v44 = vadd.f32 %v10418_v34, %v8905_v37  ;;  %v305_v61 = vmax.f32 %v267_v56, 0.0  ;;  %v12286_v34 = vpop.f32.mrf.mxu1 }
  0xf6   :  { %v269_v35 = vpop.f32.mrf.mxu0 }
  0xf7   :  { %v308_v52 = vmax.f32 %v278_v44, 0.0  ;;  %v270_v53 = vadd.f32 %v8905_v37, %v269_v35  ;;  %v12288_v35 = vpop.f32.mrf.mxu1 }
  0xf8   :  { %v10421_v36 = vpop.f32.mrf.mxu0 }
  0xf9   :  { %v291_v39 = vadd.f32 %v10421_v36, %v8905_v37  ;;  %v12179_v58 = vpack.c.bf16 %v308_v52, %v307_v55  ;;  %v306_v59 = vmax.f32 %v270_v53, 0.0  ;;  %v12290_v36 = vpop.f32.mrf.mxu1 }
  0xfa   :  { %v282_v38 = vpop.f32.mrf.mxu0 }
  0xfb   :  { %v283_v41 = vadd.f32 %v8905_v37, %v282_v38  ;;  %v311_v45 = vmax.f32 %v291_v39, 0.0  ;;  %v12185_v0 = vpack.c.bf16 %v306_v59, %v305_v61 }
  0xfc   :  { %v10422_v40 = vpop.f32.mrf.mxu0 }
  0xfd   :  { %v294_v42 = vadd.f32 %v10422_v40, %v8905_v37  ;;  %v309_v49 = vmax.f32 %v283_v41, 0.0 }
  0xfe   :  { %v285_v43 = vpop.f32.mrf.mxu0 }
  0xff   :  { %v312_v46 = vmax.f32 %v294_v42, 0.0  ;;  %v286_v47 = vadd.f32 %v8905_v37, %v285_v43  ;;  %v12292_v37 = vpop.f32.mrf.mxu1 }
 0x101   :  { %v12169_v50 = vpack.c.bf16 %v312_v46, %v311_v45  ;;  %v310_v51 = vmax.f32 %v286_v47, 0.0  ;;  %v12294_v38 = vpop.f32.mrf.mxu1 }
 0x103   :  { %v12171_v54 = vpack.c.bf16 %v310_v51, %v309_v49  ;;  %10441 = vmatprep.subr.bf16.mxu1 %v12169_v50  ;;  %10473 = vmatprep.subr.bf16.mxu0 %v12169_v50  ;;  %v12296_v39 = vpop.f32.mrf.mxu1 }
 0x104   :  { %10442 = vmatpush3.bf16.msra.mxu1 %v12169_v50  ;;  %10474 = vmatpush3.bf16.msra.mxu0 %v12169_v50 }
 0x105   :  { %10443 = vmatprep.subr.bf16.mxu1 %v12171_v54  ;;  %10475 = vmatprep.subr.bf16.mxu0 %v12171_v54  ;;  %v12298_v40 = vpop.f32.mrf.mxu1 }
 0x107   :  { %v12300_v41 = vpop.f32.mrf.mxu1 }
 0x108   :  { %10444 = vmatpush3.bf16.msra.mxu1 %v12171_v54  ;;  %10476 = vmatpush3.bf16.msra.mxu0 %v12171_v54 }
 0x109   :  { %10445 = vmatprep.subr.bf16.mxu1 %v12179_v58  ;;  %10477 = vmatprep.subr.bf16.mxu0 %v12179_v58  ;;  %v12302_v42 = vpop.f32.mrf.mxu1 }
 0x10b   :  { %v12304_v43 = vpop.f32.mrf.mxu1 }
 0x10c   :  { %10446 = vmatpush3.bf16.msra.mxu1 %v12179_v58  ;;  %10478 = vmatpush3.bf16.msra.mxu0 %v12179_v58  ;;  %14294 = vst [vmem:[#allocation5_spill] sm:$0xff] %v12304_v43 }
 0x10d   :  { %10447 = vmatprep.subr.bf16.mxu1 %v12185_v0  ;;  %10479 = vmatprep.subr.bf16.mxu0 %v12185_v0  ;;  %v12306_v44 = vpop.f32.mrf.mxu1 }
 0x10e   :  { %14295 = vst [vmem:[#allocation6_spill] sm:$0xff] %v12306_v44 }
 0x10f   :  { %v12308_v45 = vpop.f32.mrf.mxu1 }
 0x110   :  { %10448 = vmatpush3.bf16.msra.mxu1 %v12185_v0  ;;  %10480 = vmatpush3.bf16.msra.mxu0 %v12185_v0  ;;  %14296 = vst [vmem:[#allocation7_spill] sm:$0xff] %v12308_v45 }
 0x111   :  { %10449 = vmatprep.subr.bf16.mxu1 %v12191_v4  ;;  %10481 = vmatprep.subr.bf16.mxu0 %v12191_v4  ;;  %v12310_v46 = vpop.f32.mrf.mxu1 }
 0x112   :  { %14297 = vst [vmem:[#allocation8_spill] sm:$0xff] %v12310_v46 }
 0x113   :  { %v12312_v47 = vpop.f32.mrf.mxu1 }
 0x114   :  { %10450 = vmatpush3.bf16.msra.mxu1 %v12191_v4  ;;  %10482 = vmatpush3.bf16.msra.mxu0 %v12191_v4  ;;  %14298 = vst [vmem:[#allocation9_spill] sm:$0xff] %v12312_v47 }
 0x115   :  { %10451 = vmatprep.subr.bf16.mxu1 %v12198_v10  ;;  %10483 = vmatprep.subr.bf16.mxu0 %v12198_v10  ;;  %v12314_v48 = vpop.f32.mrf.mxu1 }
 0x116   :  { %14299 = vst [vmem:[#allocation10_spill] sm:$0xff] %v12314_v48 }
 0x118   :  { %10452 = vmatpush3.bf16.msra.mxu1 %v12198_v10  ;;  %10484 = vmatpush3.bf16.msra.mxu0 %v12198_v10 }
 0x119   :  { %10453 = vmatprep.subr.bf16.mxu1 %v12205_v13  ;;  %10485 = vmatprep.subr.bf16.mxu0 %v12205_v13 }
 0x11c   :  { %10454 = vmatpush3.bf16.msra.mxu1 %v12205_v13  ;;  %10486 = vmatpush3.bf16.msra.mxu0 %v12205_v13 }
 0x11d   :  { %10455 = vmatprep.subr.bf16.mxu1 %v12211_v16  ;;  %10487 = vmatprep.subr.bf16.mxu0 %v12211_v16 }
 0x120   :  { %10456 = vmatpush3.bf16.msra.mxu1 %v12211_v16  ;;  %10488 = vmatpush3.bf16.msra.mxu0 %v12211_v16 }
 0x121   :  { %11491 = vmatprep.subr.bf16.mxu1 %v12169_v50  ;;  %10523 = vmatprep.subr.bf16.mxu0 %v11549_v32 }
 0x123   :  { %10458 = vmatmul.mubr.bf16.vlgmr.msra.gmra.mxu1 %v11534_v17  ;;  %10490 = vmatmul.mubr.bf16.vlgmr.msra.gmra.mxu0 %v11535_v18 }
 0x124   :  { %11499 = vmatpush3.bf16.msra.mxu1 %v12169_v50  ;;  %10461 = vmatprep.mubr.bf16.mxu1 %v11536_v19 }
 0x125   :  { %11492 = vmatprep.subr.bf16.mxu1 %v12171_v54  ;;  %10493 = vmatprep.mubr.bf16.mxu0 %v11537_v20 }
 0x126   :  { %10524 = vmatpush3.bf16.msra.mxu0 %v11549_v32 }
 0x128   :  { %11500 = vmatpush3.bf16.msra.mxu1 %v12171_v54 }
 0x129   :  { %11493 = vmatprep.subr.bf16.mxu1 %v12179_v58 }
 0x12b   :  { %10462 = vmatmul.mubr.bf16.gmra.mxu1 %v11538_v21  ;;  %10494 = vmatmul.mubr.bf16.gmra.mxu0 %v11539_v22 }
 0x12c   :  { %11501 = vmatpush3.bf16.msra.mxu1 %v12179_v58  ;;  %10465 = vmatprep.mubr.bf16.mxu1 %v11540_v23 }
 0x12d   :  { %11494 = vmatprep.subr.bf16.mxu1 %v12185_v0  ;;  %10497 = vmatprep.mubr.bf16.mxu0 %v11541_v24 }
 0x130   :  { %11502 = vmatpush3.bf16.msra.mxu1 %v12185_v0 }
 0x131   :  { %11495 = vmatprep.subr.bf16.mxu1 %v12191_v4 }
 0x133   :  { %10466 = vmatmul.mubr.bf16.gmra.mxu1 %v11542_v25  ;;  %10498 = vmatmul.mubr.bf16.gmra.mxu0 %v11543_v26 }
 0x134   :  { %11503 = vmatpush3.bf16.msra.mxu1 %v12191_v4  ;;  %10469 = vmatprep.mubr.bf16.mxu1 %v11544_v27 }
 0x135   :  { %11496 = vmatprep.subr.bf16.mxu1 %v12198_v10 }
 0x138   :  { %11504 = vmatpush3.bf16.msra.mxu1 %v12198_v10 }
 0x139   :  { %11497 = vmatprep.subr.bf16.mxu1 %v12205_v13 }
 0x13b   :  { %10470 = vmatmul.mubr.bf16.gmra.mxu1 %v11545_v28 }
 0x13c   :  { %11505 = vmatpush3.bf16.msra.mxu1 %v12205_v13  ;;  %10501 = vmatprep.mubr.bf16.mxu1 %v11546_v29 }
 0x13d   :  { %11498 = vmatprep.subr.bf16.mxu1 %v12211_v16 }
 0x140   :  { %11506 = vmatpush3.bf16.msra.mxu1 %v12211_v16 }
 0x141   :  { %10505 = vmatprep.subr.bf16.mxu1 %v11548_v30 }
 0x143   :  { %10502 = vmatmul.mubr.bf16.vlgmr.msra.gmra.mxu1 %v11547_v31 }
 0x144   :  { %10506 = vmatpush3.bf16.msra.mxu1 %v11548_v30 }
 0x145   :  { %10541 = vmatprep.subr.bf16.mxu1 %v12169_v50 }
 0x1e3   :  { %v10459_v49 = vpop.f32.mrf.mxu1  ;;  %v10491_v51 = vpop.f32.mrf.mxu0 }
 0x1e5   :  { %v608_v52 = vpop.f32.mrf.mxu1  ;;  %v780_v53 = vpop.f32.mrf.mxu0 }
 0x1e7   :  { %v10460_v55 = vpop.f32.mrf.mxu1  ;;  %v10492_v56 = vpop.f32.mrf.mxu0 }
 0x1e8   :  { %v844_v57 = vpack.c.bf16 %v10492_v56, %v10491_v51  ;;  %v672_v63 = vpack.c.bf16 %v10460_v55, %v10459_v49 }
 0x1e9   :  { %v611_v59 = vpop.f32.mrf.mxu1  ;;  %v783_v60 = vpop.f32.mrf.mxu0 }
 0x1ea   :  { %v671_v61 = vpack.c.bf16 %v611_v59, %v608_v52  ;;  %v843_v62 = vpack.c.bf16 %v783_v60, %v780_v53  ;;  %v11550_v59 = vld [vmem:[%s14291_s0 + $0x80] sm:$0xff]  }
 0x1eb   :  { %v10463_v1 = vpop.f32.mrf.mxu1  ;;  %v10495_v2 = vpop.f32.mrf.mxu0 }
 0x1ec   :  { %10507 = vmatprep.mubr.msk.bf16.mxu1 %vm860_vm3, %v843_v62  ;;  %10525 = vmatprep.mubr.msk.bf16.mxu0 %vm860_vm3, %v671_v61  ;;  %v11551_v61 = vld [vmem:[%s14291_s0 + $0x88] sm:$0xff]   ;;  %v11552_v62 = vld [vmem:[%s14291_s0 + $0x90] sm:$0xff]  }
 0x1ed   :  { %v624_v3 = vpop.f32.mrf.mxu1  ;;  %v796_v5 = vpop.f32.mrf.mxu0  ;;  %10508 = vmatmul.mubr.msk.bf16.vlgmr.msra.gmra.mxu1 %vm860_vm3, %v844_v57  ;;  %10526 = vmatmul.mubr.msk.bf16.vlgmr.msra.gmra.mxu0 %vm860_vm3, %v672_v63  ;;  %v11553_v63 = vld [vmem:[%s14291_s0 + $0x98] sm:$0xff]  }
 0x1ee   :  { %10542 = vmatpush3.bf16.msra.mxu1 %v12169_v50 }
 0x1ef   :  { %10543 = vmatprep.subr.bf16.mxu1 %v12171_v54  ;;  %v10464_v6 = vpop.f32.mrf.mxu1  ;;  %v10496_v7 = vpop.f32.mrf.mxu0 }
 0x1f0   :  { %v846_v8 = vpack.c.bf16 %v10496_v7, %v10495_v2  ;;  %v674_v15 = vpack.c.bf16 %v10464_v6, %v10463_v1  ;;  %v11554_v1 = vld [vmem:[%s14291_s0 + $0xa0] sm:$0xff]   ;;  %v11555_v2 = vld [vmem:[%s14291_s0 + $0xa8] sm:$0xff]  }
 0x1f1   :  { %v627_v9 = vpop.f32.mrf.mxu1  ;;  %v799_v11 = vpop.f32.mrf.mxu0  ;;  %v11558_v6 = vld [vmem:[%s14291_s0 + $0xc0] sm:$0xff]   ;;  %v11559_v7 = vld [vmem:[%s14291_s0 + $0xc8] sm:$0xff]  }
 0x1f2   :  { %v673_v12 = vpack.c.bf16 %v627_v9, %v624_v3  ;;  %v845_v14 = vpack.c.bf16 %v799_v11, %v796_v5  ;;  %10544 = vmatpush3.bf16.msra.mxu1 %v12171_v54  ;;  %v11556_v3 = vld [vmem:[%s14291_s0 + $0xb0] sm:$0xff]   ;;  %v11557_v5 = vld [vmem:[%s14291_s0 + $0xb8] sm:$0xff]   ;;  %v11562_v11 = vld [vmem:[%s14291_s0 + $0xe0] sm:$0xff]  }
 0x1f3   :  { %10545 = vmatprep.subr.bf16.mxu1 %v12179_v58  ;;  %v10467_v17 = vpop.f32.mrf.mxu1  ;;  %v10499_v18 = vpop.f32.mrf.mxu0  ;;  %v11561_v9 = vld [vmem:[%s14291_s0 + $0xd8] sm:$0xff]  }
 0x1f4   :  { %10511 = vmatprep.mubr.msk.bf16.mxu1 %vm860_vm3, %v845_v14  ;;  %10529 = vmatprep.mubr.msk.bf16.mxu0 %vm860_vm3, %v673_v12  ;;  %v11594_v12 = vld [vmem:[%s14293_s10 + $0x10] sm:$0xff]   ;;  %v11563_v14 = vld [vmem:[%s14291_s0 + $0xe8] sm:$0xff]  }
 0x1f5   :  { %v640_v19 = vpop.f32.mrf.mxu1  ;;  %v812_v20 = vpop.f32.mrf.mxu0  ;;  %10512 = vmatmul.mubr.msk.bf16.gmra.mxu1 %vm860_vm3, %v846_v8  ;;  %10530 = vmatmul.mubr.msk.bf16.gmra.mxu0 %vm860_vm3, %v674_v15  ;;  %v11560_v8 = vld [vmem:[%s14291_s0 + $0xd0] sm:$0xff]  }
 0x1f6   :  { %10546 = vmatpush3.bf16.msra.mxu1 %v12179_v58  ;;  %v11564_v15 = vld [vmem:[%s14291_s0 + $0xf0] sm:$0xff]   ;;  %10573 = vmatprep.subr.bf16.mxu0 %v11594_v12 }
 0x1f7   :  { %10547 = vmatprep.subr.bf16.mxu1 %v12185_v0  ;;  %v10468_v21 = vpop.f32.mrf.mxu1  ;;  %v10500_v22 = vpop.f32.mrf.mxu0  ;;  %10574 = vmatpush3.bf16.msra.mxu0 %v11594_v12  ;;  %v11592_v12 = vld [vmem:[%s14291_s0 + $0x1d0] sm:$0xff]  }
 0x1f8   :  { %v848_v23 = vpack.c.bf16 %v10500_v22, %v10499_v18  ;;  %v676_v28 = vpack.c.bf16 %v10468_v21, %v10467_v17  ;;  %v11565_v17 = vld [vmem:[%s14291_s0 + $0xf8] sm:$0xff]   ;;  %v11566_v18 = vld [vmem:[%s14291_s0 + $0x100] sm:$0xff]  }
 0x1f9   :  { %v643_v24 = vpop.f32.mrf.mxu1  ;;  %v815_v25 = vpop.f32.mrf.mxu0  ;;  %v11569_v21 = vld [vmem:[%s14291_s0 + $0x118] sm:$0xff]   ;;  %v11570_v22 = vld [vmem:[%s14291_s0 + $0x120] sm:$0xff]  }
 0x1fa   :  { %v675_v26 = vpack.c.bf16 %v643_v24, %v640_v19  ;;  %v847_v27 = vpack.c.bf16 %v815_v25, %v812_v20  ;;  %10548 = vmatpush3.bf16.msra.mxu1 %v12185_v0  ;;  %v11567_v19 = vld [vmem:[%s14291_s0 + $0x108] sm:$0xff]   ;;  %v11568_v20 = vld [vmem:[%s14291_s0 + $0x110] sm:$0xff]  }
 0x1fb   :  { %10549 = vmatprep.subr.bf16.mxu1 %v12191_v4  ;;  %v10471_v29 = vpop.f32.mrf.mxu1  ;;  %v11571_v24 = vld [vmem:[%s14291_s0 + $0x128] sm:$0xff]   ;;  %v11572_v25 = vld [vmem:[%s14291_s0 + $0x130] sm:$0xff]  }
 0x1fc   :  { %10515 = vmatprep.mubr.msk.bf16.mxu1 %vm860_vm3, %v847_v27  ;;  %10533 = vmatprep.mubr.msk.bf16.mxu0 %vm860_vm3, %v675_v26  ;;  %v11573_v26 = vld [vmem:[%s14291_s0 + $0x138] sm:$0xff]   ;;  %v11574_v27 = vld [vmem:[%s14291_s0 + $0x140] sm:$0xff]  }
 0x1fd   :  { %v656_v30 = vpop.f32.mrf.mxu1  ;;  %10516 = vmatmul.mubr.msk.bf16.gmra.mxu1 %vm860_vm3, %v848_v23  ;;  %10534 = vmatmul.mubr.msk.bf16.gmra.mxu0 %vm860_vm3, %v676_v28  ;;  %v12455_v23 = vld [vmem:[%s14293_s10 + $0x18] sm:$0xff]   ;;  %v11575_v28 = vld [vmem:[%s14291_s0 + $0x148] sm:$0xff]  }
 0x1fe   :  { %10550 = vmatpush3.bf16.msra.mxu1 %v12191_v4  ;;  %10623 = vmatprep.subr.bf16.mxu0 %v12455_v23 }
 0x1ff   :  { %10551 = vmatprep.subr.bf16.mxu1 %v12198_v10  ;;  %v10472_v31 = vpop.f32.mrf.mxu1 }
 0x200   :  { %v678_v51 = vpack.c.bf16 %v10472_v31, %v10471_v29  ;;  %v11576_v29 = vld [vmem:[%s14291_s0 + $0x150] sm:$0xff]   ;;  %v11578_v31 = vld [vmem:[%s14291_s0 + $0x160] sm:$0xff]  }
 0x201   :  { %v659_v32 = vpop.f32.mrf.mxu1 }
 0x202   :  { %v677_v49 = vpack.c.bf16 %v659_v32, %v656_v30  ;;  %10552 = vmatpush3.bf16.msra.mxu1 %v12198_v10  ;;  %v11577_v30 = vld [vmem:[%s14291_s0 + $0x158] sm:$0xff]   ;;  %v11579_v32 = vld [vmem:[%s14291_s0 + $0x168] sm:$0xff]  }
 0x203   :  { %10553 = vmatprep.subr.bf16.mxu1 %v12205_v13  ;;  %v10503_v52 = vpop.f32.mrf.mxu1 }
 0x204   :  { %10537 = vmatprep.mubr.msk.bf16.mxu0 %vm860_vm3, %v677_v49  ;;  %v11580_v49 = vld [vmem:[%s14291_s0 + $0x170] sm:$0xff]  }
 0x205   :  { %v828_v53 = vpop.f32.mrf.mxu1  ;;  %10538 = vmatmul.mubr.msk.bf16.gmra.mxu0 %vm860_vm3, %v678_v51  ;;  %v11581_v51 = vld [vmem:[%s14291_s0 + $0x178] sm:$0xff]  }
 0x206   :  { %10554 = vmatpush3.bf16.msra.mxu1 %v12205_v13 }
 0x207   :  { %10555 = vmatprep.subr.bf16.mxu1 %v12211_v16  ;;  %v10504_v55 = vpop.f32.mrf.mxu1 }
 0x208   :  { %v850_v60 = vpack.c.bf16 %v10504_v55, %v10503_v52  ;;  %v11582_v52 = vld [vmem:[%s14291_s0 + $0x180] sm:$0xff]   ;;  %v11584_v55 = vld [vmem:[%s14291_s0 + $0x190] sm:$0xff]  }
 0x209   :  { %v831_v56 = vpop.f32.mrf.mxu1 }
 0x20a   :  { %v849_v57 = vpack.c.bf16 %v831_v56, %v828_v53  ;;  %10556 = vmatpush3.bf16.msra.mxu1 %v12211_v16  ;;  %v11583_v53 = vld [vmem:[%s14291_s0 + $0x188] sm:$0xff]   ;;  %v11585_v56 = vld [vmem:[%s14291_s0 + $0x198] sm:$0xff]  }
 0x20b   :  { %10591 = vmatprep.subr.bf16.mxu1 %v12169_v50 }
 0x20c   :  { %10519 = vmatprep.mubr.msk.bf16.mxu1 %vm860_vm3, %v849_v57  ;;  %v11586_v57 = vld [vmem:[%s14291_s0 + $0x1a0] sm:$0xff]  }
 0x20d   :  { %10520 = vmatmul.mubr.msk.bf16.gmra.mxu1 %vm860_vm3, %v850_v60  ;;  %v11588_v60 = vld [vmem:[%s14291_s0 + $0x1b0] sm:$0xff]  }
 0x20e   :  { %10557 = vmatprep.mubr.bf16.mxu1 %v11550_v59  ;;  %v11587_v59 = vld [vmem:[%s14291_s0 + $0x1a8] sm:$0xff]  }
 0x215   :  { %10558 = vmatmul.mubr.bf16.vlgmr.msra.gmra.mxu1 %v11551_v61  ;;  %v11589_v61 = vld [vmem:[%s14291_s0 + $0x1b8] sm:$0xff]  }
 0x216   :  { %10592 = vmatpush3.bf16.msra.mxu1 %v12169_v50  ;;  %10561 = vmatprep.mubr.bf16.mxu1 %v11552_v62  ;;  %v11590_v62 = vld [vmem:[%s14291_s0 + $0x1c0] sm:$0xff]  }
 0x217   :  { %10593 = vmatprep.subr.bf16.mxu1 %v12171_v54 }
 0x21a   :  { %10594 = vmatpush3.bf16.msra.mxu1 %v12171_v54 }
 0x21b   :  { %10595 = vmatprep.subr.bf16.mxu1 %v12179_v58 }
 0x21d   :  { %10562 = vmatmul.mubr.bf16.gmra.mxu1 %v11553_v63 }
 0x21e   :  { %10596 = vmatpush3.bf16.msra.mxu1 %v12179_v58  ;;  %10565 = vmatprep.mubr.bf16.mxu1 %v11554_v1 }
 0x21f   :  { %10597 = vmatprep.subr.bf16.mxu1 %v12185_v0 }
 0x222   :  { %10598 = vmatpush3.bf16.msra.mxu1 %v12185_v0 }
 0x223   :  { %10599 = vmatprep.subr.bf16.mxu1 %v12191_v4 }
 0x225   :  { %10566 = vmatmul.mubr.bf16.gmra.mxu1 %v11555_v2 }
 0x226   :  { %10600 = vmatpush3.bf16.msra.mxu1 %v12191_v4  ;;  %10569 = vmatprep.mubr.bf16.mxu1 %v11556_v3 }
 0x227   :  { %10601 = vmatprep.subr.bf16.mxu1 %v12198_v10 }
 0x22a   :  { %10602 = vmatpush3.bf16.msra.mxu1 %v12198_v10 }
 0x22b   :  { %10603 = vmatprep.subr.bf16.mxu1 %v12205_v13 }
 0x22d   :  { %10570 = vmatmul.mubr.bf16.gmra.mxu1 %v11557_v5 }
 0x22e   :  { %10604 = vmatpush3.bf16.msra.mxu1 %v12205_v13  ;;  %10607 = vmatprep.mubr.bf16.mxu1 %v11558_v6 }
 0x22f   :  { %10605 = vmatprep.subr.bf16.mxu1 %v12211_v16 }
 0x232   :  { %10606 = vmatpush3.bf16.msra.mxu1 %v12211_v16 }
 0x233   :  { %10641 = vmatprep.subr.bf16.mxu1 %v12169_v50 }
 0x235   :  { %10608 = vmatmul.mubr.bf16.vlgmr.msra.gmra.mxu1 %v11559_v7 }
 0x236   :  { %10642 = vmatpush3.bf16.msra.mxu1 %v12169_v50  ;;  %10611 = vmatprep.mubr.bf16.mxu1 %v11560_v8 }
 0x237   :  { %10643 = vmatprep.subr.bf16.mxu1 %v12171_v54 }
 0x23a   :  { %10644 = vmatpush3.bf16.msra.mxu1 %v12171_v54 }
 0x23b   :  { %10645 = vmatprep.subr.bf16.mxu1 %v12179_v58 }
 0x23d   :  { %10612 = vmatmul.mubr.bf16.gmra.mxu1 %v11561_v9  ;;  %v11591_v9 = vld [vmem:[%s14291_s0 + $0x1c8] sm:$0xff]  }
 0x23e   :  { %10646 = vmatpush3.bf16.msra.mxu1 %v12179_v58  ;;  %10615 = vmatprep.mubr.bf16.mxu1 %v11562_v11 }
 0x23f   :  { %10647 = vmatprep.subr.bf16.mxu1 %v12185_v0 }
 0x242   :  { %10648 = vmatpush3.bf16.msra.mxu1 %v12185_v0 }
 0x243   :  { %10649 = vmatprep.subr.bf16.mxu1 %v12191_v4 }
 0x245   :  { %10616 = vmatmul.mubr.bf16.gmra.mxu1 %v11563_v14 }
 0x246   :  { %10650 = vmatpush3.bf16.msra.mxu1 %v12191_v4  ;;  %10619 = vmatprep.mubr.bf16.mxu1 %v11564_v15 }
 0x247   :  { %10651 = vmatprep.subr.bf16.mxu1 %v12198_v10 }
 0x24a   :  { %10652 = vmatpush3.bf16.msra.mxu1 %v12198_v10 }
 0x24b   :  { %10653 = vmatprep.subr.bf16.mxu1 %v12205_v13 }
 0x24d   :  { %10620 = vmatmul.mubr.bf16.gmra.mxu1 %v11565_v17 }
 0x24e   :  { %10654 = vmatpush3.bf16.msra.mxu1 %v12205_v13  ;;  %10657 = vmatprep.mubr.bf16.mxu1 %v11566_v18 }
 0x24f   :  { %10655 = vmatprep.subr.bf16.mxu1 %v12211_v16 }
 0x252   :  { %10656 = vmatpush3.bf16.msra.mxu1 %v12211_v16 }
 0x253   :  { %10691 = vmatprep.subr.bf16.mxu1 %v12169_v50 }
 0x255   :  { %10658 = vmatmul.mubr.bf16.vlgmr.msra.gmra.mxu1 %v11567_v19 }
 0x256   :  { %10692 = vmatpush3.bf16.msra.mxu1 %v12169_v50  ;;  %10661 = vmatprep.mubr.bf16.mxu1 %v11568_v20 }
 0x257   :  { %10693 = vmatprep.subr.bf16.mxu1 %v12171_v54 }
 0x25a   :  { %10694 = vmatpush3.bf16.msra.mxu1 %v12171_v54 }
 0x25b   :  { %10695 = vmatprep.subr.bf16.mxu1 %v12179_v58 }
 0x25d   :  { %10662 = vmatmul.mubr.bf16.gmra.mxu1 %v11569_v21 }
 0x25e   :  { %10696 = vmatpush3.bf16.msra.mxu1 %v12179_v58  ;;  %10665 = vmatprep.mubr.bf16.mxu1 %v11570_v22 }
 0x25f   :  { %10697 = vmatprep.subr.bf16.mxu1 %v12185_v0 }
 0x262   :  { %10698 = vmatpush3.bf16.msra.mxu1 %v12185_v0 }
 0x263   :  { %10699 = vmatprep.subr.bf16.mxu1 %v12191_v4 }
 0x265   :  { %10666 = vmatmul.mubr.bf16.gmra.mxu1 %v11571_v24 }
 0x266   :  { %10700 = vmatpush3.bf16.msra.mxu1 %v12191_v4  ;;  %10669 = vmatprep.mubr.bf16.mxu1 %v11572_v25 }
 0x267   :  { %10701 = vmatprep.subr.bf16.mxu1 %v12198_v10 }
 0x26a   :  { %10702 = vmatpush3.bf16.msra.mxu1 %v12198_v10 }
 0x26b   :  { %10703 = vmatprep.subr.bf16.mxu1 %v12205_v13 }
 0x26d   :  { %10670 = vmatmul.mubr.bf16.gmra.mxu1 %v11573_v26  ;;  %v11593_v26 = vld [vmem:[%s14291_s0 + $0x1d8] sm:$0xff]  }
 0x26e   :  { %10704 = vmatpush3.bf16.msra.mxu1 %v12205_v13  ;;  %10707 = vmatprep.mubr.bf16.mxu1 %v11574_v27 }
 0x26f   :  { %10705 = vmatprep.subr.bf16.mxu1 %v12211_v16 }
 0x272   :  { %10706 = vmatpush3.bf16.msra.mxu1 %v12211_v16 }
 0x273   :  { %10741 = vmatprep.subr.bf16.mxu1 %v12169_v50 }
 0x275   :  { %10708 = vmatmul.mubr.bf16.vlgmr.msra.gmra.mxu1 %v11575_v28 }
 0x276   :  { %10742 = vmatpush3.bf16.msra.mxu1 %v12169_v50  ;;  %10711 = vmatprep.mubr.bf16.mxu1 %v11576_v29 }
 0x277   :  { %10743 = vmatprep.subr.bf16.mxu1 %v12171_v54 }
 0x27a   :  { %10744 = vmatpush3.bf16.msra.mxu1 %v12171_v54 }
 0x27b   :  { %10745 = vmatprep.subr.bf16.mxu1 %v12179_v58 }
 0x27d   :  { %10712 = vmatmul.mubr.bf16.gmra.mxu1 %v11577_v30 }
 0x27e   :  { %10746 = vmatpush3.bf16.msra.mxu1 %v12179_v58  ;;  %10715 = vmatprep.mubr.bf16.mxu1 %v11578_v31 }
 0x27f   :  { %10747 = vmatprep.subr.bf16.mxu1 %v12185_v0 }
 0x282   :  { %10748 = vmatpush3.bf16.msra.mxu1 %v12185_v0 }
 0x283   :  { %10749 = vmatprep.subr.bf16.mxu1 %v12191_v4 }
 0x285   :  { %10716 = vmatmul.mubr.bf16.gmra.mxu1 %v11579_v32 }
 0x286   :  { %10750 = vmatpush3.bf16.msra.mxu1 %v12191_v4  ;;  %10719 = vmatprep.mubr.bf16.mxu1 %v11580_v49 }
 0x287   :  { %10751 = vmatprep.subr.bf16.mxu1 %v12198_v10 }
 0x28a   :  { %10752 = vmatpush3.bf16.msra.mxu1 %v12198_v10 }
 0x28b   :  { %10753 = vmatprep.subr.bf16.mxu1 %v12205_v13 }
 0x28d   :  { %10720 = vmatmul.mubr.bf16.gmra.mxu1 %v11581_v51 }
 0x28e   :  { %10754 = vmatpush3.bf16.msra.mxu1 %v12205_v13  ;;  %10757 = vmatprep.mubr.bf16.mxu1 %v11582_v52 }
 0x28f   :  { %10755 = vmatprep.subr.bf16.mxu1 %v12211_v16 }
 0x292   :  { %10756 = vmatpush3.bf16.msra.mxu1 %v12211_v16 }
 0x293   :  { %10791 = vmatprep.subr.bf16.mxu1 %v12169_v50 }
 0x295   :  { %10758 = vmatmul.mubr.bf16.vlgmr.msra.gmra.mxu1 %v11583_v53 }
 0x296   :  { %10792 = vmatpush3.bf16.msra.mxu1 %v12169_v50  ;;  %10761 = vmatprep.mubr.bf16.mxu1 %v11584_v55  ;;  %v11596_v55 = vld [vmem:[%s14291_s0 + $0x1e8] sm:$0xff]  }
 0x297   :  { %10793 = vmatprep.subr.bf16.mxu1 %v12171_v54 }
 0x29a   :  { %10794 = vmatpush3.bf16.msra.mxu1 %v12171_v54 }
 0x29b   :  { %10795 = vmatprep.subr.bf16.mxu1 %v12179_v58 }
 0x29d   :  { %10762 = vmatmul.mubr.bf16.gmra.mxu1 %v11585_v56 }
 0x29e   :  { %10796 = vmatpush3.bf16.msra.mxu1 %v12179_v58  ;;  %10765 = vmatprep.mubr.bf16.mxu1 %v11586_v57 }
 0x29f   :  { %10797 = vmatprep.subr.bf16.mxu1 %v12185_v0 }
 0x2a2   :  { %10798 = vmatpush3.bf16.msra.mxu1 %v12185_v0 }
 0x2a3   :  { %10799 = vmatprep.subr.bf16.mxu1 %v12191_v4 }
 0x2a5   :  { %10766 = vmatmul.mubr.bf16.gmra.mxu1 %v11587_v59 }
 0x2a6   :  { %10800 = vmatpush3.bf16.msra.mxu1 %v12191_v4  ;;  %10769 = vmatprep.mubr.bf16.mxu1 %v11588_v60  ;;  %v11598_v60 = vld [vmem:[%s14291_s0 + $0x1f8] sm:$0xff]  }
 0x2a7   :  { %10801 = vmatprep.subr.bf16.mxu1 %v12198_v10 }
 0x2aa   :  { %10802 = vmatpush3.bf16.msra.mxu1 %v12198_v10 }
 0x2ab   :  { %10803 = vmatprep.subr.bf16.mxu1 %v12205_v13 }
 0x2ad   :  { %v10509_v63 = vpop.f32.mrf.mxu1  ;;  %v10527_v1 = vpop.f32.mrf.mxu0  ;;  %10770 = vmatmul.mubr.bf16.gmra.mxu1 %v11589_v61 }
 0x2ae   :  { %v12556_v2 = vadd.f32 %v10527_v1, %v10509_v63  ;;  %10804 = vmatpush3.bf16.msra.mxu1 %v12205_v13  ;;  %10807 = vmatprep.mubr.bf16.mxu1 %v11590_v62 }
 0x2af   :  { %10805 = vmatprep.subr.bf16.mxu1 %v12211_v16  ;;  %v919_v3 = vpop.f32.mrf.mxu1  ;;  %v1046_v5 = vpop.f32.mrf.mxu0 }
 0x2b0   :  { %v12560_v6 = vadd.f32 %v1046_v5, %v919_v3 }
 0x2b1   :  { %v10510_v7 = vpop.f32.mrf.mxu1  ;;  %v10528_v8 = vpop.f32.mrf.mxu0 }
 0x2b2   :  { %v12565_v11 = vadd.f32 %v10528_v8, %v10510_v7  ;;  %10806 = vmatpush3.bf16.msra.mxu1 %v12211_v16  ;;  %v11600_v7 = vld [vmem:[%s14291_s0 + $0x208] sm:$0xff]  }
 0x2b3   :  { %10841 = vmatprep.subr.bf16.mxu1 %v12169_v50  ;;  %v12572_v14 = vpop.f32.mrf.mxu1  ;;  %v12574_v15 = vpop.f32.mrf.mxu0 }
 0x2b5   :  { %v10513_v17 = vpop.f32.mrf.mxu1  ;;  %v10531_v18 = vpop.f32.mrf.mxu0  ;;  %10808 = vmatmul.mubr.bf16.vlgmr.msra.gmra.mxu1 %v11591_v9 }
 0x2b6   :  { %v12576_v19 = vadd.f32 %v10531_v18, %v10513_v17  ;;  %10842 = vmatpush3.bf16.msra.mxu1 %v12169_v50  ;;  %10811 = vmatprep.mubr.bf16.mxu1 %v11592_v12  ;;  %v11595_v50 = vld [vmem:[%s14291_s0 + $0x1e0] sm:$0xff]  }
 0x2b7   :  { %10843 = vmatprep.subr.bf16.mxu1 %v12171_v54  ;;  %v935_v20 = vpop.f32.mrf.mxu1  ;;  %v1062_v21 = vpop.f32.mrf.mxu0 }
 0x2b8   :  { %v12580_v22 = vadd.f32 %v1062_v21, %v935_v20  ;;  %v11602_v20 = vld [vmem:[%s14291_s0 + $0x218] sm:$0xff]   ;;  %v11604_v21 = vld [vmem:[%s14291_s0 + $0x220] sm:$0xff]  }
 0x2b9   :  { %v10514_v24 = vpop.f32.mrf.mxu1  ;;  %v10532_v25 = vpop.f32.mrf.mxu0 }
 0x2ba   :  { %v12585_v27 = vadd.f32 %v10532_v25, %v10514_v24  ;;  %10844 = vmatpush3.bf16.msra.mxu1 %v12171_v54 }
 0x2bb   :  { %10845 = vmatprep.subr.bf16.mxu1 %v12179_v58  ;;  %v12592_v28 = vpop.f32.mrf.mxu1  ;;  %v12594_v29 = vpop.f32.mrf.mxu0 }
 0x2bd   :  { %v10517_v30 = vpop.f32.mrf.mxu1  ;;  %v10535_v31 = vpop.f32.mrf.mxu0  ;;  %10812 = vmatmul.mubr.bf16.gmra.mxu1 %v11593_v26 }
 0x2be   :  { %v12596_v32 = vadd.f32 %v10535_v31, %v10517_v30  ;;  %10846 = vmatpush3.bf16.msra.mxu1 %v12179_v58  ;;  %10815 = vmatprep.mubr.bf16.mxu1 %v11595_v50  ;;  %v11597_v58 = vld [vmem:[%s14291_s0 + $0x1f0] sm:$0xff]   ;;  %v11608_v50 = vld [vmem:[%s14293_s10 + $0x20] sm:$0xff]  }
 0x2bf   :  { %10847 = vmatprep.subr.bf16.mxu1 %v12185_v0  ;;  %v951_v54 = vpop.f32.mrf.mxu1  ;;  %v1078_v49 = vpop.f32.mrf.mxu0 }
 0x2c0   :  { %v12600_v51 = vadd.f32 %v1078_v49, %v951_v54  ;;  %v11605_v54 = vld [vmem:[%s14291_s0 + $0x228] sm:$0xff]   ;;  %v11606_v49 = vld [vmem:[%s14291_s0 + $0x230] sm:$0xff]  }
 0x2c1   :  { %v10518_v52 = vpop.f32.mrf.mxu1  ;;  %v10536_v53 = vpop.f32.mrf.mxu0 }
 0x2c2   :  { %v12605_v56 = vadd.f32 %v10536_v53, %v10518_v52  ;;  %10848 = vmatpush3.bf16.msra.mxu1 %v12185_v0  ;;  %v11599_v0 = vld [vmem:[%s14291_s0 + $0x200] sm:$0xff]  }
 0x2c3   :  { %10849 = vmatprep.subr.bf16.mxu1 %v12191_v4  ;;  %v12612_v57 = vpop.f32.mrf.mxu0  ;;  %v12623_v61 = vpop.f32.mrf.mxu1 }
 0x2c5   :  { %10816 = vmatmul.mubr.bf16.gmra.mxu1 %v11596_v55  ;;  %v10539_v59 = vpop.f32.mrf.mxu0 }
 0x2c6   :  { %10850 = vmatpush3.bf16.msra.mxu1 %v12191_v4  ;;  %10819 = vmatprep.mubr.bf16.mxu1 %v11597_v58 }
 0x2c7   :  { %10851 = vmatprep.subr.bf16.mxu1 %v12198_v10  ;;  %v1094_v62 = vpop.f32.mrf.mxu0 }
 0x2c9   :  { %v10540_v3 = vpop.f32.mrf.mxu0 }
 0x2ca   :  { %10852 = vmatpush3.bf16.msra.mxu1 %v12198_v10 }
 0x2cb   :  { %10853 = vmatprep.subr.bf16.mxu1 %v12205_v13 }
 0x2cd   :  { %v10521_v4 = vpop.f32.mrf.mxu1  ;;  %10820 = vmatmul.mubr.bf16.gmra.mxu1 %v11598_v60  ;;  %v11607_v60 = vld [vmem:[%s14291_s0 + $0x238] sm:$0xff]  }
 0x2ce   :  { %v12626_v63 = vadd.f32 %v10539_v59, %v10521_v4  ;;  %10854 = vmatpush3.bf16.msra.mxu1 %v12205_v13  ;;  %10857 = vmatprep.mubr.bf16.mxu1 %v11599_v0  ;;  %v11601_v13 = vld [vmem:[%s14291_s0 + $0x210] sm:$0xff]   ;;  %s14311_s0 = sld [smem:[#allocation30_spill]] }
 0x2cf   :  { %10855 = vmatprep.subr.bf16.mxu1 %v12211_v16  ;;  %v967_v1 = vpop.f32.mrf.mxu1 }
 0x2d0   :  { %v12630_v10 = vadd.f32 %v1094_v62, %v967_v1 }
 0x2d1   :  { %v10522_v5 = vpop.f32.mrf.mxu1 }
 0x2d2   :  { %v12635_v8 = vadd.f32 %v10540_v3, %v10522_v5  ;;  %10856 = vmatpush3.bf16.msra.mxu1 %v12211_v16 }
 0x2d3   :  { %v12641_v9 = vpop.f32.mrf.mxu1 }
 0x2d5   :  { %v10559_v12 = vpop.f32.mrf.mxu1  ;;  %10858 = vmatmul.mubr.bf16.vlgmr.msra.gmra.mxu1 %v11600_v7 }
 0x2d6   :  { %10861 = vmatprep.mubr.bf16.mxu1 %v11601_v13 }
 0x2d7   :  { %v1208_v17 = vpop.f32.mrf.mxu1 }
 0x2d9   :  { %v10560_v18 = vpop.f32.mrf.mxu1 }
 0x2da   :  { %v1272_v25 = vpack.c.bf16 %v10560_v18, %v10559_v12 }
 0x2db   :  { %v1211_v16 = vpop.f32.mrf.mxu1 }
 0x2dc   :  { %v1271_v24 = vpack.c.bf16 %v1211_v16, %v1208_v17 }
 0x2dd   :  { %v10563_v26 = vpop.f32.mrf.mxu1  ;;  %10862 = vmatmul.mubr.bf16.gmra.mxu1 %v11602_v20 }
 0x2de   :  { %10575 = vmatprep.mubr.msk.bf16.mxu0 %vm860_vm3, %v1271_v24  ;;  %10865 = vmatprep.mubr.bf16.mxu1 %v11604_v21 }
 0x2df   :  { %v1224_v30 = vpop.f32.mrf.mxu1  ;;  %10576 = vmatmul.mubr.msk.bf16.vlgmr.msra.gmra.mxu0 %vm860_vm3, %v1272_v25 }
 0x2e0   :  { %10624 = vmatpush3.bf16.msra.mxu0 %v12455_v23 }
 0x2e1   :  { %v10564_v31 = vpop.f32.mrf.mxu1  ;;  %10673 = vmatprep.subr.bf16.mxu0 %v11608_v50 }
 0x2e2   :  { %v1274_v55 = vpack.c.bf16 %v10564_v31, %v10563_v26  ;;  %v11609_v26 = vld [vmem:[%s14293_s10 + $0x28] sm:$0xff]  }
 0x2e3   :  { %v1227_v52 = vpop.f32.mrf.mxu1 }
 0x2e4   :  { %v1273_v53 = vpack.c.bf16 %v1227_v52, %v1224_v30 }
 0x2e5   :  { %v10567_v58 = vpop.f32.mrf.mxu1  ;;  %10866 = vmatmul.mubr.bf16.gmra.mxu1 %v11605_v54 }
 0x2e6   :  { %10579 = vmatprep.mubr.msk.bf16.mxu0 %vm860_vm3, %v1273_v53  ;;  %10869 = vmatprep.mubr.bf16.mxu1 %v11606_v49 }
 0x2e7   :  { %v1240_v59 = vpop.f32.mrf.mxu1  ;;  %10580 = vmatmul.mubr.msk.bf16.gmra.mxu0 %vm860_vm3, %v1274_v55 }
 0x2e9   :  { %v10568_v23 = vpop.f32.mrf.mxu1 }
 0x2ea   :  { %v1276_v4 = vpack.c.bf16 %v10568_v23, %v10567_v58 }
 0x2eb   :  { %v1243_v0 = vpop.f32.mrf.mxu1 }
 0x2ec   :  { %v1275_v62 = vpack.c.bf16 %v1243_v0, %v1240_v59 }
 0x2ed   :  { %v10571_v1 = vpop.f32.mrf.mxu1  ;;  %10870 = vmatmul.mubr.bf16.gmra.mxu1 %v11607_v60 }
 0x2ee   :  { %10583 = vmatprep.mubr.msk.bf16.mxu0 %vm860_vm3, %v1275_v62 }
 0x2ef   :  { %v1256_v3 = vpop.f32.mrf.mxu1  ;;  %10584 = vmatmul.mubr.msk.bf16.gmra.mxu0 %vm860_vm3, %v1276_v4 }
 0x2f1   :  { %v10572_v5 = vpop.f32.mrf.mxu1 }
 0x2f2   :  { %v1278_v12 = vpack.c.bf16 %v10572_v5, %v10571_v1 }
 0x2f3   :  { %v1259_v7 = vpop.f32.mrf.mxu1 }
 0x2f4   :  { %v1277_v13 = vpack.c.bf16 %v1259_v7, %v1256_v3 }
 0x2f5   :  { %v10609_v17 = vpop.f32.mrf.mxu1 }
 0x2f6   :  { %10587 = vmatprep.mubr.msk.bf16.mxu0 %vm860_vm3, %v1277_v13 }
 0x2f7   :  { %10588 = vmatmul.mubr.msk.bf16.gmra.mxu0 %vm860_vm3, %v1278_v12  ;;  %v1524_v18 = vpop.f32.mrf.mxu1 }
 0x2f9   :  { %v10610_v20 = vpop.f32.mrf.mxu1 }
 0x2fa   :  { %v1588_v24 = vpack.c.bf16 %v10610_v20, %v10609_v17 }
 0x2fb   :  { %v1527_v21 = vpop.f32.mrf.mxu1 }
 0x2fc   :  { %v1587_v16 = vpack.c.bf16 %v1527_v21, %v1524_v18  ;;  %v11610_v21 = vld [vmem:[%s14293_s10 + $0x30] sm:$0xff]  }
 0x2fd   :  { %v10613_v25 = vpop.f32.mrf.mxu1 }
 0x2fe   :  { %10625 = vmatprep.mubr.msk.bf16.mxu0 %vm860_vm3, %v1587_v16 }
 0x2ff   :  { %v1540_v30 = vpop.f32.mrf.mxu1  ;;  %10626 = vmatmul.mubr.msk.bf16.vlgmr.msra.gmra.mxu0 %vm860_vm3, %v1588_v24 }
 0x300   :  { %10674 = vmatpush3.bf16.msra.mxu0 %v11608_v50 }
 0x301   :  { %v10614_v31 = vpop.f32.mrf.mxu1  ;;  %10723 = vmatprep.subr.bf16.mxu0 %v11609_v26 }
 0x302   :  { %v1590_v52 = vpack.c.bf16 %v10614_v31, %v10613_v25 }
 0x303   :  { %v1543_v54 = vpop.f32.mrf.mxu1 }
 0x304   :  { %v1589_v49 = vpack.c.bf16 %v1543_v54, %v1540_v30 }
 0x305   :  { %v10617_v53 = vpop.f32.mrf.mxu1 }
 0x306   :  { %10629 = vmatprep.mubr.msk.bf16.mxu0 %vm860_vm3, %v1589_v49 }
 0x307   :  { %v1556_v55 = vpop.f32.mrf.mxu1  ;;  %10630 = vmatmul.mubr.msk.bf16.gmra.mxu0 %vm860_vm3, %v1590_v52 }
 0x309   :  { %v10618_v58 = vpop.f32.mrf.mxu1 }
 0x30a   :  { %v1592_v60 = vpack.c.bf16 %v10618_v58, %v10617_v53 }
 0x30b   :  { %v1559_v59 = vpop.f32.mrf.mxu1 }
 0x30c   :  { %v1591_v23 = vpack.c.bf16 %v1559_v59, %v1556_v55 }
 0x30d   :  { %v10621_v0 = vpop.f32.mrf.mxu1 }
 0x30e   :  { %10633 = vmatprep.mubr.msk.bf16.mxu0 %vm860_vm3, %v1591_v23 }
 0x30f   :  { %v1572_v62 = vpop.f32.mrf.mxu1  ;;  %10634 = vmatmul.mubr.msk.bf16.gmra.mxu0 %vm860_vm3, %v1592_v60 }
 0x311   :  { %v10622_v50 = vpop.f32.mrf.mxu1 }
 0x312   :  { %v1594_v3 = vpack.c.bf16 %v10622_v50, %v10621_v0 }
 0x313   :  { %v1575_v4 = vpop.f32.mrf.mxu1 }
 0x314   :  { %v1593_v1 = vpack.c.bf16 %v1575_v4, %v1572_v62 }
 0x315   :  { %v10659_v5 = vpop.f32.mrf.mxu1 }
 0x316   :  { %10637 = vmatprep.mubr.msk.bf16.mxu0 %vm860_vm3, %v1593_v1 }
 0x317   :  { %10638 = vmatmul.mubr.msk.bf16.gmra.mxu0 %vm860_vm3, %v1594_v3  ;;  %v1840_v7 = vpop.f32.mrf.mxu1 }
 0x319   :  { %v10660_v13 = vpop.f32.mrf.mxu1 }
 0x31a   :  { %v1904_v18 = vpack.c.bf16 %v10660_v13, %v10659_v5 }
 0x31b   :  { %v1843_v12 = vpop.f32.mrf.mxu1 }
 0x31c   :  { %v1903_v17 = vpack.c.bf16 %v1843_v12, %v1840_v7  ;;  %v11611_v12 = vld [vmem:[%s14293_s10 + $0x38] sm:$0xff]  }
 0x31d   :  { %v10663_v20 = vpop.f32.mrf.mxu1 }
 0x31e   :  { %10675 = vmatprep.mubr.msk.bf16.mxu0 %vm860_vm3, %v1903_v17 }
 0x31f   :  { %v1856_v16 = vpop.f32.mrf.mxu1  ;;  %10676 = vmatmul.mubr.msk.bf16.vlgmr.msra.gmra.mxu0 %vm860_vm3, %v1904_v18 }
 0x320   :  { %10724 = vmatpush3.bf16.msra.mxu0 %v11609_v26 }
 0x321   :  { %v10664_v24 = vpop.f32.mrf.mxu1  ;;  %10773 = vmatprep.subr.bf16.mxu0 %v11610_v21 }
 0x322   :  { %v1906_v31 = vpack.c.bf16 %v10664_v24, %v10663_v20 }
 0x323   :  { %v1859_v25 = vpop.f32.mrf.mxu1 }
 0x324   :  { %v1905_v30 = vpack.c.bf16 %v1859_v25, %v1856_v16 }
 0x325   :  { %v10667_v54 = vpop.f32.mrf.mxu1 }
 0x326   :  { %10679 = vmatprep.mubr.msk.bf16.mxu0 %vm860_vm3, %v1905_v30 }
 0x327   :  { %v1872_v49 = vpop.f32.mrf.mxu1  ;;  %10680 = vmatmul.mubr.msk.bf16.gmra.mxu0 %vm860_vm3, %v1906_v31 }
 0x329   :  { %v10668_v52 = vpop.f32.mrf.mxu1 }
 0x32a   :  { %v1908_v58 = vpack.c.bf16 %v10668_v52, %v10667_v54 }
 0x32b   :  { %v1875_v53 = vpop.f32.mrf.mxu1 }
 0x32c   :  { %v1907_v55 = vpack.c.bf16 %v1875_v53, %v1872_v49 }
 0x32d   :  { %v10671_v59 = vpop.f32.mrf.mxu1 }
 0x32e   :  { %10683 = vmatprep.mubr.msk.bf16.mxu0 %vm860_vm3, %v1907_v55 }
 0x32f   :  { %v1888_v23 = vpop.f32.mrf.mxu1  ;;  %10684 = vmatmul.mubr.msk.bf16.gmra.mxu0 %vm860_vm3, %v1908_v58 }
 0x331   :  { %v10672_v26 = vpop.f32.mrf.mxu1 }
 0x332   :  { %v1910_v62 = vpack.c.bf16 %v10672_v26, %v10671_v59 }
 0x333   :  { %v1891_v60 = vpop.f32.mrf.mxu1 }
 0x334   :  { %v1909_v0 = vpack.c.bf16 %v1891_v60, %v1888_v23 }
 0x335   :  { %v10709_v50 = vpop.f32.mrf.mxu1 }
 0x336   :  { %10687 = vmatprep.mubr.msk.bf16.mxu0 %vm860_vm3, %v1909_v0 }
 0x337   :  { %10688 = vmatmul.mubr.msk.bf16.gmra.mxu0 %vm860_vm3, %v1910_v62  ;;  %v2156_v4 = vpop.f32.mrf.mxu1 }
 0x339   :  { %v10710_v1 = vpop.f32.mrf.mxu1 }
 0x33a   :  { %v2220_v7 = vpack.c.bf16 %v10710_v1, %v10709_v50 }
 0x33b   :  { %v2159_v3 = vpop.f32.mrf.mxu1 }
 0x33c   :  { %v2219_v5 = vpack.c.bf16 %v2159_v3, %v2156_v4  ;;  %v11612_v3 = vld [vmem:[%s14293_s10 + $0x40] sm:$0xff]   ;;  %s14330_s10 = sld [smem:[#allocation23_spill]] }
 0x33d   :  { %v10713_v13 = vpop.f32.mrf.mxu1 }
 0x33e   :  { %10725 = vmatprep.mubr.msk.bf16.mxu0 %vm860_vm3, %v2219_v5 }
 0x33f   :  { %v2172_v17 = vpop.f32.mrf.mxu1  ;;  %10726 = vmatmul.mubr.msk.bf16.vlgmr.msra.gmra.mxu0 %vm860_vm3, %v2220_v7 }
 0x340   :  { %10774 = vmatpush3.bf16.msra.mxu0 %v11610_v21 }
 0x341   :  { %v10714_v18 = vpop.f32.mrf.mxu1  ;;  %10823 = vmatprep.subr.bf16.mxu0 %v11611_v12 }
 0x342   :  { %v2222_v24 = vpack.c.bf16 %v10714_v18, %v10713_v13 }
 0x343   :  { %v2175_v20 = vpop.f32.mrf.mxu1 }
 0x344   :  { %v2221_v16 = vpack.c.bf16 %v2175_v20, %v2172_v17 }
 0x345   :  { %v10717_v25 = vpop.f32.mrf.mxu1 }
 0x346   :  { %10729 = vmatprep.mubr.msk.bf16.mxu0 %vm860_vm3, %v2221_v16 }
 0x347   :  { %v2188_v30 = vpop.f32.mrf.mxu1  ;;  %10730 = vmatmul.mubr.msk.bf16.gmra.mxu0 %vm860_vm3, %v2222_v24 }
 0x349   :  { %v10718_v31 = vpop.f32.mrf.mxu1 }
 0x34a   :  { %v2224_v52 = vpack.c.bf16 %v10718_v31, %v10717_v25 }
 0x34b   :  { %v2191_v54 = vpop.f32.mrf.mxu1 }
 0x34c   :  { %v2223_v49 = vpack.c.bf16 %v2191_v54, %v2188_v30 }
 0x34d   :  { %v10721_v53 = vpop.f32.mrf.mxu1 }
 0x34e   :  { %10733 = vmatprep.mubr.msk.bf16.mxu0 %vm860_vm3, %v2223_v49 }
 0x34f   :  { %v2204_v55 = vpop.f32.mrf.mxu1  ;;  %10734 = vmatmul.mubr.msk.bf16.gmra.mxu0 %vm860_vm3, %v2224_v52 }
 0x351   :  { %v10722_v21 = vpop.f32.mrf.mxu1 }
 0x352   :  { %v2226_v23 = vpack.c.bf16 %v10722_v21, %v10721_v53 }
 0x353   :  { %v2207_v58 = vpop.f32.mrf.mxu1 }
 0x354   :  { %v2225_v59 = vpack.c.bf16 %v2207_v58, %v2204_v55 }
 0x355   :  { %v10759_v26 = vpop.f32.mrf.mxu1 }
 0x356   :  { %10737 = vmatprep.mubr.msk.bf16.mxu0 %vm860_vm3, %v2225_v59 }
 0x357   :  { %10738 = vmatmul.mubr.msk.bf16.gmra.mxu0 %vm860_vm3, %v2226_v23  ;;  %v2472_v60 = vpop.f32.mrf.mxu1 }
 0x359   :  { %v10760_v0 = vpop.f32.mrf.mxu1 }
 0x35a   :  { %v2536_v4 = vpack.c.bf16 %v10760_v0, %v10759_v26 }
 0x35b   :  { %v2475_v62 = vpop.f32.mrf.mxu1 }
 0x35c   :  { %v2535_v50 = vpack.c.bf16 %v2475_v62, %v2472_v60 }
 0x35d   :  { %v10763_v1 = vpop.f32.mrf.mxu1 }
 0x35e   :  { %10775 = vmatprep.mubr.msk.bf16.mxu0 %vm860_vm3, %v2535_v50 }
 0x35f   :  { %v2488_v5 = vpop.f32.mrf.mxu1  ;;  %10776 = vmatmul.mubr.msk.bf16.vlgmr.msra.gmra.mxu0 %vm860_vm3, %v2536_v4 }
 0x360   :  { %10824 = vmatpush3.bf16.msra.mxu0 %v11611_v12 }
 0x361   :  { %v10764_v7 = vpop.f32.mrf.mxu1  ;;  %10873 = vmatprep.subr.bf16.mxu0 %v11612_v3 }
 0x362   :  { %v2538_v18 = vpack.c.bf16 %v10764_v7, %v10763_v1 }
 0x363   :  { %v2491_v13 = vpop.f32.mrf.mxu1 }
 0x364   :  { %v2537_v17 = vpack.c.bf16 %v2491_v13, %v2488_v5 }
 0x365   :  { %v10767_v20 = vpop.f32.mrf.mxu1 }
 0x366   :  { %10779 = vmatprep.mubr.msk.bf16.mxu0 %vm860_vm3, %v2537_v17 }
 0x367   :  { %v2504_v16 = vpop.f32.mrf.mxu1  ;;  %10780 = vmatmul.mubr.msk.bf16.gmra.mxu0 %vm860_vm3, %v2538_v18 }
 0x369   :  { %v10768_v24 = vpop.f32.mrf.mxu1 }
 0x36a   :  { %v2540_v31 = vpack.c.bf16 %v10768_v24, %v10767_v20 }
 0x36b   :  { %v2507_v25 = vpop.f32.mrf.mxu1 }
 0x36c   :  { %v2539_v30 = vpack.c.bf16 %v2507_v25, %v2504_v16 }
 0x36d   :  { %v10771_v54 = vpop.f32.mrf.mxu1 }
 0x36e   :  { %10783 = vmatprep.mubr.msk.bf16.mxu0 %vm860_vm3, %v2539_v30 }
 0x36f   :  { %v2520_v49 = vpop.f32.mrf.mxu1  ;;  %10784 = vmatmul.mubr.msk.bf16.gmra.mxu0 %vm860_vm3, %v2540_v31 }
 0x371   :  { %v10772_v12 = vpop.f32.mrf.mxu1 }
 0x372   :  { %v2542_v55 = vpack.c.bf16 %v10772_v12, %v10771_v54 }
 0x373   :  { %v2523_v52 = vpop.f32.mrf.mxu1 }
 0x374   :  { %v2541_v53 = vpack.c.bf16 %v2523_v52, %v2520_v49 }
 0x375   :  { %v10809_v21 = vpop.f32.mrf.mxu1 }
 0x376   :  { %10787 = vmatprep.mubr.msk.bf16.mxu0 %vm860_vm3, %v2541_v53 }
 0x377   :  { %10788 = vmatmul.mubr.msk.bf16.gmra.mxu0 %vm860_vm3, %v2542_v55  ;;  %v2788_v58 = vpop.f32.mrf.mxu1 }
 0x379   :  { %v10810_v59 = vpop.f32.mrf.mxu1 }
 0x37a   :  { %v2852_v60 = vpack.c.bf16 %v10810_v59, %v10809_v21  ;;  %v12722_v21 = vpop.f32.mrf.mxu0 }
 0x37b   :  { %v2791_v23 = vpop.f32.mrf.mxu1 }
 0x37c   :  { %v2851_v26 = vpack.c.bf16 %v2791_v23, %v2788_v58 }
 0x37d   :  { %v10813_v0 = vpop.f32.mrf.mxu1 }
 0x37e   :  { %10825 = vmatprep.mubr.msk.bf16.mxu0 %vm860_vm3, %v2851_v26 }
 0x37f   :  { %v2804_v62 = vpop.f32.mrf.mxu1  ;;  %10826 = vmatmul.mubr.msk.bf16.vlgmr.msra.gmra.mxu0 %vm860_vm3, %v2852_v60 }
 0x380   :  { %10874 = vmatpush3.bf16.msra.mxu0 %v11612_v3 }
 0x381   :  { %v10814_v50 = vpop.f32.mrf.mxu1 }
 0x382   :  { %v2854_v5 = vpack.c.bf16 %v10814_v50, %v10813_v0 }
 0x383   :  { %v2807_v4 = vpop.f32.mrf.mxu1 }
 0x384   :  { %v2853_v1 = vpack.c.bf16 %v2807_v4, %v2804_v62 }
 0x385   :  { %v10817_v7 = vpop.f32.mrf.mxu1 }
 0x386   :  { %10829 = vmatprep.mubr.msk.bf16.mxu0 %vm860_vm3, %v2853_v1 }
 0x387   :  { %v2820_v13 = vpop.f32.mrf.mxu1  ;;  %10830 = vmatmul.mubr.msk.bf16.gmra.mxu0 %vm860_vm3, %v2854_v5 }
 0x389   :  { %v10818_v17 = vpop.f32.mrf.mxu1 }
 0x38a   :  { %v2856_v16 = vpack.c.bf16 %v10818_v17, %v10817_v7 }
 0x38b   :  { %v2823_v18 = vpop.f32.mrf.mxu1 }
 0x38c   :  { %v2855_v20 = vpack.c.bf16 %v2823_v18, %v2820_v13 }
 0x38d   :  { %v10821_v24 = vpop.f32.mrf.mxu1 }
 0x38e   :  { %10833 = vmatprep.mubr.msk.bf16.mxu0 %vm860_vm3, %v2855_v20 }
 0x38f   :  { %v2836_v25 = vpop.f32.mrf.mxu1  ;;  %10834 = vmatmul.mubr.msk.bf16.gmra.mxu0 %vm860_vm3, %v2856_v16 }
 0x391   :  { %v10822_v3 = vpop.f32.mrf.mxu1 }
 0x392   :  { %v2858_v54 = vpack.c.bf16 %v10822_v3, %v10821_v24 }
 0x393   :  { %v2839_v30 = vpop.f32.mrf.mxu1 }
 0x394   :  { %v2857_v31 = vpack.c.bf16 %v2839_v30, %v2836_v25 }
 0x395   :  { %v10859_v49 = vpop.f32.mrf.mxu1 }
 0x396   :  { %10837 = vmatprep.mubr.msk.bf16.mxu0 %vm860_vm3, %v2857_v31 }
 0x397   :  { %10838 = vmatmul.mubr.msk.bf16.gmra.mxu0 %vm860_vm3, %v2858_v54  ;;  %v3104_v12 = vpop.f32.mrf.mxu1 }
 0x399   :  { %v10860_v52 = vpop.f32.mrf.mxu1 }
 0x39a   :  { %v3168_v58 = vpack.c.bf16 %v10860_v52, %v10859_v49 }
 0x39b   :  { %v3107_v53 = vpop.f32.mrf.mxu1 }
 0x39c   :  { %v3167_v55 = vpack.c.bf16 %v3107_v53, %v3104_v12 }
 0x39d   :  { %v10863_v59 = vpop.f32.mrf.mxu1 }
 0x39e   :  { %10875 = vmatprep.mubr.msk.bf16.mxu0 %vm860_vm3, %v3167_v55 }
 0x39f   :  { %v10577_v23 = vpop.f32.mrf.mxu0  ;;  %v3120_v26 = vpop.f32.mrf.mxu1  ;;  %10876 = vmatmul.mubr.msk.bf16.vlgmr.msra.gmra.mxu0 %vm860_vm3, %v3168_v58 }
 0x3a0   :  { %v1411_v60 = vadd.f32 %v10577_v23, %v12556_v2 }
 0x3a1   :  { %v1346_v0 = vpop.f32.mrf.mxu0  ;;  %v10864_v62 = vpop.f32.mrf.mxu1 }
 0x3a2   :  { %v1409_v50 = vadd.f32 %v1346_v0, %v12560_v6  ;;  %v3170_v13 = vpack.c.bf16 %v10864_v62, %v10863_v59 }
 0x3a3   :  { %v10578_v4 = vpop.f32.mrf.mxu0  ;;  %v3123_v1 = vpop.f32.mrf.mxu1 }
 0x3a4   :  { %v1412_v5 = vadd.f32 %v10578_v4, %v12565_v11  ;;  %v3169_v7 = vpack.c.bf16 %v3123_v1, %v3120_v26 }
 0x3a5   :  { %v12729_v17 = vpop.f32.mrf.mxu0  ;;  %v10867_v18 = vpop.f32.mrf.mxu1 }
 0x3a6   :  { %10879 = vmatprep.mubr.msk.bf16.mxu0 %vm860_vm3, %v3169_v7 }
 0x3a7   :  { %v10581_v20 = vpop.f32.mrf.mxu0  ;;  %v3136_v16 = vpop.f32.mrf.mxu1  ;;  %10880 = vmatmul.mubr.msk.bf16.gmra.mxu0 %vm860_vm3, %v3170_v13 }
 0x3a8   :  { %v1415_v2 = vadd.f32 %v10581_v20, %v12576_v19 }
 0x3a9   :  { %v1362_v24 = vpop.f32.mrf.mxu0  ;;  %v10868_v25 = vpop.f32.mrf.mxu1 }
 0x3aa   :  { %v1413_v6 = vadd.f32 %v1362_v24, %v12580_v22  ;;  %v3172_v54 = vpack.c.bf16 %v10868_v25, %v10867_v18 }
 0x3ab   :  { %v10582_v3 = vpop.f32.mrf.mxu0  ;;  %v3139_v30 = vpop.f32.mrf.mxu1 }
 0x3ac   :  { %v1416_v11 = vadd.f32 %v10582_v3, %v12585_v27  ;;  %v3171_v31 = vpack.c.bf16 %v3139_v30, %v3136_v16 }
 0x3ad   :  { %v12736_v49 = vpop.f32.mrf.mxu0  ;;  %v10871_v12 = vpop.f32.mrf.mxu1 }
 0x3ae   :  { %10883 = vmatprep.mubr.msk.bf16.mxu0 %vm860_vm3, %v3171_v31 }
 0x3af   :  { %v10585_v52 = vpop.f32.mrf.mxu0  ;;  %v3152_v53 = vpop.f32.mrf.mxu1  ;;  %10884 = vmatmul.mubr.msk.bf16.gmra.mxu0 %vm860_vm3, %v3172_v54 }
 0x3b0   :  { %v1419_v19 = vadd.f32 %v10585_v52, %v12596_v32 }
 0x3b1   :  { %v1378_v55 = vpop.f32.mrf.mxu0  ;;  %v10872_v58 = vpop.f32.mrf.mxu1 }
 0x3b2   :  { %v1417_v22 = vadd.f32 %v1378_v55, %v12600_v51  ;;  %v3174_v0 = vpack.c.bf16 %v10872_v58, %v10871_v12 }
 0x3b3   :  { %v10586_v59 = vpop.f32.mrf.mxu0  ;;  %v3155_v23 = vpop.f32.mrf.mxu1 }
 0x3b4   :  { %v1420_v27 = vadd.f32 %v10586_v59, %v12605_v56  ;;  %v3173_v26 = vpack.c.bf16 %v3155_v23, %v3152_v53 }
 0x3b5   :  { %v12743_v62 = vpop.f32.mrf.mxu0 }
 0x3b6   :  { %10887 = vmatprep.mubr.msk.bf16.mxu0 %vm860_vm3, %v3173_v26 }
 0x3b7   :  { %v10589_v4 = vpop.f32.mrf.mxu0  ;;  %10888 = vmatmul.mubr.msk.bf16.gmra.mxu0 %vm860_vm3, %v3174_v0 }
 0x3b8   :  { %v1423_v1 = vadd.f32 %v10589_v4, %v12626_v63 }
 0x3b9   :  { %v1394_v32 = vpop.f32.mrf.mxu0 }
 0x3ba   :  { %v1421_v7 = vadd.f32 %v1394_v32, %v12630_v10 }
 0x3bb   :  { %v10590_v13 = vpop.f32.mrf.mxu0 }
 0x3bc   :  { %v1424_v51 = vadd.f32 %v10590_v13, %v12635_v8 }
 0x3bd   :  { %v12750_v18 = vpop.f32.mrf.mxu0 }
 0x3bf   :  { %v10627_v56 = vpop.f32.mrf.mxu0 }
 0x3c0   :  { %v1727_v20 = vadd.f32 %v10627_v56, %v1411_v60 }
 0x3c1   :  { %v1662_v16 = vpop.f32.mrf.mxu0 }
 0x3c2   :  { %v1725_v24 = vadd.f32 %v1662_v16, %v1409_v50 }
 0x3c3   :  { %v10628_v25 = vpop.f32.mrf.mxu0 }
 0x3c4   :  { %v1728_v3 = vadd.f32 %v10628_v25, %v1412_v5 }
 0x3c5   :  { %v12752_v30 = vpop.f32.mrf.mxu0 }
 0x3c7   :  { %v10631_v31 = vpop.f32.mrf.mxu0 }
 0x3c8   :  { %v1731_v54 = vadd.f32 %v10631_v31, %v1415_v2 }
 0x3c9   :  { %v1678_v12 = vpop.f32.mrf.mxu0 }
 0x3ca   :  { %v1729_v63 = vadd.f32 %v1678_v12, %v1413_v6 }
 0x3cb   :  { %v10632_v52 = vpop.f32.mrf.mxu0 }
 0x3cc   :  { %v1732_v53 = vadd.f32 %v10632_v52, %v1416_v11 }
 0x3cd   :  { %v12754_v10 = vpop.f32.mrf.mxu0 }
 0x3cf   :  { %v10635_v55 = vpop.f32.mrf.mxu0 }
 0x3d0   :  { %v1735_v8 = vadd.f32 %v10635_v55, %v1419_v19 }
 0x3d1   :  { %v1694_v58 = vpop.f32.mrf.mxu0 }
 0x3d2   :  { %v1733_v59 = vadd.f32 %v1694_v58, %v1417_v22 }
 0x3d3   :  { %v10636_v23 = vpop.f32.mrf.mxu0 }
 0x3d4   :  { %v1736_v60 = vadd.f32 %v10636_v23, %v1420_v27 }
 0x3d5   :  { %v12756_v26 = vpop.f32.mrf.mxu0 }
 0x3d7   :  { %v10639_v50 = vpop.f32.mrf.mxu0 }
 0x3d8   :  { %v1739_v5 = vadd.f32 %v10639_v50, %v1423_v1 }
 0x3d9   :  { %v1710_v0 = vpop.f32.mrf.mxu0 }
 0x3da   :  { %v1737_v4 = vadd.f32 %v1710_v0, %v1421_v7 }
 0x3db   :  { %v10640_v32 = vpop.f32.mrf.mxu0 }
 0x3dc   :  { %v1740_v2 = vadd.f32 %v10640_v32, %v1424_v51 }
 0x3dd   :  { %v12758_v13 = vpop.f32.mrf.mxu0 }
 0x3df   :  { %v10677_v6 = vpop.f32.mrf.mxu0 }
 0x3e0   :  { %v2043_v11 = vadd.f32 %v10677_v6, %v1727_v20 }
 0x3e1   :  { %v1978_v56 = vpop.f32.mrf.mxu0 }
 0x3e2   :  { %v2041_v16 = vadd.f32 %v1978_v56, %v1725_v24 }
 0x3e3   :  { %v10678_v25 = vpop.f32.mrf.mxu0 }
 0x3e4   :  { %v2044_v19 = vadd.f32 %v10678_v25, %v1728_v3 }
 0x3e5   :  { %v12760_v31 = vpop.f32.mrf.mxu0 }
 0x3e7   :  { %v10681_v22 = vpop.f32.mrf.mxu0 }
 0x3e8   :  { %v2047_v27 = vadd.f32 %v10681_v22, %v1731_v54 }
 0x3e9   :  { %v1994_v12 = vpop.f32.mrf.mxu0 }
 0x3ea   :  { %v2045_v52 = vadd.f32 %v1994_v12, %v1729_v63 }
 0x3eb   :  { %v10682_v55 = vpop.f32.mrf.mxu0 }
 0x3ec   :  { %v2048_v1 = vadd.f32 %v10682_v55, %v1732_v53 }
 0x3ed   :  { %v12762_v58 = vpop.f32.mrf.mxu0 }
 0x3ef   :  { %v10685_v7 = vpop.f32.mrf.mxu0 }
 0x3f0   :  { %v2051_v51 = vadd.f32 %v10685_v7, %v1735_v8 }
 0x3f1   :  { %v2010_v23 = vpop.f32.mrf.mxu0 }
 0x3f2   :  { %v2049_v50 = vadd.f32 %v2010_v23, %v1733_v59 }
 0x3f3   :  { %v10686_v0 = vpop.f32.mrf.mxu0 }
 0x3f4   :  { %v2052_v20 = vadd.f32 %v10686_v0, %v1736_v60 }
 0x3f5   :  { %v12764_v32 = vpop.f32.mrf.mxu0 }
 0x3f7   :  { %v10689_v24 = vpop.f32.mrf.mxu0 }
 0x3f8   :  { %v2055_v3 = vadd.f32 %v10689_v24, %v1739_v5 }
 0x3f9   :  { %v2026_v6 = vpop.f32.mrf.mxu0 }
 0x3fa   :  { %v2053_v56 = vadd.f32 %v2026_v6, %v1737_v4 }
 0x3fb   :  { %v10690_v25 = vpop.f32.mrf.mxu0 }
 0x3fc   :  { %v2056_v54 = vadd.f32 %v10690_v25, %v1740_v2 }
 0x3fd   :  { %v12766_v22 = vpop.f32.mrf.mxu0 }
 0x3ff   :  { %v10727_v63 = vpop.f32.mrf.mxu0 }
 0x400   :  { %v2359_v53 = vadd.f32 %v10727_v63, %v2043_v11 }
 0x401   :  { %v2294_v12 = vpop.f32.mrf.mxu0 }
 0x402   :  { %v2357_v55 = vadd.f32 %v2294_v12, %v2041_v16 }
 0x403   :  { %v10728_v48 = vpop.f32.mrf.mxu0 }
 0x404   :  { %v2360_v8 = vadd.f32 %v10728_v48, %v2044_v19 }
 0x405   :  { %v12768_v7 = vpop.f32.mrf.mxu0 }
 0x407   :  { %v10731_v59 = vpop.f32.mrf.mxu0 }
 0x408   :  { %v2363_v60 = vadd.f32 %v10731_v59, %v2047_v27 }
 0x409   :  { %v2310_v23 = vpop.f32.mrf.mxu0 }
 0x40a   :  { %v2361_v0 = vadd.f32 %v2310_v23, %v2045_v52 }
 0x40b   :  { %v10732_v47 = vpop.f32.mrf.mxu0 }
 0x40c   :  { %v2364_v5 = vadd.f32 %v10732_v47, %v2048_v1 }
 0x40d   :  { %v12770_v24 = vpop.f32.mrf.mxu0 }
 0x40f   :  { %v10735_v4 = vpop.f32.mrf.mxu0 }
 0x410   :  { %v2367_v2 = vadd.f32 %v10735_v4, %v2051_v51 }
 0x411   :  { %v2326_v6 = vpop.f32.mrf.mxu0 }
 0x412   :  { %v2365_v25 = vadd.f32 %v2326_v6, %v2049_v50 }
 0x413   :  { %v10736_v46 = vpop.f32.mrf.mxu0 }
 0x414   :  { %v2368_v11 = vadd.f32 %v10736_v46, %v2052_v20  ;;  %v11613_v46 = vld [vmem:[%s14302_s29] sm:$0xff]  }
 0x415   :  { %v12772_v63 = vpop.f32.mrf.mxu0  ;;  %10907 = vmatprep.mubr.bf16.mxu0 %v11613_v46 }
 0x417   :  { %v10739_v16 = vpop.f32.mrf.mxu0 }
 0x418   :  { %v2371_v48 = vadd.f32 %v10739_v16, %v2055_v3  ;;  %v11616_v3 = vld [vmem:[%s14253_s13] sm:$0xff]  }
 0x419   :  { %v2342_v19 = vpop.f32.mrf.mxu0  ;;  %10935 = vmatprep.mubr.bf16.mxu1 %v11616_v3 }
 0x41a   :  { %v2369_v12 = vadd.f32 %v2342_v19, %v2053_v56 }
 0x41b   :  { %v10740_v45 = vpop.f32.mrf.mxu0 }
 0x41c   :  { %v12774_v27 = vadd.f32 %v10740_v45, %v2056_v54 }
 0x41d   :  { %v12776_v52 = vpop.f32.mrf.mxu0 }
 0x41e   :  { %14300 = vst [vmem:[#allocation11_spill] sm:$0xff] %v12774_v27  ;;  %14301 = vst [vmem:[#allocation12_spill] sm:$0xff] %v12776_v52 }
 0x41f   :  { %v10777_v47 = vpop.f32.mrf.mxu0 }
 0x420   :  { %v2675_v1 = vadd.f32 %v10777_v47, %v2359_v53 }
 0x421   :  { %v2610_v59 = vpop.f32.mrf.mxu0 }
 0x422   :  { %v2673_v23 = vadd.f32 %v2610_v59, %v2357_v55 }
 0x423   :  { %v10778_v51 = vpop.f32.mrf.mxu0 }
 0x424   :  { %v2676_v50 = vadd.f32 %v10778_v51, %v2360_v8 }
 0x425   :  { %v2613_v20 = vpop.f32.mrf.mxu0 }
 0x427   :  { %v10781_v45 = vpop.f32.mrf.mxu0 }
 0x428   :  { %v2679_v56 = vadd.f32 %v10781_v45, %v2363_v60 }
 0x429   :  { %v2626_v54 = vpop.f32.mrf.mxu0 }
 0x42a   :  { %v2677_v4 = vadd.f32 %v2626_v54, %v2361_v0 }
 0x42b   :  { %v10782_v53 = vpop.f32.mrf.mxu0 }
 0x42c   :  { %v12784_v6 = vadd.f32 %v10782_v53, %v2364_v5 }
 0x42d   :  { %v12786_v55 = vpop.f32.mrf.mxu0 }
 0x42f   :  { %v10785_v16 = vpop.f32.mrf.mxu0 }
 0x430   :  { %v12788_v19 = vadd.f32 %v10785_v16, %v2367_v2 }
 0x431   :  { %v2642_v8 = vpop.f32.mrf.mxu0 }
 0x432   :  { %v12790_v47 = vadd.f32 %v2642_v8, %v2365_v25 }
 0x433   :  { %v10786_v59 = vpop.f32.mrf.mxu0 }
 0x434   :  { %v12792_v51 = vadd.f32 %v10786_v59, %v2368_v11 }
 0x435   :  { %v12794_v46 = vpop.f32.mrf.mxu0 }
 0x437   :  { %v10789_v3 = vpop.f32.mrf.mxu0 }
 0x438   :  { %v12796_v60 = vadd.f32 %v10789_v3, %v2371_v48 }
 0x439   :  { %v2658_v0 = vpop.f32.mrf.mxu0 }
 0x43a   :  { %14303 = vst [vmem:[#allocation13_spill] sm:$0xff] %v12796_v60  ;;  %v12798_v45 = vadd.f32 %v2658_v0, %v2369_v12 }
 0x43b   :  { %v12800_v5 = vpop.f32.mrf.mxu0 }
 0x43c   :  { %14304 = vst [vmem:[#allocation14_spill] sm:$0xff] %v12798_v45  ;;  %14305 = vst [vmem:[#allocation15_spill] sm:$0xff] %v12800_v5 }
 0x43d   :  { %v12802_v54 = vpop.f32.mrf.mxu0 }
 0x43e   :  { %14306 = vst [vmem:[#allocation16_spill] sm:$0xff] %v12802_v54 }
 0x43f   :  { %v10827_v2 = vpop.f32.mrf.mxu0 }
 0x440   :  { %v2991_v53 = vadd.f32 %v10827_v2, %v2675_v1 }
 0x441   :  { %v2926_v16 = vpop.f32.mrf.mxu0 }
 0x442   :  { %v2989_v25 = vadd.f32 %v2926_v16, %v2673_v23  ;;  %v1050_v23 = vadd.f32 %v12574_v15, %v12572_v14  ;;  %v12830_v14 = vld [vmem:[%s14311_s0] ss:$0 sm:$0xff] }
 0x443   :  { %v10828_v8 = vpop.f32.mrf.mxu0  ;;  %v12835_v15 = vld [vmem:[%s14312_s8] ss:$0 sm:$0xff] }
 0x444   :  { %v2992_v44 = vadd.f32 %v10828_v8, %v2676_v50  ;;  %v1066_v8 = vadd.f32 %v12594_v29, %v12592_v28 }
 0x445   :  { %v2929_v11 = vpop.f32.mrf.mxu0 }
 0x447   :  { %v10831_v59 = vpop.f32.mrf.mxu0 }
 0x448   :  { %v2995_v27 = vadd.f32 %v10831_v59, %v2679_v56  ;;  %v1410_v56 = vadd.f32 %v12729_v17, %v1050_v23  ;;  %v1414_v23 = vadd.f32 %v12736_v49, %v1066_v8 }
 0x449   :  { %v2942_v52 = vpop.f32.mrf.mxu0 }
 0x44a   :  { %v2993_v43 = vadd.f32 %v2942_v52, %v2677_v4  ;;  %v1726_v4 = vadd.f32 %v12752_v30, %v1410_v56 }
 0x44b   :  { %v10832_v48 = vpop.f32.mrf.mxu0 }
 0x44c   :  { %v2042_v16 = vadd.f32 %v12760_v31, %v1726_v4  ;;  %v456_v4 = vadd.f32 %v12284_v33, %v12835_v15  ;;  %v459_v33 = vadd.f32 %v12288_v35, %v12835_v15 }
 0x44d   :  { %v2945_v3 = vpop.f32.mrf.mxu0 }
 0x44e   :  { %v2358_v17 = vadd.f32 %v12768_v7, %v2042_v16  ;;  %v448_v7 = vadd.f32 %v12835_v15, %v12286_v34  ;;  %v451_v34 = vadd.f32 %v12835_v15, %v12290_v36  ;;  %v2996_v36 = vadd.f32 %v10832_v48, %v12784_v6 }
 0x44f   :  { %v12804_v60 = vpop.f32.mrf.mxu0 }
 0x450   :  { %v2674_v56 = vadd.f32 %v2613_v20, %v2358_v17 }
 0x451   :  { %v12806_v12 = vpop.f32.mrf.mxu0 }
 0x453   :  { %v12808_v0 = vpop.f32.mrf.mxu0 }
 0x455   :  { %v12810_v54 = vpop.f32.mrf.mxu0 }
 0x457   :  { %v12812_v1 = vpop.f32.mrf.mxu0 }
 0x458   :  { %14307 = vst [vmem:[#allocation17_spill] sm:$0xff] %v12812_v1 }
 0x459   :  { %v12816_v50 = vpop.f32.mrf.mxu0 }
 0x45a   :  { %14308 = vst [vmem:[#allocation18_spill] sm:$0xff] %v12816_v50  ;;  %v2990_v50 = vadd.f32 %v2929_v11, %v2674_v56  ;;  %v475_v56 = vadd.f32 %v12296_v39, %v12835_v15 }
 0x45b   :  { %v12819_v52 = vpop.f32.mrf.mxu0 }
 0x45c   :  { %14309 = vst [vmem:[#allocation19_spill] sm:$0xff] %v12819_v52 }
 0x45d   :  { %v12822_v2 = vpop.f32.mrf.mxu0 }
 0x45e   :  { %14310 = vst [vmem:[#allocation20_spill] sm:$0xff] %v12822_v2  ;;  %v1730_v2 = vadd.f32 %v12754_v10, %v1414_v23 }
 0x45f   :  { %v10877_v59 = vpop.f32.mrf.mxu0 }
 0x460   :  { %v3307_v30 = vadd.f32 %v10877_v59, %v2991_v53  ;;  %v2046_v49 = vadd.f32 %v12762_v58, %v1730_v2  ;;  %v472_v58 = vadd.f32 %v12292_v37, %v12835_v15 }
 0x461   :  { %v3242_v31 = vpop.f32.mrf.mxu0 }
 0x462   :  { %v3330_v28 = vadd.f32 %v12830_v14, %v3307_v30  ;;  %v3305_v29 = vadd.f32 %v3242_v31, %v2989_v25  ;;  %v2362_v10 = vadd.f32 %v12770_v24, %v2046_v49 }
 0x463   :  { %v10878_v52 = vpop.f32.mrf.mxu0 }
 0x464   :  { %v3346_v45 = vmax.f32 %v3330_v28, 0.0  ;;  %v3328_v5 = vadd.f32 %v12830_v14, %v3305_v29  ;;  %v3308_v1 = vadd.f32 %v10878_v52, %v2992_v44 }
 0x465   :  { %v3245_v20 = vpop.f32.mrf.mxu0 }
 0x466   :  { %v3362_v53 = vadd.f32 %v3346_v45, %v456_v4  ;;  %v3344_v16 = vmax.f32 %v3328_v5, 0.0  ;;  %v3331_v25 = vadd.f32 %v12830_v14, %v3308_v1  ;;  %v3306_v8 = vadd.f32 %v3245_v20, %v2990_v50 }
 0x467   :  { %v10881_v11 = vpop.f32.mrf.mxu0  ;;  %v1082_v45 = vadd.f32 %v12612_v57, %v12623_v61  ;;  %v2678_v5 = vadd.f32 %v12786_v55, %v2362_v10  ;;  %v467_v4 = vadd.f32 %v12835_v15, %v12298_v40 }
 0x468   :  { %v3360_v59 = vadd.f32 %v3344_v16, %v448_v7  ;;  %v3347_v17 = vmax.f32 %v3331_v25, 0.0  ;;  %v3329_v44 = vadd.f32 %v12830_v14, %v3306_v8  ;;  %v3311_v52 = vadd.f32 %v10881_v11, %v2995_v27 }
 0x469   :  { %v3258_v35 = vpop.f32.mrf.mxu0  ;;  %v464_v27 = vadd.f32 %v12835_v15, %v12294_v38  ;;  %v1418_v30 = vadd.f32 %v12743_v62, %v1082_v45  ;;  %v2994_v23 = vadd.f32 %v2945_v3, %v2678_v5  ;;  %v2999_v38 = vadd.f32 %v12804_v60, %v12788_v19 }
 0x46a   :  { %v3363_v1 = vadd.f32 %v3347_v17, %v459_v33  ;;  %v3345_v24 = vmax.f32 %v3329_v44, 0.0  ;;  %v3334_v50 = vadd.f32 %v12830_v14, %v3311_v52  ;;  %v3309_v2 = vadd.f32 %v3258_v35, %v2993_v43  ;;  %v14313_v52 = vld [vmem:[#allocation13_spill] sm:$0xff] }
 0x46b   :  { %v10882_v37 = vpop.f32.mrf.mxu0  ;;  %v1734_v43 = vadd.f32 %v12756_v26, %v1418_v30  ;;  %v1098_v7 = vadd.f32 %v12722_v21, %v12641_v9  ;;  %v2997_v19 = vadd.f32 %v12806_v12, %v12790_v47  ;;  %v488_v16 = vadd.f32 %v12300_v41, %v12835_v15 }
 0x46c   :  { %v12864_v31 = vpack.c.bf16 %v3363_v1, %v3362_v53  ;;  %v3361_v57 = vadd.f32 %v3345_v24, %v451_v34  ;;  %v3350_v61 = vmax.f32 %v3334_v50, 0.0  ;;  %v3332_v55 = vadd.f32 %v12830_v14, %v3309_v2  ;;  %v14314_v34 = vld [vmem:[#allocation17_spill] sm:$0xff]  ;;  %v14316_v50 = vld [vmem:[#allocation12_spill] sm:$0xff] }
 0x46d   :  { %v3312_v28 = vadd.f32 %v10882_v37, %v2996_v36  ;;  %v3261_v62 = vpop.f32.mrf.mxu0  ;;  %v2050_v39 = vadd.f32 %v12764_v32, %v1734_v43  ;;  %v1422_v40 = vadd.f32 %v12750_v18, %v1098_v7  ;;  %v3000_v32 = vadd.f32 %v12808_v0, %v12792_v51  ;;  %v14315_v1 = vld [vmem:[#allocation5_spill] sm:$0xff]  ;;  %v14320_v37 = vld [vmem:[#allocation18_spill] sm:$0xff]  ;;  %v14321_v43 = vld [vmem:[#allocation16_spill] sm:$0xff] }
 0x46e   :  { %v12872_v29 = vpack.c.bf16 %v3361_v57, %v3360_v59  ;;  %v3366_v6 = vadd.f32 %v3350_v61, %v472_v58  ;;  %v3348_v48 = vmax.f32 %v3332_v55, 0.0  ;;  %v3310_v3 = vadd.f32 %v3261_v62, %v2994_v23  ;;  %v14319_v23 = vld [vmem:[#allocation14_spill] sm:$0xff] }
 0x46f   :  { %v3335_v26 = vadd.f32 %v12830_v14, %v3312_v28  ;;  %v10885_v49 = vpop.f32.mrf.mxu0  ;;  %v2366_v25 = vadd.f32 %v12772_v63, %v2050_v39  ;;  %v480_v12 = vadd.f32 %v12835_v15, %v12302_v42  ;;  %v1738_v10 = vadd.f32 %v12758_v13, %v1422_v40  ;;  %v14323_v39 = vld [vmem:[#allocation6_spill] sm:$0xff] }
 0x470   :  { %v3364_v60 = vadd.f32 %v3348_v48, %v464_v27  ;;  %v3333_v20 = vadd.f32 %v12830_v14, %v3310_v3  ;;  %v3315_v53 = vadd.f32 %v10885_v49, %v2999_v38  ;;  %v3003_v58 = vadd.f32 %v14314_v34, %v14313_v52  ;;  %v14318_v27 = vld [vmem:[#allocation15_spill] sm:$0xff] }
 0x471   :  { %v3351_v9 = vmax.f32 %v3335_v26, 0.0  ;;  %v3274_v21 = vpop.f32.mrf.mxu0  ;;  %v2682_v41 = vadd.f32 %v12794_v46, %v2366_v25  ;;  %v2054_v51 = vadd.f32 %v12766_v22, %v1738_v10  ;;  %v491_v24 = vadd.f32 %v14315_v1, %v12835_v15  ;;  %v14317_v22 = vld [vmem:[#allocation11_spill] sm:$0xff]  ;;  %v11618_v1 = vld [vmem:[%s14253_s13 + $0x8] sm:$0xff]  }
 0x472   :  { %v3349_v8 = vmax.f32 %v3333_v20, 0.0  ;;  %v3338_v33 = vadd.f32 %v12830_v14, %v3315_v53  ;;  %v3313_v47 = vadd.f32 %v3274_v21, %v2997_v19  ;;  %v3001_v57 = vadd.f32 %v14320_v37, %v14319_v23  ;;  %v14324_v49 = vld [vmem:[#allocation7_spill] sm:$0xff] }
 0x473   :  { %v3367_v11 = vadd.f32 %v3351_v9, %v475_v56  ;;  %v10886_v18 = vpop.f32.mrf.mxu0  ;;  %v2998_v0 = vadd.f32 %v12810_v54, %v2682_v41  ;;  %v2370_v2 = vadd.f32 %v14316_v50, %v2054_v51  ;;  %v2688_v54 = vadd.f32 %v14318_v27, %v14317_v22  ;;  %v11620_v50 = vld [vmem:[%s14254_s14 + $0x10] sm:$0xff]  }
 0x474   :  { %v3365_v59 = vadd.f32 %v3349_v8, %v467_v4  ;;  %v3354_v63 = vmax.f32 %v3338_v33, 0.0  ;;  %v3336_v17 = vadd.f32 %v12830_v14, %v3313_v47  ;;  %v3316_v44 = vadd.f32 %v10886_v18, %v3000_v32  ;;  %v14326_v32 = vld [vmem:[#allocation8_spill] sm:$0xff] }
 0x475   :  { %v12899_v45 = vpack.c.bf16 %v3367_v11, %v3366_v6  ;;  %v3277_v42 = vpop.f32.mrf.mxu0  ;;  %v2686_v38 = vadd.f32 %v14321_v43, %v2370_v2  ;;  %v14322_v6 = vld [vmem:[#allocation19_spill] sm:$0xff]  ;;  %v483_v26 = vadd.f32 %v12835_v15, %v14323_v39  ;;  %v504_v19 = vadd.f32 %v14324_v49, %v12835_v15 }
 0x476   :  { %v12901_v13 = vpack.c.bf16 %v3365_v59, %v3364_v60  ;;  %v3370_v46 = vadd.f32 %v3354_v63, %v488_v16  ;;  %v3352_v5 = vmax.f32 %v3336_v17, 0.0  ;;  %v3339_v35 = vadd.f32 %v12830_v14, %v3316_v44  ;;  %v14325_v60 = vld [vmem:[#allocation20_spill] sm:$0xff]  ;;  %v14327_v59 = vld [vmem:[#allocation9_spill] sm:$0xff] }
 0x477   :  { %v3314_v30 = vadd.f32 %v3277_v42, %v2998_v0  ;;  %v10889_v36 = vpop.f32.mrf.mxu0  ;;  %v3004_v48 = vadd.f32 %v14322_v6, %v2688_v54  ;;  %v3002_v20 = vadd.f32 %v14325_v60, %v2686_v38  ;;  %v496_v8 = vadd.f32 %v12835_v15, %v14326_v32  ;;  %v14328_v0 = vld [vmem:[#allocation10_spill] sm:$0xff]  ;;  %v11622_v43 = vld [vmem:[%s14253_s13 + $0x18] sm:$0xff]  }
 0x478   :  { %v3368_v61 = vadd.f32 %v3352_v5, %v480_v12  ;;  %v3355_v55 = vmax.f32 %v3339_v35, 0.0  ;;  %v3319_v56 = vadd.f32 %v10889_v36, %v3003_v58  ;;  %v507_v63 = vadd.f32 %v14327_v59, %v12835_v15  ;;  %v11614_v35 = vld [vmem:[%s14302_s29 + $0x8] sm:$0xff]   ;;  %v11621_v36 = vld [vmem:[%s14253_s13 + $0x10] sm:$0xff]  }
 0x479   :  { %v3337_v28 = vadd.f32 %v12830_v14, %v3314_v30  ;;  %v3290_v62 = vpop.f32.mrf.mxu0  ;;  %v499_v52 = vadd.f32 %v12835_v15, %v14328_v0  ;;  %v11617_v15 = vld [vmem:[%s14254_s14 + $0x18] sm:$0xff]   ;;  %v11634_v0 = vld [vmem:[%s14254_s14 + $0x40] sm:$0xff]  }
 0x47a   :  { %v3371_v3 = vadd.f32 %v3355_v55, %v491_v24  ;;  %v3342_v4 = vadd.f32 %v12830_v14, %v3319_v56  ;;  %v3317_v7 = vadd.f32 %v3290_v62, %v3001_v57  ;;  %v11619_v24 = vld [vmem:[%s14329_s7] sm:$0xff]   ;;  %v11623_v55 = vld [vmem:[%s14254_s14 + $0x8] sm:$0xff]  }
 0x47b   :  { %v3353_v53 = vmax.f32 %v3337_v28, 0.0  ;;  %v10890_v16 = vpop.f32.mrf.mxu0  ;;  %v11624_v28 = vld [vmem:[%s14254_s14] sm:$0xff]   ;;  %v11625_v62 = vld [vmem:[%s14254_s14 + $0x28] sm:$0xff]  }
 0x47c   :  { %v12920_v40 = vpack.c.bf16 %v3371_v3, %v3370_v46  ;;  %v3358_v25 = vmax.f32 %v3342_v4, 0.0  ;;  %v3340_v9 = vadd.f32 %v12830_v14, %v3317_v7  ;;  %v3320_v21 = vadd.f32 %v10890_v16, %v3004_v48  ;;  %v11626_v48 = vld [vmem:[%s14254_s14 + $0x20] sm:$0xff]  }
 0x47d   :  { %v3369_v33 = vadd.f32 %v3353_v53, %v483_v26  ;;  %v3293_v47 = vpop.f32.mrf.mxu0  ;;  %v11627_v53 = vld [vmem:[%s14253_s13 + $0x20] sm:$0xff]  }
 0x47e   :  { %v3374_v12 = vadd.f32 %v3358_v25, %v504_v19  ;;  %v3356_v10 = vmax.f32 %v3340_v9, 0.0  ;;  %v3343_v41 = vadd.f32 %v12830_v14, %v3320_v21  ;;  %v3318_v11 = vadd.f32 %v3293_v47, %v3002_v20  ;;  %v11629_v25 = vld [vmem:[%s14254_s14 + $0x38] sm:$0xff]   ;;  %v11628_v9 = vld [vmem:[%s14253_s13 + $0x28] sm:$0xff]   ;;  %v11630_v21 = vld [vmem:[%s14254_s14 + $0x30] sm:$0xff]  }
 0x47f   :  { %v12926_v18 = vpack.c.bf16 %v3369_v33, %v3368_v61 }
 0x480   :  { %v3372_v17 = vadd.f32 %v3356_v10, %v496_v8  ;;  %v3359_v44 = vmax.f32 %v3343_v41, 0.0  ;;  %v3341_v51 = vadd.f32 %v12830_v14, %v3318_v11  ;;  %v11615_v14 = vld [vmem:[%s14329_s7 + $0x8] sm:$0xff]  }
 0x482   :  { %v3375_v34 = vadd.f32 %v3359_v44, %v507_v63  ;;  %v3357_v58 = vmax.f32 %v3341_v51, 0.0  ;;  %v11631_v63 = vld [vmem:[%s14253_s13 + $0x30] sm:$0xff]   ;;  %v11633_v44 = vld [vmem:[%s14254_s14 + $0x48] sm:$0xff]   ;;  %v11632_v51 = vld [vmem:[%s14253_s13 + $0x38] sm:$0xff]  }
 0x484   :  { %v12933_v42 = vpack.c.bf16 %v3375_v34, %v3374_v12  ;;  %v3373_v46 = vadd.f32 %v3357_v58, %v499_v52 }
 0x486   :  { %v12935_v5 = vpack.c.bf16 %v3373_v46, %v3372_v17  ;;  %10891 = vmatprep.subr.bf16.mxu0 %v12933_v42  ;;  %10919 = vmatprep.subr.bf16.mxu1 %v12933_v42 }
 0x487   :  { %10892 = vmatpush3.bf16.msra.mxu0 %v12933_v42  ;;  %10920 = vmatpush3.bf16.msra.mxu1 %v12933_v42 }
 0x488   :  { %10893 = vmatprep.subr.bf16.mxu0 %v12935_v5  ;;  %10921 = vmatprep.subr.bf16.mxu1 %v12935_v5 }
 0x48b   :  { %10894 = vmatpush3.bf16.msra.mxu0 %v12935_v5  ;;  %10922 = vmatpush3.bf16.msra.mxu1 %v12935_v5 }
 0x48c   :  { %10895 = vmatprep.subr.bf16.mxu0 %v12920_v40  ;;  %10923 = vmatprep.subr.bf16.mxu1 %v12920_v40 }
 0x48f   :  { %10896 = vmatpush3.bf16.msra.mxu0 %v12920_v40  ;;  %10924 = vmatpush3.bf16.msra.mxu1 %v12920_v40 }
 0x490   :  { %10897 = vmatprep.subr.bf16.mxu0 %v12926_v18  ;;  %10925 = vmatprep.subr.bf16.mxu1 %v12926_v18 }
 0x493   :  { %10898 = vmatpush3.bf16.msra.mxu0 %v12926_v18  ;;  %10926 = vmatpush3.bf16.msra.mxu1 %v12926_v18 }
 0x494   :  { %10899 = vmatprep.subr.bf16.mxu0 %v12899_v45  ;;  %10927 = vmatprep.subr.bf16.mxu1 %v12899_v45 }
 0x497   :  { %10900 = vmatpush3.bf16.msra.mxu0 %v12899_v45  ;;  %10928 = vmatpush3.bf16.msra.mxu1 %v12899_v45 }
 0x498   :  { %10901 = vmatprep.subr.bf16.mxu0 %v12901_v13  ;;  %10929 = vmatprep.subr.bf16.mxu1 %v12901_v13 }
 0x49b   :  { %10902 = vmatpush3.bf16.msra.mxu0 %v12901_v13  ;;  %10930 = vmatpush3.bf16.msra.mxu1 %v12901_v13 }
 0x49c   :  { %10903 = vmatprep.subr.bf16.mxu0 %v12864_v31  ;;  %10931 = vmatprep.subr.bf16.mxu1 %v12864_v31 }
 0x49f   :  { %10904 = vmatpush3.bf16.msra.mxu0 %v12864_v31  ;;  %10932 = vmatpush3.bf16.msra.mxu1 %v12864_v31 }
 0x4a0   :  { %10905 = vmatprep.subr.bf16.mxu0 %v12872_v29  ;;  %10933 = vmatprep.subr.bf16.mxu1 %v12872_v29 }
 0x4a3   :  { %10906 = vmatpush3.bf16.msra.mxu0 %v12872_v29  ;;  %10934 = vmatpush3.bf16.msra.mxu1 %v12872_v29 }
 0x4a4   :  { %10911 = vmatprep.subr.bf16.mxu0 %v11615_v14  ;;  %10959 = vmatprep.subr.bf16.mxu1 %v11617_v15 }
 0x4a6   :  { %10908 = vmatmul.mubr.bf16.vlgmr.msra.gmra.mxu0 %v11614_v35  ;;  %10936 = vmatmul.mubr.bf16.vlgmr.msra.gmra.mxu1 %v11618_v1 }
 0x4a7   :  { %10912 = vmatpush3.bf16.msra.mxu0 %v11615_v14  ;;  %10960 = vmatpush3.bf16.msra.mxu1 %v11617_v15 }
 0x4a8   :  { %10913 = vmatprep.subr.bf16.mxu0 %v11619_v24  ;;  %10961 = vmatprep.subr.bf16.mxu1 %v11620_v50 }
 0x4ab   :  { %10914 = vmatpush3.bf16.msra.mxu0 %v11619_v24  ;;  %10962 = vmatpush3.bf16.msra.mxu1 %v11620_v50 }
 0x4ac   :  { %10939 = vmatprep.subr.bf16.mxu0 %v12933_v42  ;;  %10975 = vmatprep.subr.bf16.mxu1 %v12933_v42 }
 0x566   :  { %v10909_v2 = vpop.f32.mrf.mxu0  ;;  %v10937_v37 = vpop.f32.mrf.mxu1 }
 0x568   :  { %v3434_v22 = vpop.f32.mrf.mxu0  ;;  %v3580_v57 = vpop.f32.mrf.mxu1 }
 0x56a   :  { %v10910_v27 = vpop.f32.mrf.mxu0  ;;  %v10938_v61 = vpop.f32.mrf.mxu1 }
 0x56b   :  { %v3450_v23 = vpack.c.bf16 %v10910_v27, %v10909_v2  ;;  %v3596_v6 = vpack.c.bf16 %v10938_v61, %v10937_v37  ;;  %v11635_v61 = vld [vmem:[%s14253_s13 + $0x40] sm:$0xff]  }
 0x56c   :  { %v3437_v54 = vpop.f32.mrf.mxu0  ;;  %v3583_v56 = vpop.f32.mrf.mxu1 }
 0x56d   :  { %v3449_v30 = vpack.c.bf16 %v3437_v54, %v3434_v22  ;;  %v3595_v38 = vpack.c.bf16 %v3583_v56, %v3580_v57  ;;  %v11637_v56 = vld [vmem:[%s14254_s14 + $0x58] sm:$0xff]  }
 0x56f   :  { %10915 = vmatprep.mubr.msk.bf16.mxu0 %vm3474_vm4, %v3449_v30 }
 0x570   :  { %10916 = vmatmul.mubr.msk.bf16.vlgmr.msra.gmra.mxu0 %vm3474_vm4, %v3450_v23 }
 0x571   :  { %10940 = vmatpush3.bf16.msra.mxu0 %v12933_v42  ;;  %10955 = vmatprep.mubr.bf16.mxu0 %v11621_v36 }
 0x572   :  { %10941 = vmatprep.subr.bf16.mxu0 %v12935_v5 }
 0x575   :  { %10942 = vmatpush3.bf16.msra.mxu0 %v12935_v5 }
 0x576   :  { %10943 = vmatprep.subr.bf16.mxu0 %v12920_v40 }
 0x579   :  { %10944 = vmatpush3.bf16.msra.mxu0 %v12920_v40 }
 0x57a   :  { %10945 = vmatprep.subr.bf16.mxu0 %v12926_v18 }
 0x57d   :  { %10946 = vmatpush3.bf16.msra.mxu0 %v12926_v18 }
 0x57e   :  { %10947 = vmatprep.subr.bf16.mxu0 %v12899_v45 }
 0x581   :  { %10948 = vmatpush3.bf16.msra.mxu0 %v12899_v45 }
 0x582   :  { %10949 = vmatprep.subr.bf16.mxu0 %v12901_v13 }
 0x585   :  { %10950 = vmatpush3.bf16.msra.mxu0 %v12901_v13 }
 0x586   :  { %10951 = vmatprep.subr.bf16.mxu0 %v12864_v31 }
 0x589   :  { %10952 = vmatpush3.bf16.msra.mxu0 %v12864_v31 }
 0x58a   :  { %10953 = vmatprep.subr.bf16.mxu0 %v12872_v29 }
 0x58d   :  { %10954 = vmatpush3.bf16.msra.mxu0 %v12872_v29 }
 0x58e   :  { %10967 = vmatprep.subr.bf16.mxu0 %v11623_v55 }
 0x590   :  { %10956 = vmatmul.mubr.bf16.vlgmr.msra.gmra.mxu0 %v11622_v43  ;;  %v11636_v43 = vld [vmem:[%s14253_s13 + $0x48] sm:$0xff]  }
 0x591   :  { %10968 = vmatpush3.bf16.msra.mxu0 %v11623_v55  ;;  %10971 = vmatprep.mubr.msk.bf16.mxu0 %vm3474_vm4, %v3595_v38  ;;  %v11638_v38 = vld [vmem:[%s14254_s14 + $0x50] sm:$0xff]  }
 0x592   :  { %10969 = vmatprep.subr.bf16.mxu0 %v11624_v28 }
 0x595   :  { %10970 = vmatpush3.bf16.msra.mxu0 %v11624_v28 }
 0x596   :  { %10995 = vmatprep.subr.bf16.mxu0 %v11625_v62 }
 0x598   :  { %10972 = vmatmul.mubr.msk.bf16.vlgmr.msra.gmra.mxu0 %vm3474_vm4, %v3596_v6 }
 0x599   :  { %10996 = vmatpush3.bf16.msra.mxu0 %v11625_v62 }
 0x59a   :  { %10997 = vmatprep.subr.bf16.mxu0 %v11626_v48 }
 0x59d   :  { %10998 = vmatpush3.bf16.msra.mxu0 %v11626_v48 }
 0x59e   :  { %11003 = vmatprep.subr.bf16.mxu0 %v12933_v42 }
 0x630   :  { %v13027_v3 = vpop.f32.mrf.mxu0 }
 0x632   :  { %v13029_v4 = vpop.f32.mrf.mxu0 }
 0x634   :  { %v13031_v7 = vpop.f32.mrf.mxu0 }
 0x636   :  { %v13033_v39 = vpop.f32.mrf.mxu0 }
 0x650   :  { %v10957_v26 = vpop.f32.mrf.mxu0 }
 0x652   :  { %v3652_v49 = vpop.f32.mrf.mxu0 }
 0x654   :  { %v10958_v19 = vpop.f32.mrf.mxu0 }
 0x655   :  { %v3668_v16 = vpack.c.bf16 %v10958_v19, %v10957_v26 }
 0x656   :  { %v3655_v60 = vpop.f32.mrf.mxu0 }
 0x657   :  { %v3667_v20 = vpack.c.bf16 %v3655_v60, %v3652_v49 }
 0x658   :  { %v10973_v52 = vpop.f32.mrf.mxu0 }
 0x659   :  { %10963 = vmatprep.mubr.msk.bf16.mxu1 %vm3474_vm4, %v3667_v20 }
 0x65a   :  { %10964 = vmatmul.mubr.msk.bf16.vlgmr.msra.gmra.mxu1 %vm3474_vm4, %v3668_v16  ;;  %v3793_v34 = vpop.f32.mrf.mxu0 }
 0x65b   :  { %10976 = vmatpush3.bf16.msra.mxu1 %v12933_v42  ;;  %10991 = vmatprep.mubr.bf16.mxu1 %v11627_v53 }
 0x65c   :  { %10977 = vmatprep.subr.bf16.mxu1 %v12935_v5  ;;  %v10974_v58 = vpop.f32.mrf.mxu0 }
 0x65e   :  { %v13097_v46 = vpop.f32.mrf.mxu0 }
 0x65f   :  { %10978 = vmatpush3.bf16.msra.mxu1 %v12935_v5 }
 0x660   :  { %10979 = vmatprep.subr.bf16.mxu1 %v12920_v40 }
 0x663   :  { %10980 = vmatpush3.bf16.msra.mxu1 %v12920_v40 }
 0x664   :  { %10981 = vmatprep.subr.bf16.mxu1 %v12926_v18 }
 0x667   :  { %10982 = vmatpush3.bf16.msra.mxu1 %v12926_v18 }
 0x668   :  { %10983 = vmatprep.subr.bf16.mxu1 %v12899_v45 }
 0x66b   :  { %10984 = vmatpush3.bf16.msra.mxu1 %v12899_v45 }
 0x66c   :  { %10985 = vmatprep.subr.bf16.mxu1 %v12901_v13 }
 0x66f   :  { %10986 = vmatpush3.bf16.msra.mxu1 %v12901_v13 }
 0x670   :  { %10987 = vmatprep.subr.bf16.mxu1 %v12864_v31 }
 0x673   :  { %10988 = vmatpush3.bf16.msra.mxu1 %v12864_v31 }
 0x674   :  { %10989 = vmatprep.subr.bf16.mxu1 %v12872_v29 }
 0x677   :  { %10990 = vmatpush3.bf16.msra.mxu1 %v12872_v29 }
 0x678   :  { %11023 = vmatprep.subr.bf16.mxu1 %v11629_v25 }
 0x67a   :  { %10992 = vmatmul.mubr.bf16.vlgmr.msra.gmra.mxu1 %v11628_v9  ;;  %v11639_v9 = vld [vmem:[%s14253_s13 + $0x50] sm:$0xff]  }
 0x67b   :  { %11024 = vmatpush3.bf16.msra.mxu1 %v11629_v25 }
 0x67c   :  { %11025 = vmatprep.subr.bf16.mxu1 %v11630_v21 }
 0x67f   :  { %11026 = vmatpush3.bf16.msra.mxu1 %v11630_v21 }
 0x680   :  { %11031 = vmatprep.subr.bf16.mxu1 %v12933_v42 }
 0x71a   :  { %v10965_v32 = vpop.f32.mrf.mxu1 }
 0x71b   :  { %v3802_v14 = vadd.f32 %v10973_v52, %v10965_v32  ;;  %v11641_v32 = vld [vmem:[%s14254_s14 + $0x68] sm:$0xff]  }
 0x71c   :  { %v3726_v8 = vpop.f32.mrf.mxu1 }
 0x71d   :  { %v3794_v35 = vadd.f32 %v3793_v34, %v3726_v8  ;;  %v11640_v8 = vld [vmem:[%s14253_s13 + $0x58] sm:$0xff]  }
 0x71e   :  { %v10966_v33 = vpop.f32.mrf.mxu1 }
 0x71f   :  { %v3805_v50 = vadd.f32 %v10974_v58, %v10966_v33  ;;  %v11642_v33 = vld [vmem:[%s14254_s14 + $0x60] sm:$0xff]  }
 0x720   :  { %v13065_v47 = vpop.f32.mrf.mxu1  ;;  %v11643_v58 = vld [vmem:[%s14253_s13 + $0x60] sm:$0xff]  }
 0x73a   :  { %v10993_v12 = vpop.f32.mrf.mxu1 }
 0x73c   :  { %v3859_v10 = vpop.f32.mrf.mxu1 }
 0x73e   :  { %v10994_v41 = vpop.f32.mrf.mxu1 }
 0x73f   :  { %v3875_v17 = vpack.c.bf16 %v10994_v41, %v10993_v12 }
 0x740   :  { %v3862_v11 = vpop.f32.mrf.mxu1 }
 0x741   :  { %v3874_v59 = vpack.c.bf16 %v3862_v11, %v3859_v10 }
 0x743   :  { %10999 = vmatprep.mubr.msk.bf16.mxu0 %vm3474_vm4, %v3874_v59 }
 0x744   :  { %11000 = vmatmul.mubr.msk.bf16.vlgmr.msra.gmra.mxu0 %vm3474_vm4, %v3875_v17 }
 0x745   :  { %11004 = vmatpush3.bf16.msra.mxu0 %v12933_v42  ;;  %11019 = vmatprep.mubr.bf16.mxu0 %v11631_v63 }
 0x746   :  { %11005 = vmatprep.subr.bf16.mxu0 %v12935_v5 }
 0x749   :  { %11006 = vmatpush3.bf16.msra.mxu0 %v12935_v5 }
 0x74a   :  { %11007 = vmatprep.subr.bf16.mxu0 %v12920_v40 }
 0x74d   :  { %11008 = vmatpush3.bf16.msra.mxu0 %v12920_v40 }
 0x74e   :  { %11009 = vmatprep.subr.bf16.mxu0 %v12926_v18 }
 0x751   :  { %11010 = vmatpush3.bf16.msra.mxu0 %v12926_v18 }
 0x752   :  { %11011 = vmatprep.subr.bf16.mxu0 %v12899_v45 }
 0x755   :  { %11012 = vmatpush3.bf16.msra.mxu0 %v12899_v45 }
 0x756   :  { %11013 = vmatprep.subr.bf16.mxu0 %v12901_v13 }
 0x759   :  { %11014 = vmatpush3.bf16.msra.mxu0 %v12901_v13 }
 0x75a   :  { %11015 = vmatprep.subr.bf16.mxu0 %v12864_v31 }
 0x75d   :  { %11016 = vmatpush3.bf16.msra.mxu0 %v12864_v31 }
 0x75e   :  { %11017 = vmatprep.subr.bf16.mxu0 %v12872_v29 }
 0x761   :  { %11018 = vmatpush3.bf16.msra.mxu0 %v12872_v29 }
 0x762   :  { %11051 = vmatprep.subr.bf16.mxu0 %v11633_v44 }
 0x764   :  { %11020 = vmatmul.mubr.bf16.vlgmr.msra.gmra.mxu0 %v11632_v51 }
 0x765   :  { %11052 = vmatpush3.bf16.msra.mxu0 %v11633_v44 }
 0x766   :  { %11053 = vmatprep.subr.bf16.mxu0 %v11634_v0 }
 0x769   :  { %11054 = vmatpush3.bf16.msra.mxu0 %v11634_v0 }
 0x76a   :  { %11059 = vmatprep.subr.bf16.mxu0 %v12933_v42 }
 0x804   :  { %v11001_v15 = vpop.f32.mrf.mxu0 }
 0x805   :  { %v3950_v1 = vadd.f32 %v11001_v15, %v3802_v14  ;;  %v11645_v15 = vld [vmem:[%s14254_s14 + $0x78] sm:$0xff]  }
 0x806   :  { %v3933_v24 = vpop.f32.mrf.mxu0 }
 0x807   :  { %v3948_v2 = vadd.f32 %v3933_v24, %v3794_v35  ;;  %v11644_v35 = vld [vmem:[%s14253_s13 + $0x68] sm:$0xff]  }
 0x808   :  { %v11002_v22 = vpop.f32.mrf.mxu0 }
 0x809   :  { %v3951_v27 = vadd.f32 %v11002_v22, %v3805_v50 }
 0x80a   :  { %v13099_v54 = vpop.f32.mrf.mxu0 }
 0x824   :  { %v11021_v30 = vpop.f32.mrf.mxu0 }
 0x826   :  { %v4003_v36 = vpop.f32.mrf.mxu0 }
 0x828   :  { %v11022_v23 = vpop.f32.mrf.mxu0 }
 0x829   :  { %v4019_v55 = vpack.c.bf16 %v11022_v23, %v11021_v30 }
 0x82a   :  { %v4006_v37 = vpop.f32.mrf.mxu0 }
 0x82b   :  { %v4018_v57 = vpack.c.bf16 %v4006_v37, %v4003_v36 }
 0x82d   :  { %11027 = vmatprep.mubr.msk.bf16.mxu1 %vm3474_vm4, %v4018_v57 }
 0x82e   :  { %11028 = vmatmul.mubr.msk.bf16.vlgmr.msra.gmra.mxu1 %vm3474_vm4, %v4019_v55 }
 0x82f   :  { %11032 = vmatpush3.bf16.msra.mxu1 %v12933_v42  ;;  %11047 = vmatprep.mubr.bf16.mxu1 %v11635_v61 }
 0x830   :  { %11033 = vmatprep.subr.bf16.mxu1 %v12935_v5 }
 0x833   :  { %11034 = vmatpush3.bf16.msra.mxu1 %v12935_v5 }
 0x834   :  { %11035 = vmatprep.subr.bf16.mxu1 %v12920_v40 }
 0x837   :  { %11036 = vmatpush3.bf16.msra.mxu1 %v12920_v40 }
 0x838   :  { %11037 = vmatprep.subr.bf16.mxu1 %v12926_v18 }
 0x83b   :  { %11038 = vmatpush3.bf16.msra.mxu1 %v12926_v18 }
 0x83c   :  { %11039 = vmatprep.subr.bf16.mxu1 %v12899_v45 }
 0x83f   :  { %11040 = vmatpush3.bf16.msra.mxu1 %v12899_v45 }
 0x840   :  { %11041 = vmatprep.subr.bf16.mxu1 %v12901_v13 }
 0x843   :  { %11042 = vmatpush3.bf16.msra.mxu1 %v12901_v13 }
 0x844   :  { %11043 = vmatprep.subr.bf16.mxu1 %v12864_v31 }
 0x847   :  { %11044 = vmatpush3.bf16.msra.mxu1 %v12864_v31 }
 0x848   :  { %11045 = vmatprep.subr.bf16.mxu1 %v12872_v29 }
 0x84b   :  { %11046 = vmatpush3.bf16.msra.mxu1 %v12872_v29 }
 0x84c   :  { %11079 = vmatprep.subr.bf16.mxu1 %v11637_v56 }
 0x84e   :  { %11048 = vmatmul.mubr.bf16.vlgmr.msra.gmra.mxu1 %v11636_v43 }
 0x84f   :  { %11080 = vmatpush3.bf16.msra.mxu1 %v11637_v56  ;;  %v11647_v56 = vld [vmem:[%s14253_s13 + $0x70] sm:$0xff]  }
 0x850   :  { %11081 = vmatprep.subr.bf16.mxu1 %v11638_v38 }
 0x853   :  { %11082 = vmatpush3.bf16.msra.mxu1 %v11638_v38  ;;  %v11648_v38 = vld [vmem:[%s14253_s13 + $0x78] sm:$0xff]  }
 0x854   :  { %11087 = vmatprep.subr.bf16.mxu1 %v12933_v42 }
 0x8ee   :  { %v11029_v28 = vpop.f32.mrf.mxu1 }
 0x8ef   :  { %v4094_v62 = vadd.f32 %v11029_v28, %v3950_v1  ;;  %v11646_v1 = vld [vmem:[%s14254_s14 + $0x70] sm:$0xff]  }
 0x8f0   :  { %v4077_v6 = vpop.f32.mrf.mxu1 }
 0x8f1   :  { %v4092_v48 = vadd.f32 %v4077_v6, %v3948_v2 }
 0x8f2   :  { %v11030_v26 = vpop.f32.mrf.mxu1 }
 0x8f3   :  { %v4095_v49 = vadd.f32 %v11030_v26, %v3951_v27 }
 0x8f4   :  { %v13131_v19 = vpop.f32.mrf.mxu1 }
 0x90e   :  { %v11049_v60 = vpop.f32.mrf.mxu1 }
 0x910   :  { %v4147_v20 = vpop.f32.mrf.mxu1 }
 0x912   :  { %v11050_v53 = vpop.f32.mrf.mxu1 }
 0x913   :  { %v4163_v21 = vpack.c.bf16 %v11050_v53, %v11049_v60 }
 0x914   :  { %v4150_v16 = vpop.f32.mrf.mxu1 }
 0x915   :  { %v4162_v25 = vpack.c.bf16 %v4150_v16, %v4147_v20 }
 0x917   :  { %11055 = vmatprep.mubr.msk.bf16.mxu0 %vm3474_vm4, %v4162_v25 }
 0x918   :  { %11056 = vmatmul.mubr.msk.bf16.vlgmr.msra.gmra.mxu0 %vm3474_vm4, %v4163_v21  ;;  %v11649_v21 = vld [vmem:[%s14253_s13 + $0x80] sm:$0xff]  }
 0x919   :  { %11060 = vmatpush3.bf16.msra.mxu0 %v12933_v42  ;;  %11075 = vmatprep.mubr.bf16.mxu0 %v11639_v9 }
 0x91a   :  { %11061 = vmatprep.subr.bf16.mxu0 %v12935_v5 }
 0x91d   :  { %11062 = vmatpush3.bf16.msra.mxu0 %v12935_v5 }
 0x91e   :  { %11063 = vmatprep.subr.bf16.mxu0 %v12920_v40 }
 0x921   :  { %11064 = vmatpush3.bf16.msra.mxu0 %v12920_v40 }
 0x922   :  { %11065 = vmatprep.subr.bf16.mxu0 %v12926_v18 }
 0x925   :  { %11066 = vmatpush3.bf16.msra.mxu0 %v12926_v18 }
 0x926   :  { %11067 = vmatprep.subr.bf16.mxu0 %v12899_v45 }
 0x929   :  { %11068 = vmatpush3.bf16.msra.mxu0 %v12899_v45 }
 0x92a   :  { %11069 = vmatprep.subr.bf16.mxu0 %v12901_v13 }
 0x92d   :  { %11070 = vmatpush3.bf16.msra.mxu0 %v12901_v13 }
 0x92e   :  { %11071 = vmatprep.subr.bf16.mxu0 %v12864_v31 }
 0x931   :  { %11072 = vmatpush3.bf16.msra.mxu0 %v12864_v31 }
 0x932   :  { %11073 = vmatprep.subr.bf16.mxu0 %v12872_v29 }
 0x935   :  { %11074 = vmatpush3.bf16.msra.mxu0 %v12872_v29 }
 0x936   :  { %11107 = vmatprep.subr.bf16.mxu0 %v11641_v32 }
 0x938   :  { %11076 = vmatmul.mubr.bf16.vlgmr.msra.gmra.mxu0 %v11640_v8 }
 0x939   :  { %11108 = vmatpush3.bf16.msra.mxu0 %v11641_v32 }
 0x93a   :  { %11109 = vmatprep.subr.bf16.mxu0 %v11642_v33 }
 0x93d   :  { %11110 = vmatpush3.bf16.msra.mxu0 %v11642_v33 }
 0x93e   :  { %11115 = vmatprep.subr.bf16.mxu0 %v12933_v42 }
 0x9d8   :  { %v11057_v12 = vpop.f32.mrf.mxu0 }
 0x9d9   :  { %v4238_v10 = vadd.f32 %v11057_v12, %v4094_v62 }
 0x9da   :  { %v4221_v41 = vpop.f32.mrf.mxu0 }
 0x9db   :  { %v4236_v11 = vadd.f32 %v4221_v41, %v4092_v48 }
 0x9dc   :  { %v11058_v59 = vpop.f32.mrf.mxu0 }
 0x9dd   :  { %v4239_v63 = vadd.f32 %v11058_v59, %v4095_v49 }
 0x9de   :  { %v13163_v17 = vpop.f32.mrf.mxu0 }
 0x9f8   :  { %v11077_v44 = vpop.f32.mrf.mxu0 }
 0x9fa   :  { %v4291_v51 = vpop.f32.mrf.mxu0 }
 0x9fc   :  { %v11078_v0 = vpop.f32.mrf.mxu0 }
 0x9fd   :  { %v4307_v14 = vpack.c.bf16 %v11078_v0, %v11077_v44 }
 0x9fe   :  { %v4294_v52 = vpop.f32.mrf.mxu0 }
 0x9ff   :  { %v4306_v34 = vpack.c.bf16 %v4294_v52, %v4291_v51 }
 0xa01   :  { %11083 = vmatprep.mubr.msk.bf16.mxu1 %vm3474_vm4, %v4306_v34  ;;  %v11662_v34 = vld [vmem:[%s14257_s17 + $0x10] sm:$0xff]  }
 0xa02   :  { %11084 = vmatmul.mubr.msk.bf16.vlgmr.msra.gmra.mxu1 %vm3474_vm4, %v4307_v14 }
 0xa03   :  { %11088 = vmatpush3.bf16.msra.mxu1 %v12933_v42  ;;  %11103 = vmatprep.mubr.bf16.mxu1 %v11643_v58 }
 0xa04   :  { %11089 = vmatprep.subr.bf16.mxu1 %v12935_v5 }
 0xa07   :  { %11090 = vmatpush3.bf16.msra.mxu1 %v12935_v5 }
 0xa08   :  { %11091 = vmatprep.subr.bf16.mxu1 %v12920_v40 }
 0xa0b   :  { %11092 = vmatpush3.bf16.msra.mxu1 %v12920_v40 }
 0xa0c   :  { %11093 = vmatprep.subr.bf16.mxu1 %v12926_v18 }
 0xa0f   :  { %11094 = vmatpush3.bf16.msra.mxu1 %v12926_v18 }
 0xa10   :  { %11095 = vmatprep.subr.bf16.mxu1 %v12899_v45 }
 0xa13   :  { %11096 = vmatpush3.bf16.msra.mxu1 %v12899_v45 }
 0xa14   :  { %11097 = vmatprep.subr.bf16.mxu1 %v12901_v13 }
 0xa17   :  { %11098 = vmatpush3.bf16.msra.mxu1 %v12901_v13 }
 0xa18   :  { %11099 = vmatprep.subr.bf16.mxu1 %v12864_v31 }
 0xa1b   :  { %11100 = vmatpush3.bf16.msra.mxu1 %v12864_v31 }
 0xa1c   :  { %11101 = vmatprep.subr.bf16.mxu1 %v12872_v29 }
 0xa1f   :  { %11102 = vmatpush3.bf16.msra.mxu1 %v12872_v29 }
 0xa20   :  { %11135 = vmatprep.subr.bf16.mxu1 %v11645_v15 }
 0xa22   :  { %11104 = vmatmul.mubr.bf16.vlgmr.msra.gmra.mxu1 %v11644_v35 }
 0xa23   :  { %11136 = vmatpush3.bf16.msra.mxu1 %v11645_v15  ;;  %v9365_v15 = vld [vmem:[%s14255_s15] ss:$0 sm:$0xff] }
 0xa24   :  { %11137 = vmatprep.subr.bf16.mxu1 %v11646_v1 }
 0xa27   :  { %11138 = vmatpush3.bf16.msra.mxu1 %v11646_v1 }
 0xa28   :  { %11143 = vmatprep.subr.bf16.mxu1 %v12933_v42 }
 0xac2   :  { %v11085_v24 = vpop.f32.mrf.mxu1 }
 0xac3   :  { %v4382_v50 = vadd.f32 %v11085_v24, %v4238_v10 }
 0xac4   :  { %v4365_v2 = vpop.f32.mrf.mxu1 }
 0xac5   :  { %v4380_v22 = vadd.f32 %v4365_v2, %v4236_v11 }
 0xac6   :  { %v11086_v27 = vpop.f32.mrf.mxu1 }
 0xac7   :  { %v4383_v30 = vadd.f32 %v11086_v27, %v4239_v63 }
 0xac8   :  { %v13195_v36 = vpop.f32.mrf.mxu1 }
 0xae2   :  { %v11105_v23 = vpop.f32.mrf.mxu1 }
 0xae4   :  { %v4435_v37 = vpop.f32.mrf.mxu1 }
 0xae6   :  { %v11106_v57 = vpop.f32.mrf.mxu1 }
 0xae7   :  { %v4451_v43 = vpack.c.bf16 %v11106_v57, %v11105_v23 }
 0xae8   :  { %v4438_v61 = vpop.f32.mrf.mxu1 }
 0xae9   :  { %v4450_v55 = vpack.c.bf16 %v4438_v61, %v4435_v37 }
 0xaeb   :  { %11111 = vmatprep.mubr.msk.bf16.mxu0 %vm3474_vm4, %v4450_v55 }
 0xaec   :  { %11112 = vmatmul.mubr.msk.bf16.vlgmr.msra.gmra.mxu0 %vm3474_vm4, %v4451_v43 }
 0xaed   :  { %11116 = vmatpush3.bf16.msra.mxu0 %v12933_v42  ;;  %11131 = vmatprep.mubr.bf16.mxu0 %v11647_v56 }
 0xaee   :  { %11117 = vmatprep.subr.bf16.mxu0 %v12935_v5 }
 0xaf1   :  { %11118 = vmatpush3.bf16.msra.mxu0 %v12935_v5 }
 0xaf2   :  { %11119 = vmatprep.subr.bf16.mxu0 %v12920_v40 }
 0xaf5   :  { %11120 = vmatpush3.bf16.msra.mxu0 %v12920_v40 }
 0xaf6   :  { %11121 = vmatprep.subr.bf16.mxu0 %v12926_v18 }
 0xaf9   :  { %11122 = vmatpush3.bf16.msra.mxu0 %v12926_v18 }
 0xafa   :  { %11123 = vmatprep.subr.bf16.mxu0 %v12899_v45 }
 0xafd   :  { %11124 = vmatpush3.bf16.msra.mxu0 %v12899_v45 }
 0xafe   :  { %11125 = vmatprep.subr.bf16.mxu0 %v12901_v13 }
 0xb01   :  { %11126 = vmatpush3.bf16.msra.mxu0 %v12901_v13 }
 0xb02   :  { %11127 = vmatprep.subr.bf16.mxu0 %v12864_v31 }
 0xb05   :  { %11128 = vmatpush3.bf16.msra.mxu0 %v12864_v31 }
 0xb06   :  { %11129 = vmatprep.subr.bf16.mxu0 %v12872_v29 }
 0xb09   :  { %11130 = vmatpush3.bf16.msra.mxu0 %v12872_v29 }
 0xb0c   :  { %11132 = vmatmul.mubr.bf16.vlgmr.msra.gmra.mxu0 %v11648_v38  ;;  %v11654_v38 = vld [vmem:[%s14256_s16 + $0x8] sm:$0xff]  }
 0xbac   :  { %v11113_v28 = vpop.f32.mrf.mxu0 }
 0xbad   :  { %v4526_v62 = vadd.f32 %v11113_v28, %v4382_v50  ;;  %v11655_v28 = vld [vmem:[%s14256_s16 + $0x10] sm:$0xff]  }
 0xbae   :  { %v4509_v6 = vpop.f32.mrf.mxu0 }
 0xbaf   :  { %v4524_v48 = vadd.f32 %v4509_v6, %v4380_v22  ;;  %v11656_v6 = vld [vmem:[%s14256_s16 + $0x18] sm:$0xff]  }
 0xbb0   :  { %v11114_v26 = vpop.f32.mrf.mxu0 }
 0xbb1   :  { %v4527_v49 = vadd.f32 %v11114_v26, %v4383_v30  ;;  %v11659_v26 = vld [vmem:[%s14257_s17 + $0x28] sm:$0xff]  }
 0xbb2   :  { %v4512_v60 = vpop.f32.mrf.mxu0 }
 0xbcc   :  { %v11133_v20 = vpop.f32.mrf.mxu0 }
 0xbce   :  { %v4579_v53 = vpop.f32.mrf.mxu0 }
 0xbd0   :  { %v11134_v16 = vpop.f32.mrf.mxu0 }
 0xbd1   :  { %v4595_v32 = vpack.c.bf16 %v11134_v16, %v11133_v20  ;;  %v11664_v20 = vld [vmem:[%s14257_s17] sm:$0xff]  }
 0xbd2   :  { %v4582_v25 = vpop.f32.mrf.mxu0 }
 0xbd3   :  { %v4594_v9 = vpack.c.bf16 %v4582_v25, %v4579_v53  ;;  %v11665_v53 = vld [vmem:[%s14257_s17 + $0x58] sm:$0xff]  }
 0xbd5   :  { %11139 = vmatprep.mubr.msk.bf16.mxu1 %vm3474_vm4, %v4594_v9 }
 0xbd6   :  { %11140 = vmatmul.mubr.msk.bf16.vlgmr.msra.gmra.mxu1 %vm3474_vm4, %v4595_v32 }
 0xbd7   :  { %11144 = vmatpush3.bf16.msra.mxu1 %v12933_v42  ;;  %11159 = vmatprep.mubr.bf16.mxu1 %v11649_v21 }
 0xbd8   :  { %11145 = vmatprep.subr.bf16.mxu1 %v12935_v5 }
 0xbdb   :  { %11146 = vmatpush3.bf16.msra.mxu1 %v12935_v5 }
 0xbdc   :  { %11147 = vmatprep.subr.bf16.mxu1 %v12920_v40 }
 0xbdf   :  { %11148 = vmatpush3.bf16.msra.mxu1 %v12920_v40  ;;  %v11650_v40 = vld [vmem:[%s14253_s13 + $0x88] sm:$0xff]  }
 0xbe0   :  { %11149 = vmatprep.subr.bf16.mxu1 %v12926_v18 }
 0xbe3   :  { %11150 = vmatpush3.bf16.msra.mxu1 %v12926_v18 }
 0xbe4   :  { %11151 = vmatprep.subr.bf16.mxu1 %v12899_v45 }
 0xbe7   :  { %11152 = vmatpush3.bf16.msra.mxu1 %v12899_v45  ;;  %v11651_v45 = vld [vmem:[%s14254_s14 + $0x88] sm:$0xff]  }
 0xbe8   :  { %11153 = vmatprep.subr.bf16.mxu1 %v12901_v13  ;;  %11163 = vmatprep.subr.bf16.mxu0 %v11651_v45 }
 0xbe9   :  { %11164 = vmatpush3.bf16.msra.mxu0 %v11651_v45 }
 0xbeb   :  { %11154 = vmatpush3.bf16.msra.mxu1 %v12901_v13  ;;  %v11652_v13 = vld [vmem:[%s14254_s14 + $0x80] sm:$0xff]  }
 0xbec   :  { %11155 = vmatprep.subr.bf16.mxu1 %v12864_v31  ;;  %11165 = vmatprep.subr.bf16.mxu0 %v11652_v13 }
 0xbed   :  { %11166 = vmatpush3.bf16.msra.mxu0 %v11652_v13  ;;  %v11666_v13 = vld [vmem:[%s14257_s17 + $0x50] sm:$0xff]  }
 0xbef   :  { %11156 = vmatpush3.bf16.msra.mxu1 %v12864_v31  ;;  %v3797_v31 = vadd.f32 %v13097_v46, %v13065_v47 }
 0xbf0   :  { %11157 = vmatprep.subr.bf16.mxu1 %v12872_v29 }
 0xbf1   :  { %v3949_v18 = vadd.f32 %v13099_v54, %v3797_v31 }
 0xbf3   :  { %11158 = vmatpush3.bf16.msra.mxu1 %v12872_v29  ;;  %v4093_v29 = vadd.f32 %v13131_v19, %v3949_v18  ;;  %v11653_v19 = vld [vmem:[%s14256_s16] sm:$0xff]  }
 0xbf5   :  { %v4237_v5 = vadd.f32 %v13163_v17, %v4093_v29  ;;  %v11661_v17 = vld [vmem:[%s14257_s17 + $0x18] sm:$0xff]   ;;  %v11667_v29 = vld [vmem:[%s14257_s17 + $0x48] sm:$0xff]  }
 0xbf6   :  { %11160 = vmatmul.mubr.bf16.vlgmr.msra.gmra.mxu1 %v11650_v40  ;;  %11199 = vmatprep.subr.bf16.mxu1 %v11661_v17 }
 0xbf7   :  { %v4381_v12 = vadd.f32 %v13195_v36, %v4237_v5  ;;  %11200 = vmatpush3.bf16.msra.mxu1 %v11661_v17 }
 0xbf8   :  { %11201 = vmatprep.subr.bf16.mxu1 %v11662_v34 }
 0xbf9   :  { %v4525_v11 = vadd.f32 %v4512_v60, %v4381_v12  ;;  %v11663_v60 = vld [vmem:[%s14257_s17 + $0x8] sm:$0xff]   ;;  %v11669_v12 = vld [vmem:[%s14256_s16 + $0x20] sm:$0xff]  }
 0xbfb   :  { %11202 = vmatpush3.bf16.msra.mxu1 %v11662_v34 }
 0xbfc   :  { %11203 = vmatprep.subr.bf16.mxu1 %v11663_v60 }
 0xbff   :  { %11204 = vmatpush3.bf16.msra.mxu1 %v11663_v60  ;;  %v11687_v60 = vld [vmem:[%s14257_s17 + $0xa8] sm:$0xff]  }
 0xc00   :  { %11205 = vmatprep.subr.bf16.mxu1 %v11664_v20 }
 0xc03   :  { %11206 = vmatpush3.bf16.msra.mxu1 %v11664_v20  ;;  %v11688_v20 = vld [vmem:[%s14257_s17 + $0xa0] sm:$0xff]  }
 0xc04   :  { %11219 = vmatprep.subr.bf16.mxu1 %v11665_v53 }
 0xc96   :  { %v11141_v42 = vpop.f32.mrf.mxu1 }
 0xc97   :  { %v4670_v8 = vadd.f32 %v11141_v42, %v4526_v62  ;;  %v11657_v62 = vld [vmem:[%s14257_s17 + $0x38] sm:$0xff]  }
 0xc98   :  { %v4653_v33 = vpop.f32.mrf.mxu1 }
 0xc99   :  { %v4668_v10 = vadd.f32 %v4653_v33, %v4524_v48  ;;  %v11658_v48 = vld [vmem:[%s14257_s17 + $0x30] sm:$0xff]   ;;  %v11668_v33 = vld [vmem:[%s14257_s17 + $0x40] sm:$0xff]  }
 0xc9a   :  { %v11142_v41 = vpop.f32.mrf.mxu1 }
 0xc9b   :  { %v4671_v59 = vadd.f32 %v11142_v41, %v4527_v49  ;;  %v11660_v49 = vld [vmem:[%s14257_s17 + $0x20] sm:$0xff]   ;;  %v11671_v41 = vld [vmem:[%s14256_s16 + $0x30] sm:$0xff]  }
 0xc9c   :  { %v4656_v63 = vpop.f32.mrf.mxu1 }
 0xc9d   :  { %v4669_v44 = vadd.f32 %v4656_v63, %v4525_v11  ;;  %v11672_v11 = vld [vmem:[%s14257_s17 + $0x78] sm:$0xff]   ;;  %v11674_v63 = vld [vmem:[%s14257_s17 + $0x70] sm:$0xff]  }
 0xcb6   :  { %v11161_v51 = vpop.f32.mrf.mxu1 }
 0xcb8   :  { %v4723_v0 = vpop.f32.mrf.mxu1 }
 0xcba   :  { %v11162_v47 = vpop.f32.mrf.mxu1 }
 0xcbb   :  { %v4739_v52 = vpack.c.bf16 %v11162_v47, %v11161_v51  ;;  %v11676_v51 = vld [vmem:[%s14257_s17 + $0x60] sm:$0xff]  }
 0xcbc   :  { %v4726_v46 = vpop.f32.mrf.mxu1 }
 0xcbd   :  { %v4738_v54 = vpack.c.bf16 %v4726_v46, %v4723_v0 }
 0xcbf   :  { %11167 = vmatprep.mubr.msk.bf16.mxu0 %vm3474_vm4, %v4738_v54 }
 0xcc0   :  { %11168 = vmatmul.mubr.msk.bf16.vlgmr.msra.gmra.mxu0 %vm3474_vm4, %v4739_v52 }
 0xcc1   :  { %11175 = vmatprep.mubr.msk.bf16.mxu0 %vm3474_vm4, %v11653_v19 }
 0xd80   :  { %v11169_v58 = vpop.f32.mrf.mxu0 }
 0xd81   :  { %v4814_v14 = vadd.f32 %v11169_v58, %v4670_v8 }
 0xd82   :  { %v4797_v35 = vpop.f32.mrf.mxu0 }
 0xd83   :  { %v4812_v1 = vadd.f32 %v4797_v35, %v4668_v10  ;;  %v4825_v50 = vadd.f32 %v9365_v15, %v4814_v14  ;;  %v11670_v10 = vld [vmem:[%s14256_s16 + $0x28] sm:$0xff]  }
 0xd84   :  { %v11170_v24 = vpop.f32.mrf.mxu0 }
 0xd85   :  { %v4815_v2 = vadd.f32 %v11170_v24, %v4671_v59  ;;  %v4823_v27 = vadd.f32 %v9365_v15, %v4812_v1  ;;  %v4829_v23 = vmax.f32 %v4825_v50, 0.0  ;;  %v11673_v59 = vld [vmem:[%s14256_s16 + $0x38] sm:$0xff]  }
 0xd86   :  { %v4800_v22 = vpop.f32.mrf.mxu0 }
 0xd87   :  { %v4826_v30 = vadd.f32 %v9365_v15, %v4815_v2  ;;  %v4813_v36 = vadd.f32 %v4800_v22, %v4669_v44  ;;  %v4827_v61 = vmax.f32 %v4823_v27, 0.0  ;;  %v11675_v44 = vld [vmem:[%s14257_s17 + $0x68] sm:$0xff]   ;;  %v11677_v2 = vld [vmem:[%s14256_s16 + $0x40] sm:$0xff]  }
 0xd89   :  { %v4830_v37 = vmax.f32 %v4826_v30, 0.0  ;;  %v4824_v57 = vadd.f32 %v9365_v15, %v4813_v36 }
 0xd8b   :  { %v13270_v55 = vpack.c.bf16 %v4830_v37, %v4829_v23  ;;  %v4828_v56 = vmax.f32 %v4824_v57, 0.0  ;;  %v11678_v23 = vld [vmem:[%s14257_s17 + $0x98] sm:$0xff]  }
 0xd8d   :  { %v13272_v43 = vpack.c.bf16 %v4828_v56, %v4827_v61  ;;  %11171 = vmatprep.subr.bf16.mxu0 %v13270_v55  ;;  %v11679_v61 = vld [vmem:[%s14256_s16 + $0x48] sm:$0xff]  }
 0xd8e   :  { %11172 = vmatpush3.bf16.msra.mxu0 %v13270_v55 }
 0xd8f   :  { %11173 = vmatprep.subr.bf16.mxu0 %v13272_v43 }
 0xd92   :  { %11174 = vmatpush3.bf16.msra.mxu0 %v13272_v43 }
 0xd93   :  { %11179 = vmatprep.subr.bf16.mxu0 %v13270_v55 }
 0xd95   :  { %11176 = vmatmul.mubr.msk.bf16.vlgmr.msra.gmra.mxu0 %vm3474_vm4, %v11654_v38  ;;  %v11680_v38 = vld [vmem:[%s14257_s17 + $0x90] sm:$0xff]  }
 0xd96   :  { %11180 = vmatpush3.bf16.msra.mxu0 %v13270_v55  ;;  %11183 = vmatprep.mubr.msk.bf16.mxu0 %vm3474_vm4, %v11655_v28  ;;  %v11682_v28 = vld [vmem:[%s14256_s16 + $0x50] sm:$0xff]  }
 0xd97   :  { %11181 = vmatprep.subr.bf16.mxu0 %v13272_v43 }
 0xd9a   :  { %11182 = vmatpush3.bf16.msra.mxu0 %v13272_v43 }
 0xd9b   :  { %11187 = vmatprep.subr.bf16.mxu0 %v11657_v62 }
 0xd9d   :  { %11184 = vmatmul.mubr.msk.bf16.vlgmr.msra.gmra.mxu0 %vm3474_vm4, %v11656_v6  ;;  %v11683_v6 = vld [vmem:[%s14257_s17 + $0xb8] sm:$0xff]  }
 0xd9e   :  { %11188 = vmatpush3.bf16.msra.mxu0 %v11657_v62  ;;  %v11681_v62 = vld [vmem:[%s14257_s17 + $0x88] sm:$0xff]  }
 0xd9f   :  { %11189 = vmatprep.subr.bf16.mxu0 %v11658_v48 }
 0xda2   :  { %11190 = vmatpush3.bf16.msra.mxu0 %v11658_v48  ;;  %v11684_v48 = vld [vmem:[%s14256_s16 + $0x58] sm:$0xff]  }
 0xda3   :  { %11191 = vmatprep.subr.bf16.mxu0 %v11659_v26 }
 0xda6   :  { %11192 = vmatpush3.bf16.msra.mxu0 %v11659_v26  ;;  %v11685_v26 = vld [vmem:[%s14257_s17 + $0x80] sm:$0xff]  }
 0xda7   :  { %11193 = vmatprep.subr.bf16.mxu0 %v11660_v49 }
 0xdaa   :  { %11194 = vmatpush3.bf16.msra.mxu0 %v11660_v49  ;;  %v11686_v49 = vld [vmem:[%s14257_s17 + $0xb0] sm:$0xff]  }
 0xdab   :  { %11211 = vmatprep.subr.bf16.mxu0 %v13270_v55 }
 0xe55   :  { %v11177_v16 = vpop.f32.mrf.mxu0 }
 0xe57   :  { %v4887_v25 = vpop.f32.mrf.mxu0 }
 0xe59   :  { %v11178_v9 = vpop.f32.mrf.mxu0 }
 0xe5a   :  { %v4903_v40 = vpack.c.bf16 %v11178_v9, %v11177_v16 }
 0xe5b   :  { %v4890_v21 = vpop.f32.mrf.mxu0 }
 0xe5c   :  { %v4902_v32 = vpack.c.bf16 %v4890_v21, %v4887_v25 }
 0xe5d   :  { %v11185_v45 = vpop.f32.mrf.mxu0 }
 0xe5e   :  { %11207 = vmatprep.mubr.msk.bf16.mxu1 %vm5017_vm5, %v4902_v32 }
 0xe5f   :  { %v4967_v31 = vpop.f32.mrf.mxu0  ;;  %11208 = vmatmul.mubr.msk.bf16.vlgmr.msra.gmra.mxu1 %vm5017_vm5, %v4903_v40 }
 0xe60   :  { %11220 = vmatpush3.bf16.msra.mxu1 %v11665_v53 }
 0xe61   :  { %v11186_v18 = vpop.f32.mrf.mxu0  ;;  %11221 = vmatprep.subr.bf16.mxu1 %v11666_v13 }
 0xe62   :  { %v4983_v8 = vpack.c.bf16 %v11186_v18, %v11185_v45 }
 0xe63   :  { %v4970_v42 = vpop.f32.mrf.mxu0 }
 0xe64   :  { %v4982_v5 = vpack.c.bf16 %v4970_v42, %v4967_v31  ;;  %11222 = vmatpush3.bf16.msra.mxu1 %v11666_v13 }
 0xe65   :  { %11223 = vmatprep.subr.bf16.mxu1 %v11667_v29 }
 0xe66   :  { %11195 = vmatprep.mubr.msk.bf16.mxu0 %vm5017_vm5, %v4982_v5 }
 0xe67   :  { %11196 = vmatmul.mubr.msk.bf16.vlgmr.msra.gmra.mxu0 %vm5017_vm5, %v4983_v8 }
 0xe68   :  { %11212 = vmatpush3.bf16.msra.mxu0 %v13270_v55  ;;  %11224 = vmatpush3.bf16.msra.mxu1 %v11667_v29 }
 0xe69   :  { %11213 = vmatprep.subr.bf16.mxu0 %v13272_v43  ;;  %11225 = vmatprep.subr.bf16.mxu1 %v11668_v33 }
 0xe6a   :  { %11215 = vmatprep.mubr.msk.bf16.mxu0 %vm3474_vm4, %v11669_v12 }
 0xe6c   :  { %11214 = vmatpush3.bf16.msra.mxu0 %v13272_v43  ;;  %11226 = vmatpush3.bf16.msra.mxu1 %v11668_v33 }
 0xe6d   :  { %11231 = vmatprep.subr.bf16.mxu0 %v13270_v55  ;;  %11251 = vmatprep.subr.bf16.mxu1 %v13270_v55 }
 0xe6f   :  { %11216 = vmatmul.mubr.msk.bf16.vlgmr.msra.gmra.mxu0 %vm3474_vm4, %v11670_v10 }
 0xe70   :  { %11232 = vmatpush3.bf16.msra.mxu0 %v13270_v55  ;;  %11235 = vmatprep.mubr.msk.bf16.mxu0 %vm3474_vm4, %v11671_v41 }
 0xe71   :  { %11233 = vmatprep.subr.bf16.mxu0 %v13272_v43 }
 0xe74   :  { %11234 = vmatpush3.bf16.msra.mxu0 %v13272_v43 }
 0xe75   :  { %11239 = vmatprep.subr.bf16.mxu0 %v11672_v11 }
 0xe77   :  { %11236 = vmatmul.mubr.msk.bf16.vlgmr.msra.gmra.mxu0 %vm3474_vm4, %v11673_v59 }
 0xe78   :  { %11240 = vmatpush3.bf16.msra.mxu0 %v11672_v11 }
 0xe79   :  { %11241 = vmatprep.subr.bf16.mxu0 %v11674_v63 }
 0xe7c   :  { %11242 = vmatpush3.bf16.msra.mxu0 %v11674_v63 }
 0xe7d   :  { %11243 = vmatprep.subr.bf16.mxu0 %v11675_v44 }
 0xe80   :  { %11244 = vmatpush3.bf16.msra.mxu0 %v11675_v44 }
 0xe81   :  { %11245 = vmatprep.subr.bf16.mxu0 %v11676_v51 }
 0xe84   :  { %11246 = vmatpush3.bf16.msra.mxu0 %v11676_v51  ;;  %v11689_v51 = vld [vmem:[%s14256_s16 + $0x60] sm:$0xff]  }
 0xe85   :  { %11271 = vmatprep.subr.bf16.mxu0 %v13270_v55 }
 0xf1f   :  { %v11209_v0 = vpop.f32.mrf.mxu1 }
 0xf21   :  { %v5137_v47 = vpop.f32.mrf.mxu1 }
 0xf23   :  { %v11210_v17 = vpop.f32.mrf.mxu1 }
 0xf25   :  { %v5140_v53 = vpop.f32.mrf.mxu1 }
 0xf27   :  { %v11197_v46 = vpop.f32.mrf.mxu0 }
 0xf28   :  { %v13366_v54 = vadd.f32 %v11209_v0, %v11197_v46 }
 0xf29   :  { %v5058_v52 = vpop.f32.mrf.mxu0 }
 0xf2a   :  { %v13368_v19 = vadd.f32 %v5137_v47, %v5058_v52  ;;  %v11690_v52 = vld [vmem:[%s14257_s17 + $0xd8] sm:$0xff]  }
 0xf2b   :  { %v11198_v34 = vpop.f32.mrf.mxu0 }
 0xf2c   :  { %v13370_v58 = vadd.f32 %v11210_v17, %v11198_v34  ;;  %v11691_v34 = vld [vmem:[%s14256_s16 + $0x68] sm:$0xff]  }
 0xf2d   :  { %v13372_v14 = vpop.f32.mrf.mxu0 }
 0xf2e   :  { %v5141_v40 = vadd.f32 %v5140_v53, %v13372_v14  ;;  %v11692_v14 = vld [vmem:[%s14257_s17 + $0xd0] sm:$0xff]  }
 0xf2f   :  { %v11217_v15 = vpop.f32.mrf.mxu0 }
 0xf31   :  { %v5207_v35 = vpop.f32.mrf.mxu0 }
 0xf33   :  { %v11218_v1 = vpop.f32.mrf.mxu0 }
 0xf34   :  { %v5223_v22 = vpack.c.bf16 %v11218_v1, %v11217_v15  ;;  %v11694_v15 = vld [vmem:[%s14256_s16 + $0x70] sm:$0xff]   ;;  %v11695_v1 = vld [vmem:[%s14256_s16 + $0x78] sm:$0xff]  }
 0xf35   :  { %v5210_v24 = vpop.f32.mrf.mxu0 }
 0xf36   :  { %v5222_v50 = vpack.c.bf16 %v5210_v24, %v5207_v35  ;;  %v11693_v35 = vld [vmem:[%s14257_s17 + $0xc8] sm:$0xff]   ;;  %v11696_v24 = vld [vmem:[%s14257_s17 + $0xc0] sm:$0xff]  }
 0xf37   :  { %v11237_v27 = vpop.f32.mrf.mxu0 }
 0xf38   :  { %11227 = vmatprep.mubr.msk.bf16.mxu1 %vm5017_vm5, %v5222_v50  ;;  %v11697_v50 = vld [vmem:[%s14257_s17 + $0xf8] sm:$0xff]  }
 0xf39   :  { %11228 = vmatmul.mubr.msk.bf16.vlgmr.msra.gmra.mxu1 %vm5017_vm5, %v5223_v22  ;;  %v5371_v30 = vpop.f32.mrf.mxu0  ;;  %v11699_v22 = vld [vmem:[%s14257_s17 + $0xe8] sm:$0xff]  }
 0xf3a   :  { %11252 = vmatpush3.bf16.msra.mxu1 %v13270_v55  ;;  %11255 = vmatprep.mubr.msk.bf16.mxu1 %vm3474_vm4, %v11677_v2  ;;  %v11698_v2 = vld [vmem:[%s14257_s17 + $0xf0] sm:$0xff]  }
 0xf3b   :  { %11253 = vmatprep.subr.bf16.mxu1 %v13272_v43  ;;  %v11238_v36 = vpop.f32.mrf.mxu0 }
 0xf3c   :  { %v5387_v37 = vpack.c.bf16 %v11238_v36, %v11237_v27  ;;  %v11700_v27 = vld [vmem:[%s14257_s17 + $0xe0] sm:$0xff]  }
 0xf3d   :  { %v5374_v57 = vpop.f32.mrf.mxu0 }
 0xf3e   :  { %v5386_v56 = vpack.c.bf16 %v5374_v57, %v5371_v30  ;;  %11254 = vmatpush3.bf16.msra.mxu1 %v13272_v43 }
 0xf3f   :  { %11259 = vmatprep.subr.bf16.mxu1 %v11678_v23 }
 0xf40   :  { %11247 = vmatprep.mubr.msk.bf16.mxu0 %vm5017_vm5, %v5386_v56 }
 0xf41   :  { %11248 = vmatmul.mubr.msk.bf16.vlgmr.msra.gmra.mxu0 %vm5017_vm5, %v5387_v37  ;;  %11256 = vmatmul.mubr.msk.bf16.vlgmr.msra.gmra.mxu1 %vm3474_vm4, %v11679_v61 }
 0xf42   :  { %11260 = vmatpush3.bf16.msra.mxu1 %v11678_v23  ;;  %11272 = vmatpush3.bf16.msra.mxu0 %v13270_v55 }
 0xf43   :  { %11273 = vmatprep.subr.bf16.mxu0 %v13272_v43  ;;  %11261 = vmatprep.subr.bf16.mxu1 %v11680_v38 }
 0xf44   :  { %11275 = vmatprep.mubr.msk.bf16.mxu0 %vm3474_vm4, %v11682_v28 }
 0xf46   :  { %11262 = vmatpush3.bf16.msra.mxu1 %v11680_v38  ;;  %11274 = vmatpush3.bf16.msra.mxu0 %v13272_v43 }
 0xf47   :  { %11263 = vmatprep.subr.bf16.mxu1 %v11681_v62  ;;  %11279 = vmatprep.subr.bf16.mxu0 %v11683_v6 }
 0xf49   :  { %11276 = vmatmul.mubr.msk.bf16.vlgmr.msra.gmra.mxu0 %vm3474_vm4, %v11684_v48 }
 0xf4a   :  { %11264 = vmatpush3.bf16.msra.mxu1 %v11681_v62  ;;  %11280 = vmatpush3.bf16.msra.mxu0 %v11683_v6 }
 0xf4b   :  { %11265 = vmatprep.subr.bf16.mxu1 %v11685_v26  ;;  %11281 = vmatprep.subr.bf16.mxu0 %v11686_v49 }
 0xf4e   :  { %11266 = vmatpush3.bf16.msra.mxu1 %v11685_v26  ;;  %11282 = vmatpush3.bf16.msra.mxu0 %v11686_v49 }
 0xf4f   :  { %11291 = vmatprep.subr.bf16.mxu1 %v13270_v55  ;;  %11283 = vmatprep.subr.bf16.mxu0 %v11687_v60 }
 0xf52   :  { %11284 = vmatpush3.bf16.msra.mxu0 %v11687_v60 }
 0xf53   :  { %11285 = vmatprep.subr.bf16.mxu0 %v11688_v20 }
 0xf56   :  { %11286 = vmatpush3.bf16.msra.mxu0 %v11688_v20 }
 0xf57   :  { %11311 = vmatprep.subr.bf16.mxu0 %v13270_v55 }
 0xff9   :  { %v11229_v16 = vpop.f32.mrf.mxu1 }
 0xffa   :  { %v5314_v25 = vadd.f32 %v11229_v16, %v13366_v54 }
 0xffb   :  { %v5297_v9 = vpop.f32.mrf.mxu1 }
 0xffc   :  { %v5312_v21 = vadd.f32 %v5297_v9, %v13368_v19 }
 0xffd   :  { %v11230_v32 = vpop.f32.mrf.mxu1 }
 0xffe   :  { %v5315_v45 = vadd.f32 %v11230_v32, %v13370_v58  ;;  %v11701_v32 = vld [vmem:[%s14256_s16 + $0x80] sm:$0xff]  }
 0xfff   :  { %v5300_v13 = vpop.f32.mrf.mxu1 }
0x1000   :  { %v5313_v31 = vadd.f32 %v5300_v13, %v5141_v40 }
0x1001   :  { %v11249_v18 = vpop.f32.mrf.mxu0  ;;  %v11257_v29 = vpop.f32.mrf.mxu1 }
0x1002   :  { %v5478_v42 = vadd.f32 %v11249_v18, %v5314_v25 }
0x1003   :  { %v5461_v5 = vpop.f32.mrf.mxu0  ;;  %v5535_v8 = vpop.f32.mrf.mxu1 }
0x1004   :  { %v5476_v33 = vadd.f32 %v5461_v5, %v5312_v21 }
0x1005   :  { %v11250_v12 = vpop.f32.mrf.mxu0  ;;  %v11258_v10 = vpop.f32.mrf.mxu1 }
0x1006   :  { %v5479_v41 = vadd.f32 %v11250_v12, %v5315_v45  ;;  %v5551_v0 = vpack.c.bf16 %v11258_v10, %v11257_v29 }
0x1007   :  { %v5464_v11 = vpop.f32.mrf.mxu0  ;;  %v5538_v59 = vpop.f32.mrf.mxu1 }
0x1008   :  { %v5477_v63 = vadd.f32 %v5464_v11, %v5313_v31  ;;  %v5550_v44 = vpack.c.bf16 %v5538_v59, %v5535_v8  ;;  %v11704_v8 = vld [vmem:[%s14257_s17 + $0x110] sm:$0xff]  }
0x1009   :  { %v11277_v47 = vpop.f32.mrf.mxu0 }
0x100a   :  { %11267 = vmatprep.mubr.msk.bf16.mxu1 %vm5017_vm5, %v5550_v44 }
0x100b   :  { %11268 = vmatmul.mubr.msk.bf16.vlgmr.msra.gmra.mxu1 %vm5017_vm5, %v5551_v0  ;;  %v5699_v46 = vpop.f32.mrf.mxu0 }
0x100c   :  { %11292 = vmatpush3.bf16.msra.mxu1 %v13270_v55  ;;  %11295 = vmatprep.mubr.msk.bf16.mxu1 %vm3474_vm4, %v11689_v51 }
0x100d   :  { %11293 = vmatprep.subr.bf16.mxu1 %v13272_v43  ;;  %v11278_v54 = vpop.f32.mrf.mxu0 }
0x100e   :  { %v5715_v19 = vpack.c.bf16 %v11278_v54, %v11277_v47 }
0x100f   :  { %v5702_v17 = vpop.f32.mrf.mxu0 }
0x1010   :  { %v5714_v58 = vpack.c.bf16 %v5702_v17, %v5699_v46  ;;  %11294 = vmatpush3.bf16.msra.mxu1 %v13272_v43  ;;  %v6322_v17 = vld [vmem:[%s14261_s21] sm:$0xff] }
0x1011   :  { %11299 = vmatprep.subr.bf16.mxu1 %v11690_v52 }
0x1012   :  { %11287 = vmatprep.mubr.msk.bf16.mxu0 %vm5017_vm5, %v5714_v58  ;;  %v9553_v58 = vcombine.low %v6322_v17, %v6322_v17 }
0x1013   :  { %11288 = vmatmul.mubr.msk.bf16.vlgmr.msra.gmra.mxu0 %vm5017_vm5, %v5715_v19  ;;  %11296 = vmatmul.mubr.msk.bf16.vlgmr.msra.gmra.mxu1 %vm3474_vm4, %v11691_v34  ;;  %v9554_v34 = vcombine.high %v6322_v17, %v6322_v17  ;;  %v11730_v17 = vld [vmem:[%s14260_s20 + $0x40] ss:$8 sps:$4 sm:$0xff]  }
0x1014   :  { %11300 = vmatpush3.bf16.msra.mxu1 %v11690_v52  ;;  %11312 = vmatpush3.bf16.msra.mxu0 %v13270_v55 }
0x1015   :  { %11313 = vmatprep.subr.bf16.mxu0 %v13272_v43  ;;  %11301 = vmatprep.subr.bf16.mxu1 %v11692_v14 }
0x1016   :  { %11315 = vmatprep.mubr.msk.bf16.mxu0 %vm3474_vm4, %v11694_v15  ;;  %v11940_v15 = vmov 0  }
0x1018   :  { %11302 = vmatpush3.bf16.msra.mxu1 %v11692_v14  ;;  %11314 = vmatpush3.bf16.msra.mxu0 %v13272_v43  ;;  %v6346_v14 = vsel %vm6344_vm6, %v9553_v58, 0 }
0x1019   :  { %11303 = vmatprep.subr.bf16.mxu1 %v11693_v35  ;;  %11319 = vmatprep.subr.bf16.mxu0 %v11697_v50 }
0x101b   :  { %11316 = vmatmul.mubr.msk.bf16.vlgmr.msra.gmra.mxu0 %vm3474_vm4, %v11695_v1  ;;  %v11941_v1 = vmov 0.0  }
0x101c   :  { %11304 = vmatpush3.bf16.msra.mxu1 %v11693_v35  ;;  %11320 = vmatpush3.bf16.msra.mxu0 %v11697_v50  ;;  %v6321_v35 = vld [vmem:[%s14330_s10] sm:$0x1]  ;;  %v11711_v50 = vld [vmem:[%s14260_s20 + $0x34] ss:$8 sps:$4 sm:$0xff]  }
0x101d   :  { %11305 = vmatprep.subr.bf16.mxu1 %v11696_v24  ;;  %11321 = vmatprep.subr.bf16.mxu0 %v11698_v2 }
0x1020   :  { %11306 = vmatpush3.bf16.msra.mxu1 %v11696_v24  ;;  %11322 = vmatpush3.bf16.msra.mxu0 %v11698_v2  ;;  %v11709_v24 = vld [vmem:[%s14260_s20 + $0x30] ss:$8 sps:$4 sm:$0xff]   ;;  %v11712_v2 = vld [vmem:[%s14260_s20 + $0x20] ss:$8 sps:$4 sm:$0xff]  }
0x1021   :  { %11331 = vmatprep.subr.bf16.mxu1 %v13270_v55  ;;  %11323 = vmatprep.subr.bf16.mxu0 %v11699_v22 }
0x1024   :  { %11324 = vmatpush3.bf16.msra.mxu0 %v11699_v22  ;;  %v11714_v22 = vld [vmem:[%s14260_s20 + $0x24] ss:$8 sps:$4 sm:$0xff]  }
0x1025   :  { %11325 = vmatprep.subr.bf16.mxu0 %v11700_v27 }
0x1028   :  { %11326 = vmatpush3.bf16.msra.mxu0 %v11700_v27  ;;  %v11715_v27 = vld [vmem:[%s14260_s20 + $0x10] ss:$8 sps:$4 sm:$0xff]  }
0x1029   :  { %9555 = vmatprep.subr.msk.bf16.mxu0 %vm6344_vm6, %v9554_v34 }
0x10cb   :  { %v11269_v30 = vpop.f32.mrf.mxu1 }
0x10cc   :  { %v5642_v36 = vadd.f32 %v11269_v30, %v5478_v42  ;;  %v11702_v42 = vld [vmem:[%s14256_s16 + $0x88] sm:$0xff]   ;;  %v11717_v30 = vld [vmem:[%s14260_s20 + $0x14] ss:$8 sps:$4 sm:$0xff]  }
0x10cd   :  { %v5625_v23 = vpop.f32.mrf.mxu1 }
0x10ce   :  { %v5640_v37 = vadd.f32 %v5625_v23, %v5476_v33  ;;  %v11706_v33 = vld [vmem:[%s14257_s17 + $0x100] sm:$0xff]  }
0x10cf   :  { %v11270_v57 = vpop.f32.mrf.mxu1  ;;  %v11721_v23 = vld [vmem:[%s14260_s20] ss:$8 sps:$4 sm:$0xff]  }
0x10d0   :  { %v5643_v61 = vadd.f32 %v11270_v57, %v5479_v41 }
0x10d1   :  { %v5628_v56 = vpop.f32.mrf.mxu1 }
0x10d2   :  { %v5641_v38 = vadd.f32 %v5628_v56, %v5477_v63 }
0x10d3   :  { %v11289_v28 = vpop.f32.mrf.mxu0  ;;  %v11297_v62 = vpop.f32.mrf.mxu1 }
0x10d4   :  { %v5806_v6 = vadd.f32 %v11289_v28, %v5642_v36  ;;  %v11723_v36 = vld [vmem:[%s14260_s20 + $0x4] ss:$8 sps:$4 sm:$0xff]   ;;  %v9552_v28 = vld [vmem:[%s14258_s18] ss:$0 sm:$0xff] }
0x10d5   :  { %v5789_v48 = vpop.f32.mrf.mxu0  ;;  %v5863_v26 = vpop.f32.mrf.mxu1 }
0x10d6   :  { %v5804_v49 = vadd.f32 %v5789_v48, %v5640_v37 }
0x10d7   :  { %v11290_v60 = vpop.f32.mrf.mxu0  ;;  %v11298_v20 = vpop.f32.mrf.mxu1 }
0x10d8   :  { %v5807_v53 = vadd.f32 %v11290_v60, %v5643_v61  ;;  %v5879_v40 = vpack.c.bf16 %v11298_v20, %v11297_v62  ;;  %v9242_v62 = vld [vmem:[%s14252_s12] ss:$0 sm:$0xff] }
0x10d9   :  { %v5792_v16 = vpop.f32.mrf.mxu0  ;;  %v5866_v25 = vpop.f32.mrf.mxu1 }
0x10da   :  { %v5805_v9 = vadd.f32 %v5792_v16, %v5641_v38  ;;  %v5878_v21 = vpack.c.bf16 %v5866_v25, %v5863_v26  ;;  %v3524_v16 = vadd.f32 %v13027_v3, %v9242_v62 }
0x10db   :  { %v11317_v45 = vpop.f32.mrf.mxu0 }
0x10dc   :  { %11307 = vmatprep.mubr.msk.bf16.mxu1 %vm5017_vm5, %v5878_v21 }
0x10dd   :  { %11308 = vmatmul.mubr.msk.bf16.vlgmr.msra.gmra.mxu1 %vm5017_vm5, %v5879_v40  ;;  %v6027_v13 = vpop.f32.mrf.mxu0 }
0x10de   :  { %11332 = vmatpush3.bf16.msra.mxu1 %v13270_v55  ;;  %11335 = vmatprep.mubr.msk.bf16.mxu1 %vm3474_vm4, %v11701_v32  ;;  %v11703_v55 = vld [vmem:[%s14257_s17 + $0x118] sm:$0xff]  }
0x10df   :  { %11333 = vmatprep.subr.bf16.mxu1 %v13272_v43  ;;  %v11318_v31 = vpop.f32.mrf.mxu0 }
0x10e0   :  { %v6043_v18 = vpack.c.bf16 %v11318_v31, %v11317_v45  ;;  %v3516_v45 = vadd.f32 %v9242_v62, %v13029_v4  ;;  %v6392_v4 = vld [vmem:[%s14259_s19] sm:$0x1] }
0x10e1   :  { %v6030_v29 = vpop.f32.mrf.mxu0 }
0x10e2   :  { %v6042_v5 = vpack.c.bf16 %v6030_v29, %v6027_v13  ;;  %11334 = vmatpush3.bf16.msra.mxu1 %v13272_v43  ;;  %v11705_v43 = vld [vmem:[%s14257_s17 + $0x108] sm:$0xff]   ;;  %s11943_s17 = smov [#allocation2]  }
0x10e3   :  { %11339 = vmatprep.subr.bf16.mxu1 %v11703_v55 }
0x10e4   :  { %11327 = vmatprep.mubr.msk.bf16.mxu0 %vm5017_vm5, %v6042_v5  ;;  %v3527_v5 = vadd.f32 %v13031_v7, %v9242_v62  ;;  %v11720_v7 = vld [vmem:[%s14260_s20 + $0x74] ss:$8 sps:$4 sm:$0xff]  }
0x10e5   :  { %11328 = vmatmul.mubr.msk.bf16.vlgmr.msra.gmra.mxu0 %vm5017_vm5, %v6043_v18  ;;  %11336 = vmatmul.mubr.msk.bf16.vlgmr.msra.gmra.mxu1 %vm3474_vm4, %v11702_v42 }
0x10e6   :  { %11340 = vmatpush3.bf16.msra.mxu1 %v11703_v55  ;;  %6366 = vmatpush1.bf16.msra.mxu0 %v6346_v14 }
0x10e7   :  { %11341 = vmatprep.subr.bf16.mxu1 %v11704_v8  ;;  %6383 = vmatprep.mubr.bf16.mxu0 %v11940_v15 }
0x10e8   :  { %11351 = vmatprep.subr.bf16.mxu0 %v11941_v1 }
0x10ea   :  { %11342 = vmatpush3.bf16.msra.mxu1 %v11704_v8 }
0x10eb   :  { %11343 = vmatprep.subr.bf16.mxu1 %v11705_v43 }
0x10ed   :  { %9556 = vmatmul.mubr.msk.bf16.vlgmr.msra.gmra.mxu0 %vm6340_vm7, %v6321_v35 }
0x10ee   :  { %11344 = vmatpush3.bf16.msra.mxu1 %v11705_v43  ;;  %11355 = vmatprep.mubr.msk.bf16.mxu0 %vm11942_vm8, %v11941_v1 }
0x10ef   :  { %11345 = vmatprep.subr.bf16.mxu1 %v11706_v33 }
0x10f2   :  { %11346 = vmatpush3.bf16.msra.mxu1 %v11706_v33  ;;  %v3519_v33 = vadd.f32 %v9242_v62, %v13033_v39  ;;  %v9567_v39 = vld [vmem:[%s14259_s19 + $0x1] sm:$0x1]  ;;  %v11739_v62 = vld [vmem:[%s14260_s20 + $0x90] ss:$8 sps:$4 sm:$0xff]  }
0x10f3   :  { %6496 = vmatprep.subr.bf16.mxu1 %v11711_v50 }
0x119d   :  { %v11309_v12 = vpop.f32.mrf.mxu1 }
0x119e   :  { %v5970_v10 = vadd.f32 %v11309_v12, %v5806_v6 }
0x119f   :  { %v5953_v41 = vpop.f32.mrf.mxu1 }
0x11a0   :  { %v5968_v11 = vadd.f32 %v5953_v41, %v5804_v49 }
0x11a1   :  { %v11310_v59 = vpop.f32.mrf.mxu1 }
0x11a2   :  { %v5971_v63 = vadd.f32 %v11310_v59, %v5807_v53  ;;  %v11718_v59 = vld [vmem:[%s14260_s20 + $0x70] ss:$8 sps:$4 sm:$0xff]  }
0x11a3   :  { %v5956_v44 = vpop.f32.mrf.mxu1 }
0x11a4   :  { %v5969_v51 = vadd.f32 %v5956_v44, %v5805_v9  ;;  %v11724_v44 = vld [vmem:[%s14260_s20 + $0x60] ss:$8 sps:$4 sm:$0xff]  }
0x11a5   :  { %v11337_v0 = vpop.f32.mrf.mxu1  ;;  %v11329_v37 = vpop.f32.mrf.mxu0 }
0x11a6   :  { %v6134_v56 = vadd.f32 %v11329_v37, %v5970_v10 }
0x11a7   :  { %v6191_v47 = vpop.f32.mrf.mxu1  ;;  %v6117_v57 = vpop.f32.mrf.mxu0 }
0x11a8   :  { %v6132_v6 = vadd.f32 %v6117_v57, %v5968_v11  ;;  %v11736_v57 = vld [vmem:[%s14260_s20 + $0xa0] ss:$8 sps:$4 sm:$0xff]  }
0x11a9   :  { %v11338_v46 = vpop.f32.mrf.mxu1  ;;  %v11330_v61 = vpop.f32.mrf.mxu0 }
0x11aa   :  { %v6207_v19 = vpack.c.bf16 %v11338_v46, %v11337_v0  ;;  %v6135_v60 = vadd.f32 %v11330_v61, %v5971_v63  ;;  %v11726_v63 = vld [vmem:[%s14260_s20 + $0x64] ss:$8 sps:$4 sm:$0xff]  }
0x11ab   :  { %v6194_v54 = vpop.f32.mrf.mxu1  ;;  %v6120_v26 = vpop.f32.mrf.mxu0 }
0x11ac   :  { %v6206_v52 = vpack.c.bf16 %v6194_v54, %v6191_v47  ;;  %v6133_v9 = vadd.f32 %v6120_v26, %v5969_v51  ;;  %v11729_v54 = vld [vmem:[%s14260_s20 + $0x54] ss:$8 sps:$4 sm:$0xff]   ;;  %v11750_v26 = vld [vmem:[%s14260_s20 + $0xe4] ss:$8 sps:$4 sm:$0xff]  }
0x11ad   :  { %v13592_v51 = vpop.f32.mrf.mxu0 }
0x11ae   :  { %11347 = vmatprep.mubr.msk.bf16.mxu1 %vm5017_vm5, %v6206_v52  ;;  %v11727_v52 = vld [vmem:[%s14260_s20 + $0x50] ss:$8 sps:$4 sm:$0xff]  }
0x11af   :  { %11348 = vmatmul.mubr.msk.bf16.vlgmr.msra.gmra.mxu1 %vm5017_vm5, %v6207_v19  ;;  %v13594_v0 = vpop.f32.mrf.mxu0  ;;  %v11732_v19 = vld [vmem:[%s14260_s20 + $0x44] ss:$8 sps:$4 sm:$0xff]  }
0x11b0   :  { %6520 = vmatprep.mubr.bf16.mxu1 %v11940_v15  ;;  %6497 = vmatpush1.bf16.msra.mxu1 %v11709_v24  ;;  %v11735_v24 = vld [vmem:[%s14260_s20 + $0xb4] ss:$8 sps:$4 sm:$0xff]  }
0x11b1   :  { %6498 = vmatprep.subr.bf16.mxu1 %v11714_v22  ;;  %v6389_v47 = vpop.f32.mrf.mxu0  ;;  %v9586_v22 = vld [vmem:[%s14259_s19 + $0x2] sm:$0x1] }
0x11b3   :  { %v6390_v46 = vpop.f32.mrf.mxu0 }
0x11b4   :  { %6499 = vmatpush1.bf16.msra.mxu1 %v11712_v2 }
0x11b5   :  { %6500 = vmatprep.subr.bf16.mxu1 %v11717_v30  ;;  %v11733_v30 = vld [vmem:[%s14260_s20 + $0xb0] ss:$8 sps:$4 sm:$0xff]  }
0x11b8   :  { %6501 = vmatpush1.bf16.msra.mxu1 %v11715_v27 }
0x11b9   :  { %6502 = vmatprep.subr.bf16.mxu1 %v11723_v36 }
0x11bc   :  { %6503 = vmatpush1.bf16.msra.mxu1 %v11721_v23  ;;  %v11738_v23 = vld [vmem:[%s14260_s20 + $0xa4] ss:$8 sps:$4 sm:$0xff]  }
0x11bd   :  { %11367 = vmatprep.subr.bf16.mxu1 %v11941_v1 }
0x126f   :  { %v11349_v38 = vpop.f32.mrf.mxu1 }
0x1270   :  { %v6298_v48 = vadd.f32 %v11349_v38, %v6134_v56  ;;  %v9605_v56 = vld [vmem:[%s14259_s19 + $0x3] sm:$0x1]  ;;  %v11741_v38 = vld [vmem:[%s14260_s20 + $0x94] ss:$8 sps:$4 sm:$0xff]  }
0x1271   :  { %v6281_v49 = vpop.f32.mrf.mxu1 }
0x1272   :  { %v6309_v20 = vadd.f32 %v9552_v28, %v6298_v48  ;;  %v6296_v53 = vadd.f32 %v6281_v49, %v6132_v6  ;;  %v11742_v6 = vld [vmem:[%s14260_s20 + $0xf0] ss:$8 sps:$4 sm:$0xff]   ;;  %v11747_v48 = vld [vmem:[%s14260_s20 + $0x84] ss:$8 sps:$4 sm:$0xff]   ;;  %v11745_v49 = vld [vmem:[%s14260_s20 + $0x80] ss:$8 sps:$4 sm:$0xff]  }
0x1273   :  { %v11350_v25 = vpop.f32.mrf.mxu1 }
0x1274   :  { %v6313_v21 = vmax.f32 %v6309_v20, 0.0  ;;  %v6307_v32 = vadd.f32 %v9552_v28, %v6296_v53  ;;  %v6299_v40 = vadd.f32 %v11350_v25, %v6135_v60  ;;  %v11748_v60 = vld [vmem:[%s14260_s20 + $0xe0] ss:$8 sps:$4 sm:$0xff]   ;;  %v11753_v20 = vld [vmem:[%s14260_s20 + $0xd4] ss:$8 sps:$4 sm:$0xff]  }
0x1275   :  { %v6284_v13 = vpop.f32.mrf.mxu1  ;;  %v11751_v53 = vld [vmem:[%s14260_s20 + $0xd0] ss:$8 sps:$4 sm:$0xff]   ;;  %v11754_v25 = vld [vmem:[%s14260_s20 + $0xc0] ss:$8 sps:$4 sm:$0xff]  }
0x1276   :  { %v6317_v31 = vadd.f32 %v6313_v21, %v3524_v16  ;;  %v6311_v18 = vmax.f32 %v6307_v32, 0.0  ;;  %v6310_v29 = vadd.f32 %v9552_v28, %v6299_v40  ;;  %v6297_v42 = vadd.f32 %v6284_v13, %v6133_v9  ;;  %v11756_v16 = vld [vmem:[%s14260_s20 + $0xc4] ss:$8 sps:$4 sm:$0xff]   ;;  %v6323_v40 = vld [vmem:[%s14262_s22] sm:$0x3] }
0x1277   :  { %v6325_v9 = vlaneseq }
0x1278   :  { %v6315_v55 = vadd.f32 %v6311_v18, %v3516_v45  ;;  %v6314_v8 = vmax.f32 %v6310_v29, 0.0  ;;  %v6308_v43 = vadd.f32 %v9552_v28, %v6297_v42  ;;  %v11744_v28 = vld [vmem:[%s14260_s20 + $0xf4] ss:$8 sps:$4 sm:$0xff]  }
0x1279   :  { %v6326_v21 = vshrl.u32 %v6325_v9, 7 }
0x127a   :  { %v6318_v3 = vadd.f32 %v6314_v8, %v3527_v5  ;;  %v6312_v12 = vmax.f32 %v6308_v43, 0.0 }
0x127b   :  { %v6327_v32 = vsub.s32 0, %v6326_v21  ;;  %v6331_v45 = vsub.s32 1, %v6326_v21 }
0x127c   :  { %v13558_v10 = vpack.c.bf16 %v6318_v3, %v6317_v31  ;;  %v6316_v41 = vadd.f32 %v6312_v12, %v3519_v33 }
0x127d   :  { %v6328_v13 = vrot.slane %v6323_v40, %v6327_v32  ;;  %v6332_v31 = vrot.slane %v6323_v40, %v6331_v45  ;;  %v11783_v45 = vld [vmem:[%s14260_s20 + $0x1b4] ss:$8 sps:$4 sm:$0xff]  }
0x127e   :  { %v13560_v11 = vpack.c.bf16 %v6316_v41, %v6315_v55  ;;  %11352 = vmatpush3.bf16.msra.mxu0 %v13558_v10 }
0x127f   :  { %11353 = vmatprep.subr.bf16.mxu0 %v11941_v1  ;;  %v6386_v18 = vadd.f32 %v13592_v51, %v6328_v13  ;;  %v6388_v42 = vadd.f32 %v13594_v0, %v6332_v31  ;;  %v11759_v51 = vld [vmem:[%s14260_s20 + $0x134] ss:$8 sps:$4 sm:$0xff]  }
0x1282   :  { %11354 = vmatpush3.bf16.msra.mxu0 %v13560_v11 }
0x1283   :  { %11359 = vmatprep.subr.bf16.mxu0 %v11941_v1 }
0x1285   :  { %11356 = vmatmul.mubr.msk.bf16.vlgmr.msra.gmra.mxu0 %vm3474_vm4, %v6392_v4 }
0x1286   :  { %11360 = vmatpush3.bf16.msra.mxu0 %v13558_v10  ;;  %11363 = vmatprep.mubr.msk.bf16.mxu0 %vm11942_vm8, %v11941_v1 }
0x1287   :  { %11361 = vmatprep.subr.bf16.mxu0 %v11941_v1 }
0x128a   :  { %11362 = vmatpush3.bf16.msra.mxu0 %v13560_v11 }
0x128b   :  { %6637 = vmatprep.subr.bf16.mxu0 %v11720_v7 }
0x128d   :  { %11364 = vmatmul.mubr.msk.bf16.vlgmr.msra.gmra.mxu0 %vm3474_vm4, %v9567_v39 }
0x128e   :  { %6638 = vmatpush1.bf16.msra.mxu0 %v11718_v59  ;;  %6661 = vmatprep.mubr.bf16.mxu0 %v11940_v15 }
0x128f   :  { %6639 = vmatprep.subr.bf16.mxu0 %v11726_v63 }
0x1292   :  { %6640 = vmatpush1.bf16.msra.mxu0 %v11724_v44 }
0x1293   :  { %6641 = vmatprep.subr.bf16.mxu0 %v11729_v54  ;;  %v9624_v54 = vld [vmem:[%s14259_s19 + $0x4] sm:$0x1] }
0x1296   :  { %6642 = vmatpush1.bf16.msra.mxu0 %v11727_v52 }
0x1297   :  { %6643 = vmatprep.subr.bf16.mxu0 %v11732_v19  ;;  %v11757_v19 = vld [vmem:[%s14260_s20 + $0x130] ss:$8 sps:$4 sm:$0xff]  }
0x129a   :  { %6644 = vmatpush1.bf16.msra.mxu0 %v11730_v17 }
0x129b   :  { %11375 = vmatprep.subr.bf16.mxu0 %v11941_v1 }
0x1345   :  { %v6430_v34 = vpop.f32.mrf.mxu0 }
0x1346   :  { %v6436_v58 = vpack.c.bf16 %v6430_v34, %v6430_v34  ;;  %v11762_v34 = vld [vmem:[%s14260_s20 + $0x124] ss:$8 sps:$4 sm:$0xff]  }
0x1347   :  { %v11357_v14 = vpop.f32.mrf.mxu0 }
0x1348   :  { %9566 = vmatmul.mubr.msk.bf16.vlgmr.msra.gmra.mxu1 %vm5017_vm5, %v6436_v58  ;;  %v11760_v14 = vld [vmem:[%s14260_s20 + $0x120] ss:$8 sps:$4 sm:$0xff]  }
0x1349   :  { %11368 = vmatpush3.bf16.msra.mxu1 %v13558_v10  ;;  %v6433_v35 = vpop.f32.mrf.mxu0  ;;  %11371 = vmatprep.mubr.msk.bf16.mxu1 %vm11942_vm8, %v11941_v1 }
0x134a   :  { %11369 = vmatprep.subr.bf16.mxu1 %v11941_v1 }
0x134b   :  { %v11358_v50 = vpop.f32.mrf.mxu0 }
0x134c   :  { %v11765_v50 = vld [vmem:[%s14260_s20 + $0x114] ss:$8 sps:$4 sm:$0xff]  }
0x134d   :  { %11370 = vmatpush3.bf16.msra.mxu1 %v13560_v11  ;;  %v6570_v2 = vpop.f32.mrf.mxu0 }
0x134e   :  { %v6576_v27 = vpack.c.bf16 %v6570_v2, %v6570_v2  ;;  %6778 = vmatprep.subr.bf16.mxu1 %v11735_v24  ;;  %v9643_v24 = vld [vmem:[%s14259_s19 + $0x5] sm:$0x1]  ;;  %v11768_v2 = vld [vmem:[%s14260_s20 + $0x174] ss:$8 sps:$4 sm:$0xff]  }
0x134f   :  { %v11365_v36 = vpop.f32.mrf.mxu0 }
0x1350   :  { %9585 = vmatmul.mubr.msk.bf16.vlgmr.msra.gmra.mxu0 %vm5017_vm5, %v6576_v27  ;;  %11372 = vmatmul.mubr.msk.bf16.vlgmr.msra.gmra.mxu1 %vm3474_vm4, %v9586_v22  ;;  %v11763_v22 = vld [vmem:[%s14260_s20 + $0x110] ss:$8 sps:$4 sm:$0xff]   ;;  %v11774_v36 = vld [vmem:[%s14260_s20 + $0x164] ss:$8 sps:$4 sm:$0xff]  }
0x1351   :  { %11376 = vmatpush3.bf16.msra.mxu0 %v13558_v10  ;;  %v6573_v37 = vpop.f32.mrf.mxu0  ;;  %11379 = vmatprep.mubr.msk.bf16.mxu0 %vm11942_vm8, %v11941_v1  ;;  %v11766_v27 = vld [vmem:[%s14260_s20 + $0x170] ss:$8 sps:$4 sm:$0xff]  }
0x1352   :  { %11377 = vmatprep.subr.bf16.mxu0 %v11941_v1  ;;  %6779 = vmatpush1.bf16.msra.mxu1 %v11733_v30  ;;  %v11771_v30 = vld [vmem:[%s14260_s20 + $0x104] ss:$8 sps:$4 sm:$0xff]   ;;  %v11772_v37 = vld [vmem:[%s14260_s20 + $0x160] ss:$8 sps:$4 sm:$0xff]  }
0x1353   :  { %v11366_v61 = vpop.f32.mrf.mxu0  ;;  %6780 = vmatprep.subr.bf16.mxu1 %v11738_v23  ;;  %6802 = vmatprep.mubr.bf16.mxu1 %v11940_v15  ;;  %v11769_v23 = vld [vmem:[%s14260_s20 + $0x100] ss:$8 sps:$4 sm:$0xff]  }
0x1354   :  { %v11775_v61 = vld [vmem:[%s14260_s20 + $0x150] ss:$8 sps:$4 sm:$0xff]  }
0x1355   :  { %11378 = vmatpush3.bf16.msra.mxu0 %v13560_v11 }
0x1356   :  { %6781 = vmatpush1.bf16.msra.mxu1 %v11736_v57  ;;  %6919 = vmatprep.subr.bf16.mxu0 %v11744_v28  ;;  %v11777_v57 = vld [vmem:[%s14260_s20 + $0x154] ss:$8 sps:$4 sm:$0xff]  }
0x1357   :  { %6782 = vmatprep.subr.bf16.mxu1 %v11741_v38  ;;  %v11778_v38 = vld [vmem:[%s14260_s20 + $0x140] ss:$8 sps:$4 sm:$0xff]  }
0x1358   :  { %11380 = vmatmul.mubr.msk.bf16.vlgmr.msra.gmra.mxu0 %vm3474_vm4, %v9605_v56  ;;  %v11780_v56 = vld [vmem:[%s14260_s20 + $0x144] ss:$8 sps:$4 sm:$0xff]  }
0x1359   :  { %6943 = vmatprep.mubr.bf16.mxu0 %v11940_v15  ;;  %6920 = vmatpush1.bf16.msra.mxu0 %v11742_v6 }
0x135a   :  { %6783 = vmatpush1.bf16.msra.mxu1 %v11739_v62  ;;  %6921 = vmatprep.subr.bf16.mxu0 %v11750_v26 }
0x135b   :  { %6784 = vmatprep.subr.bf16.mxu1 %v11747_v48 }
0x135d   :  { %6922 = vmatpush1.bf16.msra.mxu0 %v11748_v60 }
0x135e   :  { %6785 = vmatpush1.bf16.msra.mxu1 %v11745_v49  ;;  %6923 = vmatprep.subr.bf16.mxu0 %v11753_v20 }
0x135f   :  { %11383 = vmatprep.subr.bf16.mxu1 %v11941_v1 }
0x1361   :  { %6924 = vmatpush1.bf16.msra.mxu0 %v11751_v53 }
0x1362   :  { %6925 = vmatprep.subr.bf16.mxu0 %v11756_v16 }
0x1365   :  { %6926 = vmatpush1.bf16.msra.mxu0 %v11754_v25 }
0x1366   :  { %11391 = vmatprep.subr.bf16.mxu0 %v11941_v1 }
0x1408   :  { %v6522_v29 = vpop.f32.mrf.mxu1 }
0x1409   :  { %v6529_v5 = vadd.f32 %v6522_v29, %v6386_v18  ;;  %v9662_v29 = vld [vmem:[%s14259_s19 + $0x6] sm:$0x1] }
0x140a   :  { %v6524_v55 = vpop.f32.mrf.mxu1 }
0x140b   :  { %v6530_v8 = vadd.f32 %v6524_v55, %v6388_v42 }
0x140c   :  { %v6526_v43 = vpop.f32.mrf.mxu1 }
0x140e   :  { %v6527_v33 = vpop.f32.mrf.mxu1 }
0x140f   :  { %v11784_v33 = vld [vmem:[%s14260_s20 + $0x1a0] ss:$8 sps:$4 sm:$0xff]  }
0x1410   :  { %v6663_v3 = vpop.f32.mrf.mxu0  ;;  %v6711_v12 = vpop.f32.mrf.mxu1 }
0x1411   :  { %v13686_v41 = vadd.f32 %v6663_v3, %v6529_v5  ;;  %v6717_v4 = vpack.c.bf16 %v6711_v12, %v6711_v12  ;;  %v11781_v5 = vld [vmem:[%s14260_s20 + $0x1b0] ss:$8 sps:$4 sm:$0xff]   ;;  %v9681_v12 = vld [vmem:[%s14259_s19 + $0x7] sm:$0x1] }
0x1412   :  { %v6665_v7 = vpop.f32.mrf.mxu0  ;;  %v11373_v39 = vpop.f32.mrf.mxu1 }
0x1413   :  { %v13688_v59 = vadd.f32 %v6665_v7, %v6530_v8  ;;  %9604 = vmatmul.mubr.msk.bf16.vlgmr.msra.gmra.mxu1 %vm5017_vm5, %v6717_v4  ;;  %v11786_v8 = vld [vmem:[%s14260_s20 + $0x1a4] ss:$8 sps:$4 sm:$0xff]   ;;  %v11792_v4 = vld [vmem:[%s14260_s20 + $0x1f4] ss:$8 sps:$4 sm:$0xff]   ;;  %v11787_v7 = vld [vmem:[%s14260_s20 + $0x190] ss:$8 sps:$4 sm:$0xff]  }
0x1414   :  { %11384 = vmatpush3.bf16.msra.mxu1 %v13558_v10  ;;  %v6667_v63 = vpop.f32.mrf.mxu0  ;;  %v6714_v44 = vpop.f32.mrf.mxu1  ;;  %11387 = vmatprep.mubr.msk.bf16.mxu1 %vm11942_vm8, %v11941_v1  ;;  %v11790_v39 = vld [vmem:[%s14260_s20 + $0x1f0] ss:$8 sps:$4 sm:$0xff]  }
0x1415   :  { %11385 = vmatprep.subr.bf16.mxu1 %v11941_v1  ;;  %v11798_v63 = vld [vmem:[%s14260_s20 + $0x1e4] ss:$8 sps:$4 sm:$0xff]   ;;  %v11793_v44 = vld [vmem:[%s14260_s20 + $0x180] ss:$8 sps:$4 sm:$0xff]  }
0x1416   :  { %v6668_v0 = vpop.f32.mrf.mxu0  ;;  %v11374_v47 = vpop.f32.mrf.mxu1 }
0x1417   :  { %v11801_v0 = vld [vmem:[%s14260_s20 + $0x1d4] ss:$8 sps:$4 sm:$0xff]   ;;  %v11799_v47 = vld [vmem:[%s14260_s20 + $0x1d0] ss:$8 sps:$4 sm:$0xff]  }
0x1418   :  { %11386 = vmatpush3.bf16.msra.mxu1 %v13560_v11  ;;  %v6852_v46 = vpop.f32.mrf.mxu0 }
0x1419   :  { %v6858_v52 = vpack.c.bf16 %v6852_v46, %v6852_v46  ;;  %7060 = vmatprep.subr.bf16.mxu1 %v11759_v51  ;;  %v11796_v51 = vld [vmem:[%s14260_s20 + $0x1e0] ss:$8 sps:$4 sm:$0xff]   ;;  %v11804_v46 = vld [vmem:[%s14260_s20 + $0x1c4] ss:$8 sps:$4 sm:$0xff]  }
0x141a   :  { %v11381_v17 = vpop.f32.mrf.mxu0 }
0x141b   :  { %9623 = vmatmul.mubr.msk.bf16.vlgmr.msra.gmra.mxu0 %vm5017_vm5, %v6858_v52  ;;  %11388 = vmatmul.mubr.msk.bf16.vlgmr.msra.gmra.mxu1 %vm3474_vm4, %v9624_v54  ;;  %v11802_v54 = vld [vmem:[%s14260_s20 + $0x1c0] ss:$8 sps:$4 sm:$0xff]  }
0x141c   :  { %11392 = vmatpush3.bf16.msra.mxu0 %v13558_v10  ;;  %v6855_v58 = vpop.f32.mrf.mxu0  ;;  %11395 = vmatprep.mubr.msk.bf16.mxu0 %vm11942_vm8, %v11941_v1 }
0x141d   :  { %11393 = vmatprep.subr.bf16.mxu0 %v11941_v1  ;;  %7061 = vmatpush1.bf16.msra.mxu1 %v11757_v19 }
0x141e   :  { %v11382_v35 = vpop.f32.mrf.mxu0  ;;  %7062 = vmatprep.subr.bf16.mxu1 %v11762_v34  ;;  %7084 = vmatprep.mubr.bf16.mxu1 %v11940_v15 }
0x1420   :  { %11394 = vmatpush3.bf16.msra.mxu0 %v13560_v11 }
0x1421   :  { %7063 = vmatpush1.bf16.msra.mxu1 %v11760_v14  ;;  %7201 = vmatprep.subr.bf16.mxu0 %v11768_v2 }
0x1422   :  { %7064 = vmatprep.subr.bf16.mxu1 %v11765_v50 }
0x1423   :  { %11396 = vmatmul.mubr.msk.bf16.vlgmr.msra.gmra.mxu0 %vm3474_vm4, %v9643_v24 }
0x1424   :  { %7225 = vmatprep.mubr.bf16.mxu0 %v11940_v15  ;;  %7202 = vmatpush1.bf16.msra.mxu0 %v11766_v27 }
0x1425   :  { %7065 = vmatpush1.bf16.msra.mxu1 %v11763_v22  ;;  %7203 = vmatprep.subr.bf16.mxu0 %v11774_v36 }
0x1426   :  { %7066 = vmatprep.subr.bf16.mxu1 %v11771_v30 }
0x1428   :  { %7204 = vmatpush1.bf16.msra.mxu0 %v11772_v37  ;;  %v11807_v37 = vld [vmem:[%s14260_s20 + $0x234] ss:$8 sps:$4 sm:$0xff]  }
0x1429   :  { %7067 = vmatpush1.bf16.msra.mxu1 %v11769_v23  ;;  %7205 = vmatprep.subr.bf16.mxu0 %v11777_v57 }
0x142a   :  { %11399 = vmatprep.subr.bf16.mxu1 %v11941_v1 }
0x142c   :  { %7206 = vmatpush1.bf16.msra.mxu0 %v11775_v61 }
0x142d   :  { %7207 = vmatprep.subr.bf16.mxu0 %v11780_v56 }
0x1430   :  { %7208 = vmatpush1.bf16.msra.mxu0 %v11778_v38  ;;  %v9700_v38 = vld [vmem:[%s14259_s19 + $0x8] sm:$0x1] }
0x1431   :  { %11407 = vmatprep.subr.bf16.mxu0 %v11941_v1 }
0x14d3   :  { %v6804_v28 = vpop.f32.mrf.mxu1 }
0x14d4   :  { %v6811_v62 = vadd.f32 %v6804_v28, %v13686_v41  ;;  %v11789_v41 = vld [vmem:[%s14260_s20 + $0x194] ss:$8 sps:$4 sm:$0xff]  }
0x14d5   :  { %v6806_v6 = vpop.f32.mrf.mxu1 }
0x14d6   :  { %v6812_v48 = vadd.f32 %v6806_v6, %v13688_v59  ;;  %v11795_v59 = vld [vmem:[%s14260_s20 + $0x184] ss:$8 sps:$4 sm:$0xff]  }
0x14d7   :  { %v6808_v26 = vpop.f32.mrf.mxu1 }
0x14d9   :  { %v6809_v49 = vpop.f32.mrf.mxu1 }
0x14da   :  { %v11808_v49 = vld [vmem:[%s14260_s20 + $0x220] ss:$8 sps:$4 sm:$0xff]  }
0x14db   :  { %v6945_v60 = vpop.f32.mrf.mxu0  ;;  %v6993_v20 = vpop.f32.mrf.mxu1 }
0x14dc   :  { %v13764_v53 = vadd.f32 %v6945_v60, %v6811_v62  ;;  %v6999_v16 = vpack.c.bf16 %v6993_v20, %v6993_v20  ;;  %v11805_v62 = vld [vmem:[%s14260_s20 + $0x230] ss:$8 sps:$4 sm:$0xff]   ;;  %v9719_v20 = vld [vmem:[%s14259_s19 + $0x9] sm:$0x1] }
0x14dd   :  { %v6947_v25 = vpop.f32.mrf.mxu0  ;;  %v11389_v9 = vpop.f32.mrf.mxu1 }
0x14de   :  { %v13766_v21 = vadd.f32 %v6947_v25, %v6812_v48  ;;  %9642 = vmatmul.mubr.msk.bf16.vlgmr.msra.gmra.mxu1 %vm5017_vm5, %v6999_v16  ;;  %v11810_v48 = vld [vmem:[%s14260_s20 + $0x224] ss:$8 sps:$4 sm:$0xff]   ;;  %v11816_v16 = vld [vmem:[%s14260_s20 + $0x274] ss:$8 sps:$4 sm:$0xff]   ;;  %v11811_v25 = vld [vmem:[%s14260_s20 + $0x210] ss:$8 sps:$4 sm:$0xff]  }
0x14df   :  { %11400 = vmatpush3.bf16.msra.mxu1 %v13558_v10  ;;  %v6949_v32 = vpop.f32.mrf.mxu0  ;;  %v6996_v40 = vpop.f32.mrf.mxu1  ;;  %11403 = vmatprep.mubr.msk.bf16.mxu1 %vm11942_vm8, %v11941_v1  ;;  %v11814_v9 = vld [vmem:[%s14260_s20 + $0x270] ss:$8 sps:$4 sm:$0xff]  }
0x14e0   :  { %11401 = vmatprep.subr.bf16.mxu1 %v11941_v1  ;;  %v11822_v32 = vld [vmem:[%s14260_s20 + $0x264] ss:$8 sps:$4 sm:$0xff]   ;;  %v11817_v40 = vld [vmem:[%s14260_s20 + $0x200] ss:$8 sps:$4 sm:$0xff]  }
0x14e1   :  { %v6950_v13 = vpop.f32.mrf.mxu0  ;;  %v11390_v31 = vpop.f32.mrf.mxu1 }
0x14e2   :  { %v11825_v13 = vld [vmem:[%s14260_s20 + $0x254] ss:$8 sps:$4 sm:$0xff]   ;;  %v11823_v31 = vld [vmem:[%s14260_s20 + $0x250] ss:$8 sps:$4 sm:$0xff]  }
0x14e3   :  { %11402 = vmatpush3.bf16.msra.mxu1 %v13560_v11  ;;  %v7134_v18 = vpop.f32.mrf.mxu0 }
0x14e4   :  { %v7140_v42 = vpack.c.bf16 %v7134_v18, %v7134_v18  ;;  %7342 = vmatprep.subr.bf16.mxu1 %v11783_v45  ;;  %v11820_v45 = vld [vmem:[%s14260_s20 + $0x260] ss:$8 sps:$4 sm:$0xff]   ;;  %v11828_v18 = vld [vmem:[%s14260_s20 + $0x244] ss:$8 sps:$4 sm:$0xff]  }
0x14e5   :  { %v11397_v55 = vpop.f32.mrf.mxu0 }
0x14e6   :  { %9661 = vmatmul.mubr.msk.bf16.vlgmr.msra.gmra.mxu0 %vm5017_vm5, %v7140_v42  ;;  %11404 = vmatmul.mubr.msk.bf16.vlgmr.msra.gmra.mxu1 %vm3474_vm4, %v9662_v29  ;;  %v11826_v29 = vld [vmem:[%s14260_s20 + $0x240] ss:$8 sps:$4 sm:$0xff]  }
0x14e7   :  { %11408 = vmatpush3.bf16.msra.mxu0 %v13558_v10  ;;  %v7137_v43 = vpop.f32.mrf.mxu0  ;;  %11411 = vmatprep.mubr.msk.bf16.mxu0 %vm11942_vm8, %v11941_v1 }
0x14e8   :  { %11409 = vmatprep.subr.bf16.mxu0 %v11941_v1  ;;  %7343 = vmatpush1.bf16.msra.mxu1 %v11781_v5 }
0x14e9   :  { %v11398_v3 = vpop.f32.mrf.mxu0  ;;  %7344 = vmatprep.subr.bf16.mxu1 %v11786_v8  ;;  %7366 = vmatprep.mubr.bf16.mxu1 %v11940_v15 }
0x14eb   :  { %11410 = vmatpush3.bf16.msra.mxu0 %v13560_v11 }
0x14ec   :  { %7345 = vmatpush1.bf16.msra.mxu1 %v11784_v33  ;;  %7483 = vmatprep.subr.bf16.mxu0 %v11792_v4 }
0x14ed   :  { %7346 = vmatprep.subr.bf16.mxu1 %v11789_v41 }
0x14ee   :  { %11412 = vmatmul.mubr.msk.bf16.vlgmr.msra.gmra.mxu0 %vm3474_vm4, %v9681_v12 }
0x14ef   :  { %7507 = vmatprep.mubr.bf16.mxu0 %v11940_v15  ;;  %7484 = vmatpush1.bf16.msra.mxu0 %v11790_v39 }
0x14f0   :  { %7347 = vmatpush1.bf16.msra.mxu1 %v11787_v7  ;;  %7485 = vmatprep.subr.bf16.mxu0 %v11798_v63 }
0x14f1   :  { %7348 = vmatprep.subr.bf16.mxu1 %v11795_v59 }
0x14f3   :  { %7486 = vmatpush1.bf16.msra.mxu0 %v11796_v51  ;;  %v11831_v51 = vld [vmem:[%s14260_s20 + $0x2b4] ss:$8 sps:$4 sm:$0xff]  }
0x14f4   :  { %7349 = vmatpush1.bf16.msra.mxu1 %v11793_v44  ;;  %7487 = vmatprep.subr.bf16.mxu0 %v11801_v0 }
0x14f5   :  { %11415 = vmatprep.subr.bf16.mxu1 %v11941_v1 }
0x14f7   :  { %7488 = vmatpush1.bf16.msra.mxu0 %v11799_v47 }
0x14f8   :  { %7489 = vmatprep.subr.bf16.mxu0 %v11804_v46 }
0x14fb   :  { %7490 = vmatpush1.bf16.msra.mxu0 %v11802_v54  ;;  %v9738_v54 = vld [vmem:[%s14259_s19 + $0xa] sm:$0x1] }
0x14fc   :  { %11423 = vmatprep.subr.bf16.mxu0 %v11941_v1 }
0x159e   :  { %v7086_v52 = vpop.f32.mrf.mxu1 }
0x159f   :  { %v7093_v19 = vadd.f32 %v7086_v52, %v13764_v53  ;;  %v11813_v53 = vld [vmem:[%s14260_s20 + $0x214] ss:$8 sps:$4 sm:$0xff]  }
0x15a0   :  { %v7088_v17 = vpop.f32.mrf.mxu1 }
0x15a1   :  { %v7094_v34 = vadd.f32 %v7088_v17, %v13766_v21  ;;  %v11819_v21 = vld [vmem:[%s14260_s20 + $0x204] ss:$8 sps:$4 sm:$0xff]  }
0x15a2   :  { %v7090_v58 = vpop.f32.mrf.mxu1 }
0x15a4   :  { %v7091_v14 = vpop.f32.mrf.mxu1 }
0x15a5   :  { %v11832_v14 = vld [vmem:[%s14260_s20 + $0x2a0] ss:$8 sps:$4 sm:$0xff]  }
0x15a6   :  { %v7227_v35 = vpop.f32.mrf.mxu0  ;;  %v7275_v24 = vpop.f32.mrf.mxu1 }
0x15a7   :  { %v13842_v50 = vadd.f32 %v7227_v35, %v7093_v19  ;;  %v7281_v2 = vpack.c.bf16 %v7275_v24, %v7275_v24  ;;  %v11829_v19 = vld [vmem:[%s14260_s20 + $0x2b0] ss:$8 sps:$4 sm:$0xff]   ;;  %v9757_v24 = vld [vmem:[%s14259_s19 + $0xb] sm:$0x1] }
0x15a8   :  { %v7229_v22 = vpop.f32.mrf.mxu0  ;;  %v11405_v27 = vpop.f32.mrf.mxu1 }
0x15a9   :  { %v13844_v30 = vadd.f32 %v7229_v22, %v7094_v34  ;;  %9680 = vmatmul.mubr.msk.bf16.vlgmr.msra.gmra.mxu1 %vm5017_vm5, %v7281_v2  ;;  %v11834_v34 = vld [vmem:[%s14260_s20 + $0x2a4] ss:$8 sps:$4 sm:$0xff]   ;;  %v11840_v2 = vld [vmem:[%s14260_s20 + $0x2f4] ss:$8 sps:$4 sm:$0xff]   ;;  %v11835_v22 = vld [vmem:[%s14260_s20 + $0x290] ss:$8 sps:$4 sm:$0xff]  }
0x15aa   :  { %11416 = vmatpush3.bf16.msra.mxu1 %v13558_v10  ;;  %v7231_v36 = vpop.f32.mrf.mxu0  ;;  %v7278_v23 = vpop.f32.mrf.mxu1  ;;  %11419 = vmatprep.mubr.msk.bf16.mxu1 %vm11942_vm8, %v11941_v1  ;;  %v11838_v27 = vld [vmem:[%s14260_s20 + $0x2f0] ss:$8 sps:$4 sm:$0xff]  }
0x15ab   :  { %11417 = vmatprep.subr.bf16.mxu1 %v11941_v1  ;;  %v11846_v36 = vld [vmem:[%s14260_s20 + $0x2e4] ss:$8 sps:$4 sm:$0xff]   ;;  %v11841_v23 = vld [vmem:[%s14260_s20 + $0x280] ss:$8 sps:$4 sm:$0xff]  }
0x15ac   :  { %v7232_v57 = vpop.f32.mrf.mxu0  ;;  %v11406_v61 = vpop.f32.mrf.mxu1 }
0x15ad   :  { %v11849_v57 = vld [vmem:[%s14260_s20 + $0x2d4] ss:$8 sps:$4 sm:$0xff]   ;;  %v11847_v61 = vld [vmem:[%s14260_s20 + $0x2d0] ss:$8 sps:$4 sm:$0xff]  }
0x15ae   :  { %11418 = vmatpush3.bf16.msra.mxu1 %v13560_v11  ;;  %v7416_v56 = vpop.f32.mrf.mxu0 }
0x15af   :  { %v7422_v28 = vpack.c.bf16 %v7416_v56, %v7416_v56  ;;  %7624 = vmatprep.subr.bf16.mxu1 %v11807_v37  ;;  %v11844_v37 = vld [vmem:[%s14260_s20 + $0x2e0] ss:$8 sps:$4 sm:$0xff]   ;;  %v11852_v56 = vld [vmem:[%s14260_s20 + $0x2c4] ss:$8 sps:$4 sm:$0xff]  }
0x15b0   :  { %v11413_v6 = vpop.f32.mrf.mxu0 }
0x15b1   :  { %9699 = vmatmul.mubr.msk.bf16.vlgmr.msra.gmra.mxu0 %vm5017_vm5, %v7422_v28  ;;  %11420 = vmatmul.mubr.msk.bf16.vlgmr.msra.gmra.mxu1 %vm3474_vm4, %v9700_v38  ;;  %v11850_v38 = vld [vmem:[%s14260_s20 + $0x2c0] ss:$8 sps:$4 sm:$0xff]  }
0x15b2   :  { %11424 = vmatpush3.bf16.msra.mxu0 %v13558_v10  ;;  %v7419_v26 = vpop.f32.mrf.mxu0  ;;  %11427 = vmatprep.mubr.msk.bf16.mxu0 %vm11942_vm8, %v11941_v1 }
0x15b3   :  { %11425 = vmatprep.subr.bf16.mxu0 %v11941_v1  ;;  %7625 = vmatpush1.bf16.msra.mxu1 %v11805_v62 }
0x15b4   :  { %v11414_v60 = vpop.f32.mrf.mxu0  ;;  %7626 = vmatprep.subr.bf16.mxu1 %v11810_v48  ;;  %7648 = vmatprep.mubr.bf16.mxu1 %v11940_v15 }
0x15b6   :  { %11426 = vmatpush3.bf16.msra.mxu0 %v13560_v11 }
0x15b7   :  { %7627 = vmatpush1.bf16.msra.mxu1 %v11808_v49  ;;  %7765 = vmatprep.subr.bf16.mxu0 %v11816_v16 }
0x15b8   :  { %7628 = vmatprep.subr.bf16.mxu1 %v11813_v53 }
0x15b9   :  { %11428 = vmatmul.mubr.msk.bf16.vlgmr.msra.gmra.mxu0 %vm3474_vm4, %v9719_v20 }
0x15ba   :  { %7789 = vmatprep.mubr.bf16.mxu0 %v11940_v15  ;;  %7766 = vmatpush1.bf16.msra.mxu0 %v11814_v9 }
0x15bb   :  { %7629 = vmatpush1.bf16.msra.mxu1 %v11811_v25  ;;  %7767 = vmatprep.subr.bf16.mxu0 %v11822_v32 }
0x15bc   :  { %7630 = vmatprep.subr.bf16.mxu1 %v11819_v21 }
0x15be   :  { %7768 = vmatpush1.bf16.msra.mxu0 %v11820_v45  ;;  %v11855_v45 = vld [vmem:[%s14260_s20 + $0x334] ss:$8 sps:$4 sm:$0xff]  }
0x15bf   :  { %7631 = vmatpush1.bf16.msra.mxu1 %v11817_v40  ;;  %7769 = vmatprep.subr.bf16.mxu0 %v11825_v13 }
0x15c0   :  { %11431 = vmatprep.subr.bf16.mxu1 %v11941_v1 }
0x15c2   :  { %7770 = vmatpush1.bf16.msra.mxu0 %v11823_v31 }
0x15c3   :  { %7771 = vmatprep.subr.bf16.mxu0 %v11828_v18 }
0x15c6   :  { %7772 = vmatpush1.bf16.msra.mxu0 %v11826_v29  ;;  %v9776_v29 = vld [vmem:[%s14259_s19 + $0xc] sm:$0x1] }
0x15c7   :  { %11439 = vmatprep.subr.bf16.mxu0 %v11941_v1 }
0x1669   :  { %v7368_v42 = vpop.f32.mrf.mxu1 }
0x166a   :  { %v7375_v5 = vadd.f32 %v7368_v42, %v13842_v50  ;;  %v11837_v50 = vld [vmem:[%s14260_s20 + $0x294] ss:$8 sps:$4 sm:$0xff]  }
0x166b   :  { %v7370_v55 = vpop.f32.mrf.mxu1 }
0x166c   :  { %v7376_v8 = vadd.f32 %v7370_v55, %v13844_v30  ;;  %v11843_v30 = vld [vmem:[%s14260_s20 + $0x284] ss:$8 sps:$4 sm:$0xff]  }
0x166d   :  { %v7372_v43 = vpop.f32.mrf.mxu1 }
0x166f   :  { %v7373_v33 = vpop.f32.mrf.mxu1 }
0x1670   :  { %v11856_v33 = vld [vmem:[%s14260_s20 + $0x320] ss:$8 sps:$4 sm:$0xff]  }
0x1671   :  { %v7509_v3 = vpop.f32.mrf.mxu0  ;;  %v7557_v12 = vpop.f32.mrf.mxu1 }
0x1672   :  { %v13920_v41 = vadd.f32 %v7509_v3, %v7375_v5  ;;  %v7563_v4 = vpack.c.bf16 %v7557_v12, %v7557_v12  ;;  %v11853_v5 = vld [vmem:[%s14260_s20 + $0x330] ss:$8 sps:$4 sm:$0xff]   ;;  %v9795_v12 = vld [vmem:[%s14259_s19 + $0xd] sm:$0x1] }
0x1673   :  { %v7511_v7 = vpop.f32.mrf.mxu0  ;;  %v11421_v39 = vpop.f32.mrf.mxu1 }
0x1674   :  { %v13922_v59 = vadd.f32 %v7511_v7, %v7376_v8  ;;  %9718 = vmatmul.mubr.msk.bf16.vlgmr.msra.gmra.mxu1 %vm5017_vm5, %v7563_v4  ;;  %v11858_v8 = vld [vmem:[%s14260_s20 + $0x324] ss:$8 sps:$4 sm:$0xff]   ;;  %v11864_v4 = vld [vmem:[%s14260_s20 + $0x374] ss:$8 sps:$4 sm:$0xff]   ;;  %v11859_v7 = vld [vmem:[%s14260_s20 + $0x310] ss:$8 sps:$4 sm:$0xff]  }
0x1675   :  { %11432 = vmatpush3.bf16.msra.mxu1 %v13558_v10  ;;  %v7513_v63 = vpop.f32.mrf.mxu0  ;;  %v7560_v44 = vpop.f32.mrf.mxu1  ;;  %11435 = vmatprep.mubr.msk.bf16.mxu1 %vm11942_vm8, %v11941_v1  ;;  %v11862_v39 = vld [vmem:[%s14260_s20 + $0x370] ss:$8 sps:$4 sm:$0xff]  }
0x1676   :  { %11433 = vmatprep.subr.bf16.mxu1 %v11941_v1  ;;  %v11870_v63 = vld [vmem:[%s14260_s20 + $0x364] ss:$8 sps:$4 sm:$0xff]   ;;  %v11865_v44 = vld [vmem:[%s14260_s20 + $0x300] ss:$8 sps:$4 sm:$0xff]  }
0x1677   :  { %v7514_v0 = vpop.f32.mrf.mxu0  ;;  %v11422_v47 = vpop.f32.mrf.mxu1 }
0x1678   :  { %v11873_v0 = vld [vmem:[%s14260_s20 + $0x354] ss:$8 sps:$4 sm:$0xff]   ;;  %v11871_v47 = vld [vmem:[%s14260_s20 + $0x350] ss:$8 sps:$4 sm:$0xff]  }
0x1679   :  { %11434 = vmatpush3.bf16.msra.mxu1 %v13560_v11  ;;  %v7698_v46 = vpop.f32.mrf.mxu0 }
0x167a   :  { %v7704_v52 = vpack.c.bf16 %v7698_v46, %v7698_v46  ;;  %7906 = vmatprep.subr.bf16.mxu1 %v11831_v51  ;;  %v11868_v51 = vld [vmem:[%s14260_s20 + $0x360] ss:$8 sps:$4 sm:$0xff]   ;;  %v11876_v46 = vld [vmem:[%s14260_s20 + $0x344] ss:$8 sps:$4 sm:$0xff]  }
0x167b   :  { %v11429_v17 = vpop.f32.mrf.mxu0 }
0x167c   :  { %9737 = vmatmul.mubr.msk.bf16.vlgmr.msra.gmra.mxu0 %vm5017_vm5, %v7704_v52  ;;  %11436 = vmatmul.mubr.msk.bf16.vlgmr.msra.gmra.mxu1 %vm3474_vm4, %v9738_v54  ;;  %v11874_v54 = vld [vmem:[%s14260_s20 + $0x340] ss:$8 sps:$4 sm:$0xff]  }
0x167d   :  { %11440 = vmatpush3.bf16.msra.mxu0 %v13558_v10  ;;  %v7701_v58 = vpop.f32.mrf.mxu0  ;;  %11443 = vmatprep.mubr.msk.bf16.mxu0 %vm11942_vm8, %v11941_v1 }
0x167e   :  { %11441 = vmatprep.subr.bf16.mxu0 %v11941_v1  ;;  %7907 = vmatpush1.bf16.msra.mxu1 %v11829_v19 }
0x167f   :  { %v11430_v35 = vpop.f32.mrf.mxu0  ;;  %7908 = vmatprep.subr.bf16.mxu1 %v11834_v34  ;;  %7930 = vmatprep.mubr.bf16.mxu1 %v11940_v15 }
0x1681   :  { %11442 = vmatpush3.bf16.msra.mxu0 %v13560_v11 }
0x1682   :  { %7909 = vmatpush1.bf16.msra.mxu1 %v11832_v14  ;;  %8047 = vmatprep.subr.bf16.mxu0 %v11840_v2 }
0x1683   :  { %7910 = vmatprep.subr.bf16.mxu1 %v11837_v50 }
0x1684   :  { %11444 = vmatmul.mubr.msk.bf16.vlgmr.msra.gmra.mxu0 %vm3474_vm4, %v9757_v24 }
0x1685   :  { %8071 = vmatprep.mubr.bf16.mxu0 %v11940_v15  ;;  %8048 = vmatpush1.bf16.msra.mxu0 %v11838_v27 }
0x1686   :  { %7911 = vmatpush1.bf16.msra.mxu1 %v11835_v22  ;;  %8049 = vmatprep.subr.bf16.mxu0 %v11846_v36 }
0x1687   :  { %7912 = vmatprep.subr.bf16.mxu1 %v11843_v30 }
0x1689   :  { %8050 = vmatpush1.bf16.msra.mxu0 %v11844_v37  ;;  %v11879_v37 = vld [vmem:[%s14260_s20 + $0x3b4] ss:$8 sps:$4 sm:$0xff]  }
0x168a   :  { %7913 = vmatpush1.bf16.msra.mxu1 %v11841_v23  ;;  %8051 = vmatprep.subr.bf16.mxu0 %v11849_v57 }
0x168b   :  { %11447 = vmatprep.subr.bf16.mxu1 %v11941_v1 }
0x168d   :  { %8052 = vmatpush1.bf16.msra.mxu0 %v11847_v61 }
0x168e   :  { %8053 = vmatprep.subr.bf16.mxu0 %v11852_v56 }
0x1691   :  { %8054 = vmatpush1.bf16.msra.mxu0 %v11850_v38  ;;  %v9814_v38 = vld [vmem:[%s14259_s19 + $0xe] sm:$0x1] }
0x1692   :  { %11455 = vmatprep.subr.bf16.mxu0 %v11941_v1 }
0x1734   :  { %v7650_v28 = vpop.f32.mrf.mxu1 }
0x1735   :  { %v7657_v62 = vadd.f32 %v7650_v28, %v13920_v41  ;;  %v11861_v41 = vld [vmem:[%s14260_s20 + $0x314] ss:$8 sps:$4 sm:$0xff]  }
0x1736   :  { %v7652_v6 = vpop.f32.mrf.mxu1 }
0x1737   :  { %v7658_v48 = vadd.f32 %v7652_v6, %v13922_v59  ;;  %v11867_v59 = vld [vmem:[%s14260_s20 + $0x304] ss:$8 sps:$4 sm:$0xff]  }
0x1738   :  { %v7654_v26 = vpop.f32.mrf.mxu1 }
0x173a   :  { %v7655_v49 = vpop.f32.mrf.mxu1 }
0x173b   :  { %v11880_v49 = vld [vmem:[%s14260_s20 + $0x3a0] ss:$8 sps:$4 sm:$0xff]  }
0x173c   :  { %v7791_v60 = vpop.f32.mrf.mxu0  ;;  %v7839_v20 = vpop.f32.mrf.mxu1 }
0x173d   :  { %v13998_v53 = vadd.f32 %v7791_v60, %v7657_v62  ;;  %v7845_v16 = vpack.c.bf16 %v7839_v20, %v7839_v20  ;;  %v11877_v62 = vld [vmem:[%s14260_s20 + $0x3b0] ss:$8 sps:$4 sm:$0xff]   ;;  %v11885_v20 = vld [vmem:[%s14260_s20 + $0x394] ss:$8 sps:$4 sm:$0xff]  }
0x173e   :  { %v7793_v25 = vpop.f32.mrf.mxu0  ;;  %v11437_v9 = vpop.f32.mrf.mxu1 }
0x173f   :  { %v14000_v21 = vadd.f32 %v7793_v25, %v7658_v48  ;;  %9756 = vmatmul.mubr.msk.bf16.vlgmr.msra.gmra.mxu1 %vm5017_vm5, %v7845_v16  ;;  %v11882_v48 = vld [vmem:[%s14260_s20 + $0x3a4] ss:$8 sps:$4 sm:$0xff]   ;;  %v11886_v16 = vld [vmem:[%s14260_s20 + $0x3f0] ss:$8 sps:$4 sm:$0xff]   ;;  %v11889_v25 = vld [vmem:[%s14260_s20 + $0x380] ss:$8 sps:$4 sm:$0xff]  }
0x1740   :  { %11448 = vmatpush3.bf16.msra.mxu1 %v13558_v10  ;;  %v7795_v32 = vpop.f32.mrf.mxu0  ;;  %v7842_v40 = vpop.f32.mrf.mxu1  ;;  %11451 = vmatprep.mubr.msk.bf16.mxu1 %vm11942_vm8, %v11941_v1  ;;  %v11891_v9 = vld [vmem:[%s14260_s20 + $0x384] ss:$8 sps:$4 sm:$0xff]  }
0x1741   :  { %11449 = vmatprep.subr.bf16.mxu1 %v11941_v1  ;;  %v11894_v32 = vld [vmem:[%s14260_s20 + $0x3e4] ss:$8 sps:$4 sm:$0xff]   ;;  %v11897_v40 = vld [vmem:[%s14260_s20 + $0x3d4] ss:$8 sps:$4 sm:$0xff]  }
0x1742   :  { %v7796_v13 = vpop.f32.mrf.mxu0  ;;  %v11438_v31 = vpop.f32.mrf.mxu1 }
0x1743   :  { %v11898_v13 = vld [vmem:[%s14260_s20 + $0x3c0] ss:$8 sps:$4 sm:$0xff]   ;;  %v11900_v31 = vld [vmem:[%s14260_s20 + $0x3c4] ss:$8 sps:$4 sm:$0xff]  }
0x1744   :  { %11450 = vmatpush3.bf16.msra.mxu1 %v13560_v11  ;;  %v7980_v18 = vpop.f32.mrf.mxu0 }
0x1745   :  { %v7986_v42 = vpack.c.bf16 %v7980_v18, %v7980_v18  ;;  %8188 = vmatprep.subr.bf16.mxu1 %v11855_v45  ;;  %v11895_v45 = vld [vmem:[%s14260_s20 + $0x3d0] ss:$8 sps:$4 sm:$0xff]  }
0x1746   :  { %v11445_v55 = vpop.f32.mrf.mxu0 }
0x1747   :  { %9775 = vmatmul.mubr.msk.bf16.vlgmr.msra.gmra.mxu0 %vm5017_vm5, %v7986_v42  ;;  %11452 = vmatmul.mubr.msk.bf16.vlgmr.msra.gmra.mxu1 %vm3474_vm4, %v9776_v29 }
0x1748   :  { %11456 = vmatpush3.bf16.msra.mxu0 %v13558_v10  ;;  %v7983_v43 = vpop.f32.mrf.mxu0  ;;  %11459 = vmatprep.mubr.msk.bf16.mxu0 %vm11942_vm8, %v11941_v1 }
0x1749   :  { %11457 = vmatprep.subr.bf16.mxu0 %v11941_v1  ;;  %8189 = vmatpush1.bf16.msra.mxu1 %v11853_v5 }
0x174a   :  { %v11446_v3 = vpop.f32.mrf.mxu0  ;;  %8190 = vmatprep.subr.bf16.mxu1 %v11858_v8  ;;  %8212 = vmatprep.mubr.bf16.mxu1 %v11940_v15 }
0x174b   :  { %v11901_v3 = vld [vmem:[%s14263_s23 + $0x38] sm:$0xff]  }
0x174c   :  { %11458 = vmatpush3.bf16.msra.mxu0 %v13560_v11 }
0x174d   :  { %8191 = vmatpush1.bf16.msra.mxu1 %v11856_v33  ;;  %8329 = vmatprep.subr.bf16.mxu0 %v11864_v4 }
0x174e   :  { %8192 = vmatprep.subr.bf16.mxu1 %v11861_v41 }
0x174f   :  { %11460 = vmatmul.mubr.msk.bf16.vlgmr.msra.gmra.mxu0 %vm3474_vm4, %v9795_v12 }
0x1750   :  { %8353 = vmatprep.mubr.bf16.mxu0 %v11940_v15  ;;  %8330 = vmatpush1.bf16.msra.mxu0 %v11862_v39 }
0x1751   :  { %8193 = vmatpush1.bf16.msra.mxu1 %v11859_v7  ;;  %8331 = vmatprep.subr.bf16.mxu0 %v11870_v63 }
0x1752   :  { %8194 = vmatprep.subr.bf16.mxu1 %v11867_v59 }
0x1754   :  { %8332 = vmatpush1.bf16.msra.mxu0 %v11868_v51 }
0x1755   :  { %8195 = vmatpush1.bf16.msra.mxu1 %v11865_v44  ;;  %8333 = vmatprep.subr.bf16.mxu0 %v11873_v0  ;;  %v11902_v44 = vld [vmem:[%s14263_s23 + $0x30] sm:$0xff]  }
0x1756   :  { %11463 = vmatprep.subr.bf16.mxu1 %v11941_v1 }
0x1758   :  { %8334 = vmatpush1.bf16.msra.mxu0 %v11871_v47 }
0x1759   :  { %8335 = vmatprep.subr.bf16.mxu0 %v11876_v46  ;;  %v11903_v46 = vld [vmem:[%s14263_s23 + $0x28] sm:$0xff]  }
0x175c   :  { %8336 = vmatpush1.bf16.msra.mxu0 %v11874_v54 }
0x175d   :  { %11471 = vmatprep.subr.bf16.mxu0 %v11941_v1 }
0x17ff   :  { %v7932_v52 = vpop.f32.mrf.mxu1 }
0x1800   :  { %v7939_v19 = vadd.f32 %v7932_v52, %v13998_v53  ;;  %v11888_v53 = vld [vmem:[%s14260_s20 + $0x3f4] ss:$8 sps:$4 sm:$0xff]  }
0x1801   :  { %v7934_v17 = vpop.f32.mrf.mxu1 }
0x1802   :  { %v7940_v34 = vadd.f32 %v7934_v17, %v14000_v21  ;;  %v11892_v21 = vld [vmem:[%s14260_s20 + $0x3e0] ss:$8 sps:$4 sm:$0xff]  }
0x1803   :  { %v7936_v58 = vpop.f32.mrf.mxu1  ;;  %v11904_v17 = vld [vmem:[%s14263_s23 + $0x20] sm:$0xff]  }
0x1804   :  { %v11905_v58 = vld [vmem:[%s14263_s23 + $0x18] sm:$0xff]  }
0x1805   :  { %v7937_v14 = vpop.f32.mrf.mxu1 }
0x1806   :  { %v11906_v14 = vld [vmem:[%s14263_s23 + $0x10] sm:$0xff]  }
0x1807   :  { %v8073_v35 = vpop.f32.mrf.mxu0  ;;  %v8121_v24 = vpop.f32.mrf.mxu1 }
0x1808   :  { %v14076_v50 = vadd.f32 %v8073_v35, %v7939_v19  ;;  %v8127_v2 = vpack.c.bf16 %v8121_v24, %v8121_v24  ;;  %v11907_v35 = vld [vmem:[%s14263_s23 + $0x8] sm:$0xff]   ;;  %v11908_v24 = vld [vmem:[%s14263_s23] sm:$0xff]  }
0x1809   :  { %v8075_v22 = vpop.f32.mrf.mxu0  ;;  %v11453_v27 = vpop.f32.mrf.mxu1 }
0x180a   :  { %v14078_v30 = vadd.f32 %v8075_v22, %v7940_v34  ;;  %9794 = vmatmul.mubr.msk.bf16.vlgmr.msra.gmra.mxu1 %vm5017_vm5, %v8127_v2  ;;  %v11910_v22 = vld [vmem:[%s14263_s23 + $0x58] sm:$0xff]   ;;  %v11911_v27 = vld [vmem:[%s14263_s23 + $0x50] sm:$0xff]  }
0x180b   :  { %11464 = vmatpush3.bf16.msra.mxu1 %v13558_v10  ;;  %v8077_v36 = vpop.f32.mrf.mxu0  ;;  %v8124_v23 = vpop.f32.mrf.mxu1  ;;  %11467 = vmatprep.mubr.msk.bf16.mxu1 %vm11942_vm8, %v11941_v1 }
0x180c   :  { %11465 = vmatprep.subr.bf16.mxu1 %v11941_v1  ;;  %v11913_v36 = vld [vmem:[%s14263_s23 + $0x40] sm:$0xff]   ;;  %v11914_v23 = vld [vmem:[%s14265_s25 + $0x18] ss:$0 sps:$4 sm:$0x11]  }
0x180d   :  { %v8078_v57 = vpop.f32.mrf.mxu0  ;;  %v11454_v61 = vpop.f32.mrf.mxu1 }
0x180e   :  { %v11915_v57 = vld [vmem:[%s14265_s25 + $0x10] sm:$0xff]  }
0x180f   :  { %11466 = vmatpush3.bf16.msra.mxu1 %v13560_v11  ;;  %v8262_v56 = vpop.f32.mrf.mxu0 }
0x1810   :  { %v8268_v28 = vpack.c.bf16 %v8262_v56, %v8262_v56  ;;  %8470 = vmatprep.subr.bf16.mxu1 %v11879_v37  ;;  %v8847_v37 = vsel %vm8845_vm9, %v11914_v23, 0 }
0x1811   :  { %v11461_v6 = vpop.f32.mrf.mxu0 }
0x1812   :  { %9813 = vmatmul.mubr.msk.bf16.vlgmr.msra.gmra.mxu0 %vm5017_vm5, %v8268_v28  ;;  %11468 = vmatmul.mubr.msk.bf16.vlgmr.msra.gmra.mxu1 %vm3474_vm4, %v9814_v38 }
0x1813   :  { %11472 = vmatpush3.bf16.msra.mxu0 %v13558_v10  ;;  %v8265_v26 = vpop.f32.mrf.mxu0  ;;  %11475 = vmatprep.mubr.msk.bf16.mxu0 %vm11942_vm8, %v11941_v1  ;;  %v9833_v10 = vld [vmem:[%s14259_s19 + $0xf] sm:$0x1] }
0x1814   :  { %11473 = vmatprep.subr.bf16.mxu0 %v11941_v1  ;;  %8471 = vmatpush1.bf16.msra.mxu1 %v11877_v62 }
0x1815   :  { %v11462_v60 = vpop.f32.mrf.mxu0  ;;  %8472 = vmatprep.subr.bf16.mxu1 %v11882_v48  ;;  %8494 = vmatprep.mubr.bf16.mxu1 %v11940_v15 }
0x1817   :  { %11474 = vmatpush3.bf16.msra.mxu0 %v13560_v11  ;;  %v11883_v11 = vld [vmem:[%s14260_s20 + $0x390] ss:$8 sps:$4 sm:$0xff]  }
0x1818   :  { %8473 = vmatpush1.bf16.msra.mxu1 %v11880_v49  ;;  %8611 = vmatprep.subr.bf16.mxu0 %v11888_v53 }
0x1819   :  { %8474 = vmatprep.subr.bf16.mxu1 %v11885_v20 }
0x181a   :  { %11476 = vmatmul.mubr.msk.bf16.vlgmr.msra.gmra.mxu0 %vm3474_vm4, %v9833_v10 }
0x181b   :  { %8635 = vmatprep.mubr.bf16.mxu0 %v11940_v15  ;;  %8612 = vmatpush1.bf16.msra.mxu0 %v11886_v16 }
0x181c   :  { %8475 = vmatpush1.bf16.msra.mxu1 %v11883_v11  ;;  %8613 = vmatprep.subr.bf16.mxu0 %v11894_v32 }
0x181d   :  { %8476 = vmatprep.subr.bf16.mxu1 %v11891_v9  ;;  %v11917_v9 = vld [vmem:[%s14265_s25] sm:$0xff]  }
0x181f   :  { %8614 = vmatpush1.bf16.msra.mxu0 %v11892_v21  ;;  %v9852_v21 = vld [vmem:[%s14264_s24] ss:$0 sm:$0xff] }
0x1820   :  { %8477 = vmatpush1.bf16.msra.mxu1 %v11889_v25  ;;  %8615 = vmatprep.subr.bf16.mxu0 %v11897_v40  ;;  %v11916_v25 = vld [vmem:[%s14265_s25 + $0x8] sm:$0xff]   ;;  %s8897_s25 = sshll.u32 %s11943_s17, 4  ;;  %s8898_s25 = int_to_ptr.vmem [resolvable:$true] %s8897_s25 }
0x1821   :  { %8764 = vmatprep.subr.bf16.mxu1 %v11940_v15  ;;  %s11918_s24 = scalar_lea.vmem %s8898_s25, 32  ;;  %p11923_p1 = scmp.lt.s32.totalorder %s8898_s25, %s8898_s25 }
0x1822   :  { %p11919_p0 = scmp.ne.s32.totalorder %s8898_s25, %s11918_s24  ;;  %p11924_p2 = scmp.lt.s32.totalorder %s11918_s24, %s11918_s24 }
0x1823   :  { %8616 = vmatpush1.bf16.msra.mxu0 %v11895_v45 }
0x1824   :  { %8617 = vmatprep.subr.bf16.mxu0 %v11900_v31  ;;  %p11925_p3 = por %p11924_p2, %p11923_p1 }
0x1826   :  { %p11926_p4 = pnand %p11925_p3, %p11919_p0 }
0x1827   :  { %8618 = vmatpush1.bf16.msra.mxu0 %v11898_v13 }
0x1828   :  { %11479 = vmatprep.subr.bf16.mxu0 %v11941_v1 }
0x18ca   :  { %v8214_v18 = vpop.f32.mrf.mxu1 }
0x18cb   :  { %v8221_v29 = vadd.f32 %v8214_v18, %v14076_v50  ;;  %v11909_v50 = vld [vmem:[%s14263_s23 + $0x60] ss:$0 sps:$4 sm:$0xff]  }
0x18cc   :  { %v8216_v42 = vpop.f32.mrf.mxu1  ;;  %v8762_v2 = vsel %vm6344_vm6, %v11909_v50, 0 }
0x18cd   :  { %v8222_v5 = vadd.f32 %v8216_v42, %v14078_v30  ;;  %v11912_v30 = vld [vmem:[%s14263_s23 + $0x48] sm:$0xff]  }
0x18ce   :  { %v8218_v55 = vpop.f32.mrf.mxu1 }
0x18d0   :  { %v8219_v8 = vpop.f32.mrf.mxu1 }
0x18d2   :  { %v8355_v43 = vpop.f32.mrf.mxu0  ;;  %v8403_v33 = vpop.f32.mrf.mxu1 }
0x18d3   :  { %v14157_v12 = vadd.f32 %v8355_v43, %v8221_v29  ;;  %v8409_v41 = vpack.c.bf16 %v8403_v33, %v8403_v33 }
0x18d4   :  { %v8357_v4 = vpop.f32.mrf.mxu0  ;;  %v11469_v7 = vpop.f32.mrf.mxu1 }
0x18d5   :  { %v14159_v39 = vadd.f32 %v8357_v4, %v8222_v5  ;;  %9832 = vmatmul.mubr.msk.bf16.vlgmr.msra.gmra.mxu1 %vm5017_vm5, %v8409_v41 }
0x18d6   :  { %v8359_v59 = vpop.f32.mrf.mxu0  ;;  %v8406_v63 = vpop.f32.mrf.mxu1  ;;  %8765 = vmatpush1.bf16.msra.mxu1 %v11901_v3 }
0x18d7   :  { %8766 = vmatprep.subr.bf16.mxu1 %v11940_v15 }
0x18d8   :  { %v8360_v51 = vpop.f32.mrf.mxu0  ;;  %v11470_v0 = vpop.f32.mrf.mxu1 }
0x18da   :  { %v8544_v47 = vpop.f32.mrf.mxu0  ;;  %8767 = vmatpush1.bf16.msra.mxu1 %v11902_v44 }
0x18db   :  { %v8550_v54 = vpack.c.bf16 %v8544_v47, %v8544_v47  ;;  %8768 = vmatprep.subr.bf16.mxu1 %v11940_v15 }
0x18dc   :  { %v11477_v52 = vpop.f32.mrf.mxu0 }
0x18dd   :  { %9851 = vmatmul.mubr.msk.bf16.vlgmr.msra.gmra.mxu0 %vm5017_vm5, %v8550_v54 }
0x18de   :  { %v8547_v19 = vpop.f32.mrf.mxu0  ;;  %8769 = vmatpush1.bf16.msra.mxu1 %v11903_v46  ;;  %11487 = vmatprep.mubr.msk.bf16.mxu0 %vm11942_vm8, %v11941_v1 }
0x18df   :  { %8770 = vmatprep.subr.bf16.mxu1 %v11940_v15  ;;  %11480 = vmatpush3.bf16.msra.mxu0 %v8847_v37 }
0x18e0   :  { %v11478_v34 = vpop.f32.mrf.mxu0  ;;  %11481 = vmatprep.subr.bf16.mxu0 %v11941_v1 }
0x18e2   :  { %8771 = vmatpush1.bf16.msra.mxu1 %v11904_v17 }
0x18e3   :  { %8772 = vmatprep.subr.bf16.mxu1 %v11940_v15  ;;  %11482 = vmatpush3.bf16.msra.mxu0 %v11915_v57 }
0x18e4   :  { %11483 = vmatprep.subr.bf16.mxu0 %v11941_v1 }
0x18e6   :  { %8773 = vmatpush1.bf16.msra.mxu1 %v11905_v58 }
0x18e7   :  { %8774 = vmatprep.subr.bf16.mxu1 %v11940_v15  ;;  %11484 = vmatpush3.bf16.msra.mxu0 %v11916_v25 }
0x18e8   :  { %11485 = vmatprep.subr.bf16.mxu0 %v11941_v1  ;;  %v9867_v1 = vld [vmem:[%s14266_s26] ss:$0 sm:$0xff] }
0x18ea   :  { %8775 = vmatpush1.bf16.msra.mxu1 %v11906_v14 }
0x18eb   :  { %8776 = vmatprep.subr.bf16.mxu1 %v11940_v15  ;;  %11486 = vmatpush3.bf16.msra.mxu0 %v11917_v9 }
0x18ee   :  { %8777 = vmatpush1.bf16.msra.mxu1 %v11907_v35 }
0x18ef   :  { %8778 = vmatprep.subr.bf16.mxu1 %v11940_v15 }
0x18f2   :  { %8779 = vmatpush1.bf16.msra.mxu1 %v11908_v24 }
0x18f3   :  { %8786 = vmatprep.subr.bf16.mxu1 %v11940_v15 }
0x18f6   :  { %8787 = vmatpush2.bf16.msra.mxu1 %v8762_v2 }
0x18f7   :  { %8788 = vmatprep.subr.bf16.mxu1 %v11940_v15 }
0x18fa   :  { %8789 = vmatpush2.bf16.msra.mxu1 %v11910_v22 }
0x18fb   :  { %8790 = vmatprep.subr.bf16.mxu1 %v11940_v15 }
0x18fe   :  { %8791 = vmatpush2.bf16.msra.mxu1 %v11911_v27 }
0x18ff   :  { %8792 = vmatprep.subr.bf16.mxu1 %v11940_v15 }
0x1902   :  { %8793 = vmatpush2.bf16.msra.mxu1 %v11912_v30 }
0x1903   :  { %8794 = vmatprep.subr.bf16.mxu1 %v11940_v15 }
0x1906   :  { %8795 = vmatpush2.bf16.msra.mxu1 %v11913_v36 }
0x1995   :  { %v8496_v15 = vpop.f32.mrf.mxu1 }
0x1996   :  { %v8503_v28 = vadd.f32 %v8496_v15, %v14157_v12 }
0x1997   :  { %v8498_v61 = vpop.f32.mrf.mxu1 }
0x1998   :  { %v8504_v6 = vadd.f32 %v8498_v61, %v14159_v39 }
0x1999   :  { %v8500_v56 = vpop.f32.mrf.mxu1 }
0x199b   :  { %v8501_v38 = vpop.f32.mrf.mxu1 }
0x199d   :  { %v8637_v62 = vpop.f32.mrf.mxu0 }
0x199e   :  { %v8644_v48 = vadd.f32 %v8637_v62, %v8503_v28 }
0x199f   :  { %v8639_v26 = vpop.f32.mrf.mxu0 }
0x19a0   :  { %v8645_v49 = vadd.f32 %v8639_v26, %v8504_v6  ;;  %v8646_v60 = vmax.f32 %v8644_v48, 0.0 }
0x19a1   :  { %v8641_v10 = vpop.f32.mrf.mxu0 }
0x19a2   :  { %v8647_v20 = vmax.f32 %v8645_v49, 0.0  ;;  %v8648_v16 = vpack.c.bf16 %v8646_v60, %v8646_v60 }
0x19a3   :  { %v8642_v53 = vpop.f32.mrf.mxu0 }
0x19a4   :  { %v8649_v11 = vpack.c.bf16 %v8647_v20, %v8647_v20 }
0x19a6   :  { %9866 = vmatprep.mubr.msk.bf16.mxu1 %vm8757_vm10, %v8649_v11 }
0x19a7   :  { %8797 = vmatmul.mubr.bf16.vlgmr.msra.gmra.mxu1 %v8648_v16 }
0x1a67   :  { %v8798_v32 = vpop.f32.mrf.mxu1 }
0x1a68   :  { %v8799_v40 = vadd.f32 %v9852_v21, %v8798_v32 }
0x1a69   :  { %v8800_v45 = vpop.f32.mrf.mxu1 }
0x1a6a   :  { %v8804_v13 = vmax.f32 %v8799_v40, 0.0 }
0x1a6b   :  { %v8801_v31 = vpop.f32.mrf.mxu1 }
0x1a6c   :  { %v8805_v18 = vpack.c.bf16 %v8804_v13, %v8804_v13 }
0x1a6d   :  { %v8802_v29 = vpop.f32.mrf.mxu1 }
0x1a6e   :  { %11488 = vmatmul.mubr.msk.bf16.vlgmr.msra.gmra.mxu0 %vm8841_vm11, %v8805_v18 }
0x1b2e   :  { %v8883_v42 = vpop.f32.mrf.mxu0 }
0x1b2f   :  { %v8884_v5 = vadd.f32 %v9867_v1, %v8883_v42 }
0x1b30   :  { %v11489_v55 = vpop.f32.mrf.mxu0 }
0x1b31   :  { %8890 = vst.msk [vmem:[#allocation2] sm:$0x3] %vm8889_vm12, %v8884_v5 }
0x1b32   :  { %v8886_v8 = vpop.f32.mrf.mxu0 }
0x1b33   :  { %11929 = shalt.err (!%p11926_p4)
}
0x1b34   :  { %8900 = dma.vmem_to_hbm [thread:$0]  %s8898_s25, 32, %s14267_s27, [#allocation3]   ;;  %v11490_v43 = vpop.f32.mrf.mxu0 }
0x1b35   :  { %11938 = dma.done.wait [#allocation3], 32  }
0x1b36   :  { %11939 = vsyncadd [#allocation3], 4294967264 }
0x1b37   :  { %8904 = vsyncpa [#allocation3], 1 }

</bundles_post_ra>
